<compile_context>
chip_gen: v5e
topology: v5e:2x2
jax: 0.10.0
libtpu: 0.0.40
codegen_flags: <defaults>
</compile_context>

<pallas_src>
import functools

import jax
import jax.numpy as jnp
from jax import lax
from jax.experimental import pallas as pl
from jax.experimental.pallas import tpu as pltpu

_F32 = jnp.float32
_NEG = -1e30


def _fiota(shape, dim):
    return lax.broadcasted_iota(jnp.int32, shape, dim).astype(_F32)


# --------------------------- fused forward kernel ----------------------------

def _msignn_kernel(x_ref, local_ref, mask_ref, kvec_ref, src_ref, dst_ref,
                   w1_ref, asrc1_ref, atrg1_ref, b1_ref,
                   w2_ref, asrc2_ref, atrg2_ref, b2_ref,
                   wf0_ref, bf0_ref, wf1_ref, bf1_ref, wf2t_ref, bf2_ref,
                   o_ref, *, n, ne, f0, f1, f2, h1, h2, neg_slope=0.2):
    x = x_ref[...]
    local = local_ref[...]
    mask = mask_ref[...]
    kvec = kvec_ref[...]
    valid = mask > 0.5

    # -------- structural constants (iota built; shared by both GA layers) ----
    # top-k pairwise rank helpers, column encoding col = s*n + s'
    # (s = candidate being ranked, s' = comparator).
    r_big = _fiota((n, n * n), 0)
    c_big = _fiota((n, n * n), 1)
    c_maj = jnp.floor(c_big / n)                       # s
    c_min = c_big - c_maj * n                          # s'
    tile_min = jnp.where(c_min == r_big, 1.0, 0.0)     # picks scores[:, s']
    tile_maj = jnp.where(c_maj == r_big, 1.0, 0.0)     # picks scores[:, s]
    lt = c_min < c_maj                                 # tie-break: s' < s
    g_r = _fiota((n * n, n), 0)
    g_c = _fiota((n * n, n), 1)
    g_sum = jnp.where(jnp.floor(g_r / n) == g_c, 1.0, 0.0)   # [n*n, n]

    def elu(v):
        return jnp.where(v > 0.0, v, jnp.exp(v) - 1.0)

    def ga_core(proj, asrc_blk, atrg_blkT, nh, nf):
        """Shared GA-layer core: returns per-head aggregated features [n, nf].

        Heads are stacked on the sublane axis ([nh*n, n]) so every
        elementwise / reduce step runs once for all heads.
        """
        # replication / head-select constants for this head count
        rr = _fiota((nh * n, n), 0)
        cc = _fiota((nh * n, n), 1)
        rep = jnp.where(rr - jnp.floor(rr / n) * n == cc, 1.0, 0.0)   # [nh*n, n]
        rr2 = _fiota((n, nh * n), 0)
        cc2 = _fiota((n, nh * n), 1)
        rept = jnp.where(cc2 - jnp.floor(cc2 / n) * n == rr2, 1.0, 0.0)  # [n, nh*n]
        rr3 = _fiota((nh * n, nh), 0)
        cc3 = _fiota((nh * n, nh), 1)
        hsel = jnp.where(jnp.floor(rr3 / n) == cc3, 1.0, 0.0)         # [nh*n, nh]

        # attention logits: logits[h*n+t, s] = trg_score[t,h] + src_score[s,h]
        ssrcT = lax.dot_general(asrc_blk, proj, (((1,), (1,)), ((), ())),
                                preferred_element_type=_F32)           # [nh, n]
        ssrc = jnp.dot(hsel, ssrcT, preferred_element_type=_F32)       # [nh*n, n]
        strg = jnp.dot(proj, atrg_blkT, preferred_element_type=_F32)   # [n, nh]
        strg_rep = jnp.dot(rep, strg, preferred_element_type=_F32)     # [nh*n, nh]
        strg_col = jnp.sum(strg_rep * hsel, axis=1, keepdims=True)     # [nh*n, 1]
        logits = ssrc + strg_col
        logits = jnp.where(logits >= 0.0, logits, neg_slope * logits)  # LeakyReLU

        # neighborhood softmax; per-(head,target) max shift (same attention as
        # the reference global-max shift, up to the +1e-16 epsilon).
        mask_h = jnp.dot(rep, mask, preferred_element_type=_F32)
        valid_h = mask_h > 0.5
        lm = jnp.where(valid_h, logits, _NEG)
        row_max = jnp.max(lm, axis=1, keepdims=True)
        p = jnp.where(valid_h, jnp.exp(lm - row_max), 0.0)
        denom = jnp.sum(p, axis=1, keepdims=True) + 1e-16
        att = p / denom                                                # [nh*n, n]

        # per-target top-k pruning: head-sum / 0.5, lane-dense pairwise rank,
        # group reduction on the MXU.
        asum = 2.0 * jnp.dot(rept, att, preferred_element_type=_F32)   # [n, n]
        sc = jnp.where(valid, asum, _NEG)
        s_min = jnp.dot(sc, tile_min, preferred_element_type=_F32)     # [n, n*n]
        s_maj = jnp.dot(sc, tile_maj, preferred_element_type=_F32)     # [n, n*n]
        bigger = jnp.where((s_min > s_maj) | ((s_min == s_maj) & lt), 1.0, 0.0)
        rank = jnp.dot(bigger, g_sum, preferred_element_type=_F32)     # [n, n]
        # TODO(synk): tie-breaking for exactly-equal scores may differ from
        # torch_geometric topk (kept sets identical otherwise).
        keep = jnp.where((rank < kvec) & valid, 1.0, 0.0)              # [n, n]
        keep_h = jnp.dot(rep, keep, preferred_element_type=_F32)       # [nh*n, n]
        w_att = att * keep_h

        outs = []
        for h in range(nh):                     # tiny per-head MXU matmuls only
            outs.append(jnp.dot(w_att[h * n:(h + 1) * n, :],
                                proj[:, h * nf:(h + 1) * nf],
                                preferred_element_type=_F32))
        return outs

    # -------- GA layer 1 (concat + residual) --------------------------------
    proj1 = jnp.dot(x, w1_ref[...], preferred_element_type=_F32)       # [n, h1*f1]
    outs1 = ga_core(proj1, asrc1_ref[...], atrg1_ref[...], h1, f1)

    # Fold h1 = [out0 | local | out1 | local] (+bias, ELU) directly into the
    # layer-2 projection: proj2 = sum_seg ELU(seg + b1[seg]) @ W2[rows(seg)].
    b1 = b1_ref[...]
    segs = []
    off = 0
    for h in range(h1):
        segs.append((outs1[h], off, off + f1))
        off += f1
        segs.append((local, off, off + f0))
        off += f0
    proj2 = None
    for val, lo, hi in segs:
        seg = elu(val + b1[:, lo:hi])
        term = jnp.dot(seg, w2_ref[lo:hi, :], preferred_element_type=_F32)
        proj2 = term if proj2 is None else proj2 + term                # [n, h2*f2]

    # -------- GA layer 2 (head mean, no residual) ----------------------------
    outs2 = ga_core(proj2, asrc2_ref[...], atrg2_ref[...], h2, f2)
    acc = outs2[0]
    for h in range(1, h2):
        acc = acc + outs2[h]
    node_out = elu(acc * (1.0 / h2) + b2_ref[...])                     # [n, f2]

    # -------- edge-pair FFN ---------------------------------------------------
    lane = lax.broadcasted_iota(jnp.int32, (ne, n), 1)
    sel1 = jnp.where(lane == src_ref[...], 1.0, 0.0)                   # [ne, n]
    sel2 = jnp.where(lane == dst_ref[...], 1.0, 0.0)
    e1 = jnp.dot(sel1, node_out, preferred_element_type=_F32)          # [ne, f2]
    e2 = jnp.dot(sel2, node_out, preferred_element_type=_F32)
    # feature concat [e1+e2, e1*e2, e1, e2] folded into row blocks of W0
    hcur = (jnp.dot(e1 + e2, wf0_ref[0:f2, :], preferred_element_type=_F32)
            + jnp.dot(e1 * e2, wf0_ref[f2:2 * f2, :], preferred_element_type=_F32)
            + jnp.dot(e1, wf0_ref[2 * f2:3 * f2, :], preferred_element_type=_F32)
            + jnp.dot(e2, wf0_ref[3 * f2:4 * f2, :], preferred_element_type=_F32)
            + bf0_ref[...])
    hcur = jnp.maximum(hcur, 0.0)
    hcur = jnp.maximum(
        jnp.dot(hcur, wf1_ref[...], preferred_element_type=_F32) + bf1_ref[...],
        0.0)
    # last layer contracted against the transposed weight -> lane-dense [1, ne]
    logit = lax.dot_general(wf2t_ref[...], hcur, (((1,), (1,)), ((), ())),
                            preferred_element_type=_F32) + bf2_ref[...]
    o_ref[...] = 0.5 * (jnp.tanh(0.5 * logit) + 1.0)   # numerically-safe sigmoid


# --------------------------- XLA glue (graph preprocessing) -------------------

def khop_source_mask(edge_index, num_nodes, num_hops):
    """mask[t, s] = 1 iff s reaches t via a directed path of <= num_hops edges
    and s != t (dense equivalent of k_hop_subgraph, source->target flow)."""
    src, trg = edge_index[0], edge_index[1]
    a = jnp.zeros((num_nodes, num_nodes), _F32).at[src, trg].set(1.0)   # a[s, t]
    reach = a
    power = a
    for _ in range(num_hops - 1):
        power = (a @ power > 0).astype(_F32)
        reach = jnp.maximum(reach, power)
    eye = jnp.eye(num_nodes, dtype=_F32)
    return reach.T * (1.0 - eye)                                        # [t, s]


def _flops_estimate(n, ne, f0, f1, f2, h1, h2, hid1, hid2):
    mm = n * f0 * h1 * f1
    for nh, nf in ((h1, f1), (h2, f2)):
        hf = nh * nf
        mm += nh * hf * n + nh * n * nh * n + n * hf * nh + nh * n * n * nh
        mm += nh * n * n * n * 2 + n * nh * n * n
        mm += 3 * n * n * n * n                       # top-k matmuls
        mm += nh * n * n * nf                         # aggregation
    mm += n * 2 * (f0 + f1) * h2 * f2                 # segment fold into proj2
    mm += 2 * ne * n * f2                             # edge gathers
    mm += ne * 4 * f2 * hid1 + ne * hid1 * hid2 + ne * hid2
    return 2 * mm


def msignn_forward(params, x, edge_index, local_emb, cfg):
    n = x.shape[0]
    ne = edge_index.shape[1]
    f0, f1, f2 = cfg["F0"], cfg["F1"], cfg["F2"]
    h1, h2 = cfg["H1"], cfg["H2"]
    hid1, hid2 = cfg["ffn_hidden1"], cfg["ffn_hidden2"]
    assert h1 == 2, "torch res_connect concatenates exactly 2 copies"
    assert cfg["ffn_input"] == 4 * f2
    assert cfg["ffn_output"] == 1

    # k-hop mask & per-target top-k budget are identical for both GA layers:
    # compute once in XLA glue and share.
    mask = khop_source_mask(edge_index, n, cfg["num_of_hop"])           # [t, s]
    deg = jnp.sum(mask, axis=1, keepdims=True)
    kvec = jnp.ceil(cfg["ratio"] * deg).astype(_F32)                    # [n, 1]

    src_idx = edge_index[0].astype(jnp.int32).reshape(ne, 1)
    dst_idx = edge_index[1].astype(jnp.int32).reshape(ne, 1)

    g1, g2 = params["gat1"], params["gat2"]
    args = [x.astype(_F32), local_emb.astype(_F32), mask, kvec, src_idx, dst_idx,
            g1["w_proj"], g1["a_src_blk"], g1["a_trg_blkT"], g1["bias_row"],
            g2["w_proj"], g2["a_src_blk"], g2["a_trg_blkT"], g2["bias_row"],
            params["ffn_i_w"], params["ffn_i_b_row"],
            params["ffn_1_w"], params["ffn_1_b_row"],
            params["ffn_2_wT"], params["ffn_2_b_row"]]

    kern = functools.partial(_msignn_kernel, n=n, ne=ne, f0=f0, f1=f1, f2=f2,
                             h1=h1, h2=h2)

    bytes_accessed = sum(int(a.size) * a.dtype.itemsize for a in args) + ne * 4
    flops = _flops_estimate(n, ne, f0, f1, f2, h1, h2, hid1, hid2)
    trans = (h1 + h2) * n * n + n * (h1 * (f0 + f1) + f2) + ne
    cost = pl.CostEstimate(flops=int(flops), transcendentals=int(trans),
                           bytes_accessed=int(bytes_accessed))

    out = pl.pallas_call(
        kern,
        out_shape=jax.ShapeDtypeStruct((1, ne), _F32),
        in_specs=[pl.BlockSpec(memory_space=pltpu.MemorySpace.VMEM)] * len(args),
        out_specs=pl.BlockSpec(memory_space=pltpu.MemorySpace.VMEM),
        compiler_params=pltpu.CompilerParams(vmem_limit_bytes=32 * 1024 * 1024),
        cost_estimate=cost,
    )(*args)
    return out.reshape(-1)


# --------------------------- parameters (kernel-ready layouts) ----------------

def _xavier(key, shape, fan_in, fan_out):
    bound = (6.0 / (fan_in + fan_out)) ** 0.5
    return jax.random.uniform(key, shape, _F32, -bound, bound)


def _head_block(a):
    """[H, F] -> [H, H*F]: row h carries a[h] in columns h*F:(h+1)*F, else 0."""
    h, f = a.shape
    eye = jnp.eye(h, dtype=a.dtype)
    return (eye[:, :, None] * a[:, None, :]).reshape(h, h * f)


def init_params(key, cfg):
    f0, f1, f2 = cfg["F0"], cfg["F1"], cfg["F2"]
    h1, h2 = cfg["H1"], cfg["H2"]
    in2 = h1 * (f0 + f1)
    ks = jax.random.split(key, 12)

    a_src1 = _xavier(ks[1], (h1, f1), h1, f1)
    a_trg1 = _xavier(ks[2], (h1, f1), h1, f1)
    a_src2 = _xavier(ks[4], (h2, f2), h2, f2)
    a_trg2 = _xavier(ks[5], (h2, f2), h2, f2)

    return {
        "gat1": {
            "w_proj": _xavier(ks[0], (f0, h1 * f1), f0, h1 * f1),
            "a_src_blk": _head_block(a_src1),            # [h1, h1*f1]
            "a_trg_blkT": _head_block(a_trg1).T,         # [h1*f1, h1]
            "bias_row": jnp.zeros((1, h1 * (f0 + f1)), _F32),
        },
        "gat2": {
            "w_proj": _xavier(ks[3], (in2, h2 * f2), in2, h2 * f2),
            "a_src_blk": _head_block(a_src2),            # [h2, h2*f2]
            "a_trg_blkT": _head_block(a_trg2).T,         # [h2*f2, h2]
            "bias_row": jnp.zeros((1, f2), _F32),
        },
        "ffn_i_w": _xavier(ks[6], (cfg["ffn_input"], cfg["ffn_hidden1"]),
                           cfg["ffn_input"], cfg["ffn_hidden1"]),
        "ffn_i_b_row": 0.01 * jax.random.normal(ks[7], (1, cfg["ffn_hidden1"]), _F32),
        "ffn_1_w": _xavier(ks[8], (cfg["ffn_hidden1"], cfg["ffn_hidden2"]),
                           cfg["ffn_hidden1"], cfg["ffn_hidden2"]),
        "ffn_1_b_row": 0.01 * jax.random.normal(ks[9], (1, cfg["ffn_hidden2"]), _F32),
        "ffn_2_wT": _xavier(ks[10], (cfg["ffn_output"], cfg["ffn_hidden2"]),
                            cfg["ffn_hidden2"], cfg["ffn_output"]),
        "ffn_2_b_row": 0.01 * jax.random.normal(ks[11], (1, cfg["ffn_output"]), _F32),
    }


# --------------------------- main ---------------------------------------------

if __name__ == "__main__":
    cfg = dict(F0=8, F1=16, F2=8, H1=2, H2=3, num_of_hop=2, ratio=0.5,
               ffn_input=32, ffn_hidden1=32, ffn_hidden2=16, ffn_output=1)

    key = jax.random.PRNGKey(0)
    kp, kx, kl = jax.random.split(key, 3)
    params = init_params(kp, cfg)

    n_nodes = 16
    x = jax.random.normal(kx, (n_nodes, cfg["F0"]), _F32)
    local_emb = jax.random.normal(kl, (n_nodes, cfg["F0"]), _F32)
    src = jnp.arange(n_nodes, dtype=jnp.int32)
    edge_index = jnp.stack([
        jnp.concatenate([src, src]),
        jnp.concatenate([(src + 1) % n_nodes, (src + 5) % n_nodes]),
    ], axis=0)                                                          # [2, 32]

    @jax.jit
    def fwd(params, x, edge_index, local_emb):
        return msignn_forward(params, x, edge_index, local_emb, cfg)

    preds = fwd(params, x, edge_index, local_emb)
    jax.block_until_ready(preds)
    assert preds.shape == (edge_index.shape[1],)
    assert bool(jnp.all(jnp.isfinite(preds)))
    print("KERNEL_OK")
</pallas_src>

<mosaic_0001>
module attributes {stable_mosaic.version = 11 : i64} {
  func.func @_msignn_kernel(%arg0: memref<16x8xf32, #tpu.memory_space<vmem>>, %arg1: memref<16x8xf32, #tpu.memory_space<vmem>>, %arg2: memref<16x16xf32, #tpu.memory_space<vmem>>, %arg3: memref<16x1xf32, #tpu.memory_space<vmem>>, %arg4: memref<32x1xi32, #tpu.memory_space<vmem>>, %arg5: memref<32x1xi32, #tpu.memory_space<vmem>>, %arg6: memref<8x32xf32, #tpu.memory_space<vmem>>, %arg7: memref<2x32xf32, #tpu.memory_space<vmem>>, %arg8: memref<32x2xf32, #tpu.memory_space<vmem>>, %arg9: memref<1x48xf32, #tpu.memory_space<vmem>>, %arg10: memref<48x24xf32, #tpu.memory_space<vmem>>, %arg11: memref<3x24xf32, #tpu.memory_space<vmem>>, %arg12: memref<24x3xf32, #tpu.memory_space<vmem>>, %arg13: memref<1x8xf32, #tpu.memory_space<vmem>>, %arg14: memref<32x32xf32, #tpu.memory_space<vmem>>, %arg15: memref<1x32xf32, #tpu.memory_space<vmem>>, %arg16: memref<32x16xf32, #tpu.memory_space<vmem>>, %arg17: memref<1x16xf32, #tpu.memory_space<vmem>>, %arg18: memref<1x16xf32, #tpu.memory_space<vmem>>, %arg19: memref<1x1xf32, #tpu.memory_space<vmem>>, %arg20: memref<1x32xf32, #tpu.memory_space<vmem>>) attributes {dimension_semantics = [], scalar_prefetch = 0 : i64, scratch_operands = 0 : i64, tpu.core_type = #tpu.core_type<tc>} {
    %c0 = arith.constant 0 : index
    %c0_0 = arith.constant 0 : index
    %0 = vector.load %arg0[%c0, %c0_0] : memref<16x8xf32, #tpu.memory_space<vmem>>, vector<16x8xf32>
    %c0_1 = arith.constant 0 : index
    %c0_2 = arith.constant 0 : index
    %1 = vector.load %arg1[%c0_1, %c0_2] : memref<16x8xf32, #tpu.memory_space<vmem>>, vector<16x8xf32>
    %c0_3 = arith.constant 0 : index
    %c0_4 = arith.constant 0 : index
    %2 = vector.load %arg2[%c0_3, %c0_4] : memref<16x16xf32, #tpu.memory_space<vmem>>, vector<16x16xf32>
    %c0_5 = arith.constant 0 : index
    %c0_6 = arith.constant 0 : index
    %3 = vector.load %arg3[%c0_5, %c0_6] : memref<16x1xf32, #tpu.memory_space<vmem>>, vector<16x1xf32>
    %cst = arith.constant 5.000000e-01 : f32
    %4 = vector.broadcast %cst : f32 to vector<16x16xf32>
    %5 = arith.cmpf ogt, %2, %4 : vector<16x16xf32>
    %6 = tpu.iota {dimensions = array<i32: 0>} : vector<16x256xi32>
    %7 = arith.sitofp %6 : vector<16x256xi32> to vector<16x256xf32>
    %8 = tpu.iota {dimensions = array<i32: 1>} : vector<16x256xi32>
    %9 = arith.sitofp %8 : vector<16x256xi32> to vector<16x256xf32>
    %cst_7 = arith.constant 1.600000e+01 : f32
    %10 = vector.broadcast %cst_7 : f32 to vector<16x256xf32>
    %11 = arith.divf %9, %10 : vector<16x256xf32>
    %12 = math.floor %11 : vector<16x256xf32>
    %cst_8 = arith.constant 1.600000e+01 : f32
    %13 = vector.broadcast %cst_8 : f32 to vector<16x256xf32>
    %14 = arith.mulf %12, %13 : vector<16x256xf32>
    %15 = arith.subf %9, %14 : vector<16x256xf32>
    %16 = arith.cmpf oeq, %15, %7 : vector<16x256xf32>
    %cst_9 = arith.constant 1.000000e+00 : f32
    %cst_10 = arith.constant 0.000000e+00 : f32
    %17 = vector.broadcast %cst_9 : f32 to vector<16x256xf32>
    %18 = vector.broadcast %cst_10 : f32 to vector<16x256xf32>
    %19 = arith.select %16, %17, %18 : vector<16x256xi1>, vector<16x256xf32>
    %20 = arith.cmpf oeq, %12, %7 : vector<16x256xf32>
    %cst_11 = arith.constant 1.000000e+00 : f32
    %cst_12 = arith.constant 0.000000e+00 : f32
    %21 = vector.broadcast %cst_11 : f32 to vector<16x256xf32>
    %22 = vector.broadcast %cst_12 : f32 to vector<16x256xf32>
    %23 = arith.select %20, %21, %22 : vector<16x256xi1>, vector<16x256xf32>
    %24 = arith.cmpf olt, %15, %12 : vector<16x256xf32>
    %25 = tpu.iota {dimensions = array<i32: 0>} : vector<256x16xi32>
    %26 = arith.sitofp %25 : vector<256x16xi32> to vector<256x16xf32>
    %27 = tpu.iota {dimensions = array<i32: 1>} : vector<256x16xi32>
    %28 = arith.sitofp %27 : vector<256x16xi32> to vector<256x16xf32>
    %cst_13 = arith.constant 1.600000e+01 : f32
    %29 = vector.broadcast %cst_13 : f32 to vector<256x16xf32>
    %30 = arith.divf %26, %29 : vector<256x16xf32>
    %31 = math.floor %30 : vector<256x16xf32>
    %32 = arith.cmpf oeq, %31, %28 : vector<256x16xf32>
    %cst_14 = arith.constant 1.000000e+00 : f32
    %cst_15 = arith.constant 0.000000e+00 : f32
    %33 = vector.broadcast %cst_14 : f32 to vector<256x16xf32>
    %34 = vector.broadcast %cst_15 : f32 to vector<256x16xf32>
    %35 = arith.select %32, %33, %34 : vector<256x16xi1>, vector<256x16xf32>
    %c0_16 = arith.constant 0 : index
    %c0_17 = arith.constant 0 : index
    %36 = vector.load %arg6[%c0_16, %c0_17] : memref<8x32xf32, #tpu.memory_space<vmem>>, vector<8x32xf32>
    %cst_18 = arith.constant dense<0.000000e+00> : vector<16x32xf32>
    %37 = tpu.matmul %0, %36, %cst_18 {dimension_numbers = #tpu.dot_dimension_numbers<[1], [0], [0], [1], [0, 0, 1, 1], [], []>} : vector<16x8xf32>, vector<8x32xf32>, vector<16x32xf32> -> vector<16x32xf32>
    %c0_19 = arith.constant 0 : index
    %c0_20 = arith.constant 0 : index
    %38 = vector.load %arg7[%c0_19, %c0_20] : memref<2x32xf32, #tpu.memory_space<vmem>>, vector<2x32xf32>
    %c0_21 = arith.constant 0 : index
    %c0_22 = arith.constant 0 : index
    %39 = vector.load %arg8[%c0_21, %c0_22] : memref<32x2xf32, #tpu.memory_space<vmem>>, vector<32x2xf32>
    %40 = tpu.iota {dimensions = array<i32: 0>} : vector<32x16xi32>
    %41 = arith.sitofp %40 : vector<32x16xi32> to vector<32x16xf32>
    %42 = tpu.iota {dimensions = array<i32: 1>} : vector<32x16xi32>
    %43 = arith.sitofp %42 : vector<32x16xi32> to vector<32x16xf32>
    %cst_23 = arith.constant 1.600000e+01 : f32
    %44 = vector.broadcast %cst_23 : f32 to vector<32x16xf32>
    %45 = arith.divf %41, %44 : vector<32x16xf32>
    %46 = math.floor %45 : vector<32x16xf32>
    %cst_24 = arith.constant 1.600000e+01 : f32
    %47 = vector.broadcast %cst_24 : f32 to vector<32x16xf32>
    %48 = arith.mulf %46, %47 : vector<32x16xf32>
    %49 = arith.subf %41, %48 : vector<32x16xf32>
    %50 = arith.cmpf oeq, %49, %43 : vector<32x16xf32>
    %cst_25 = arith.constant 1.000000e+00 : f32
    %cst_26 = arith.constant 0.000000e+00 : f32
    %51 = vector.broadcast %cst_25 : f32 to vector<32x16xf32>
    %52 = vector.broadcast %cst_26 : f32 to vector<32x16xf32>
    %53 = arith.select %50, %51, %52 : vector<32x16xi1>, vector<32x16xf32>
    %54 = tpu.iota {dimensions = array<i32: 0>} : vector<16x32xi32>
    %55 = arith.sitofp %54 : vector<16x32xi32> to vector<16x32xf32>
    %56 = tpu.iota {dimensions = array<i32: 1>} : vector<16x32xi32>
    %57 = arith.sitofp %56 : vector<16x32xi32> to vector<16x32xf32>
    %cst_27 = arith.constant 1.600000e+01 : f32
    %58 = vector.broadcast %cst_27 : f32 to vector<16x32xf32>
    %59 = arith.divf %57, %58 : vector<16x32xf32>
    %60 = math.floor %59 : vector<16x32xf32>
    %cst_28 = arith.constant 1.600000e+01 : f32
    %61 = vector.broadcast %cst_28 : f32 to vector<16x32xf32>
    %62 = arith.mulf %60, %61 : vector<16x32xf32>
    %63 = arith.subf %57, %62 : vector<16x32xf32>
    %64 = arith.cmpf oeq, %63, %55 : vector<16x32xf32>
    %cst_29 = arith.constant 1.000000e+00 : f32
    %cst_30 = arith.constant 0.000000e+00 : f32
    %65 = vector.broadcast %cst_29 : f32 to vector<16x32xf32>
    %66 = vector.broadcast %cst_30 : f32 to vector<16x32xf32>
    %67 = arith.select %64, %65, %66 : vector<16x32xi1>, vector<16x32xf32>
    %68 = tpu.iota {dimensions = array<i32: 0>} : vector<32x2xi32>
    %69 = arith.sitofp %68 : vector<32x2xi32> to vector<32x2xf32>
    %70 = tpu.iota {dimensions = array<i32: 1>} : vector<32x2xi32>
    %71 = arith.sitofp %70 : vector<32x2xi32> to vector<32x2xf32>
    %cst_31 = arith.constant 1.600000e+01 : f32
    %72 = vector.broadcast %cst_31 : f32 to vector<32x2xf32>
    %73 = arith.divf %69, %72 : vector<32x2xf32>
    %74 = math.floor %73 : vector<32x2xf32>
    %75 = arith.cmpf oeq, %74, %71 : vector<32x2xf32>
    %cst_32 = arith.constant 1.000000e+00 : f32
    %cst_33 = arith.constant 0.000000e+00 : f32
    %76 = vector.broadcast %cst_32 : f32 to vector<32x2xf32>
    %77 = vector.broadcast %cst_33 : f32 to vector<32x2xf32>
    %78 = arith.select %75, %76, %77 : vector<32x2xi1>, vector<32x2xf32>
    %cst_34 = arith.constant dense<0.000000e+00> : vector<2x16xf32>
    %79 = tpu.matmul %38, %37, %cst_34 {dimension_numbers = #tpu.dot_dimension_numbers<[1], [1], [0], [0], [0, 0, 1, 0], [], []>} : vector<2x32xf32>, vector<16x32xf32>, vector<2x16xf32> -> vector<2x16xf32>
    %cst_35 = arith.constant dense<0.000000e+00> : vector<32x16xf32>
    %80 = tpu.matmul %78, %79, %cst_35 {dimension_numbers = #tpu.dot_dimension_numbers<[1], [0], [0], [1], [0, 0, 1, 1], [], []>} : vector<32x2xf32>, vector<2x16xf32>, vector<32x16xf32> -> vector<32x16xf32>
    %cst_36 = arith.constant dense<0.000000e+00> : vector<16x2xf32>
    %81 = tpu.matmul %37, %39, %cst_36 {dimension_numbers = #tpu.dot_dimension_numbers<[1], [0], [0], [1], [0, 0, 1, 1], [], []>} : vector<16x32xf32>, vector<32x2xf32>, vector<16x2xf32> -> vector<16x2xf32>
    %cst_37 = arith.constant dense<0.000000e+00> : vector<32x2xf32>
    %82 = tpu.matmul %53, %81, %cst_37 {dimension_numbers = #tpu.dot_dimension_numbers<[1], [0], [0], [1], [0, 0, 1, 1], [], []>} : vector<32x16xf32>, vector<16x2xf32>, vector<32x2xf32> -> vector<32x2xf32>
    %83 = arith.mulf %82, %78 : vector<32x2xf32>
    %cst_38 = arith.constant dense<0.000000e+00> : vector<32xf32>
    %84 = vector.multi_reduction <add>, %83, %cst_38 [1] : vector<32x2xf32> to vector<32xf32>
    %85 = vector.shape_cast %84 : vector<32xf32> to vector<32x1xf32>
    %86 = vector.broadcast %85 : vector<32x1xf32> to vector<32x16xf32>
    %87 = arith.addf %80, %86 : vector<32x16xf32>
    %cst_39 = arith.constant 0.000000e+00 : f32
    %88 = vector.broadcast %cst_39 : f32 to vector<32x16xf32>
    %89 = arith.cmpf oge, %87, %88 : vector<32x16xf32>
    %cst_40 = arith.constant 2.000000e-01 : f32
    %90 = vector.broadcast %cst_40 : f32 to vector<32x16xf32>
    %91 = arith.mulf %90, %87 : vector<32x16xf32>
    %92 = arith.select %89, %87, %91 : vector<32x16xi1>, vector<32x16xf32>
    %cst_41 = arith.constant dense<0.000000e+00> : vector<32x16xf32>
    %93 = tpu.matmul %53, %2, %cst_41 {dimension_numbers = #tpu.dot_dimension_numbers<[1], [0], [0], [1], [0, 0, 1, 1], [], []>} : vector<32x16xf32>, vector<16x16xf32>, vector<32x16xf32> -> vector<32x16xf32>
    %cst_42 = arith.constant 5.000000e-01 : f32
    %94 = vector.broadcast %cst_42 : f32 to vector<32x16xf32>
    %95 = arith.cmpf ogt, %93, %94 : vector<32x16xf32>
    %cst_43 = arith.constant -1.000000e+30 : f32
    %96 = vector.broadcast %cst_43 : f32 to vector<32x16xf32>
    %97 = arith.select %95, %92, %96 : vector<32x16xi1>, vector<32x16xf32>
    %cst_44 = arith.constant dense<0xFF800000> : vector<32xf32>
    %98 = vector.multi_reduction <maximumf>, %97, %cst_44 [1] : vector<32x16xf32> to vector<32xf32>
    %99 = vector.shape_cast %98 : vector<32xf32> to vector<32x1xf32>
    %100 = vector.broadcast %99 : vector<32x1xf32> to vector<32x16xf32>
    %101 = arith.subf %97, %100 : vector<32x16xf32>
    %102 = math.exp %101 : vector<32x16xf32>
    %cst_45 = arith.constant 0.000000e+00 : f32
    %103 = vector.broadcast %cst_45 : f32 to vector<32x16xf32>
    %104 = arith.select %95, %102, %103 : vector<32x16xi1>, vector<32x16xf32>
    %cst_46 = arith.constant dense<0.000000e+00> : vector<32xf32>
    %105 = vector.multi_reduction <add>, %104, %cst_46 [1] : vector<32x16xf32> to vector<32xf32>
    %106 = vector.shape_cast %105 : vector<32xf32> to vector<32x1xf32>
    %cst_47 = arith.constant 1.000000e-16 : f32
    %107 = vector.broadcast %cst_47 : f32 to vector<32x1xf32>
    %108 = arith.addf %106, %107 : vector<32x1xf32>
    %109 = vector.broadcast %108 : vector<32x1xf32> to vector<32x16xf32>
    %110 = arith.divf %104, %109 : vector<32x16xf32>
    %cst_48 = arith.constant dense<0.000000e+00> : vector<16x16xf32>
    %111 = tpu.matmul %67, %110, %cst_48 {dimension_numbers = #tpu.dot_dimension_numbers<[1], [0], [0], [1], [0, 0, 1, 1], [], []>} : vector<16x32xf32>, vector<32x16xf32>, vector<16x16xf32> -> vector<16x16xf32>
    %cst_49 = arith.constant 2.000000e+00 : f32
    %112 = vector.broadcast %cst_49 : f32 to vector<16x16xf32>
    %113 = arith.mulf %112, %111 : vector<16x16xf32>
    %cst_50 = arith.constant -1.000000e+30 : f32
    %114 = vector.broadcast %cst_50 : f32 to vector<16x16xf32>
    %115 = arith.select %5, %113, %114 : vector<16x16xi1>, vector<16x16xf32>
    %cst_51 = arith.constant dense<0.000000e+00> : vector<16x256xf32>
    %116 = tpu.matmul %115, %19, %cst_51 {dimension_numbers = #tpu.dot_dimension_numbers<[1], [0], [0], [1], [0, 0, 1, 1], [], []>} : vector<16x16xf32>, vector<16x256xf32>, vector<16x256xf32> -> vector<16x256xf32>
    %cst_52 = arith.constant dense<0.000000e+00> : vector<16x256xf32>
    %117 = tpu.matmul %115, %23, %cst_52 {dimension_numbers = #tpu.dot_dimension_numbers<[1], [0], [0], [1], [0, 0, 1, 1], [], []>} : vector<16x16xf32>, vector<16x256xf32>, vector<16x256xf32> -> vector<16x256xf32>
    %118 = arith.cmpf ogt, %116, %117 : vector<16x256xf32>
    %119 = arith.cmpf oeq, %116, %117 : vector<16x256xf32>
    %120 = arith.andi %119, %24 : vector<16x256xi1>
    %121 = arith.ori %118, %120 : vector<16x256xi1>
    %cst_53 = arith.constant 1.000000e+00 : f32
    %cst_54 = arith.constant 0.000000e+00 : f32
    %122 = vector.broadcast %cst_53 : f32 to vector<16x256xf32>
    %123 = vector.broadcast %cst_54 : f32 to vector<16x256xf32>
    %124 = arith.select %121, %122, %123 : vector<16x256xi1>, vector<16x256xf32>
    %cst_55 = arith.constant dense<0.000000e+00> : vector<16x16xf32>
    %125 = tpu.matmul %124, %35, %cst_55 {dimension_numbers = #tpu.dot_dimension_numbers<[1], [0], [0], [1], [0, 0, 1, 1], [], []>} : vector<16x256xf32>, vector<256x16xf32>, vector<16x16xf32> -> vector<16x16xf32>
    %126 = vector.broadcast %3 : vector<16x1xf32> to vector<16x16xf32>
    %127 = arith.cmpf olt, %125, %126 : vector<16x16xf32>
    %128 = arith.andi %127, %5 : vector<16x16xi1>
    %cst_56 = arith.constant 1.000000e+00 : f32
    %cst_57 = arith.constant 0.000000e+00 : f32
    %129 = vector.broadcast %cst_56 : f32 to vector<16x16xf32>
    %130 = vector.broadcast %cst_57 : f32 to vector<16x16xf32>
    %131 = arith.select %128, %129, %130 : vector<16x16xi1>, vector<16x16xf32>
    %cst_58 = arith.constant dense<0.000000e+00> : vector<32x16xf32>
    %132 = tpu.matmul %53, %131, %cst_58 {dimension_numbers = #tpu.dot_dimension_numbers<[1], [0], [0], [1], [0, 0, 1, 1], [], []>} : vector<32x16xf32>, vector<16x16xf32>, vector<32x16xf32> -> vector<32x16xf32>
    %133 = arith.mulf %110, %132 : vector<32x16xf32>
    %134 = vector.extract_strided_slice %133 {offsets = [0, 0], sizes = [16, 16], strides = [1, 1]} : vector<32x16xf32> to vector<16x16xf32>
    %135 = vector.extract_strided_slice %37 {offsets = [0, 0], sizes = [16, 16], strides = [1, 1]} : vector<16x32xf32> to vector<16x16xf32>
    %cst_59 = arith.constant dense<0.000000e+00> : vector<16x16xf32>
    %136 = tpu.matmul %134, %135, %cst_59 {dimension_numbers = #tpu.dot_dimension_numbers<[1], [0], [0], [1], [0, 0, 1, 1], [], []>} : vector<16x16xf32>, vector<16x16xf32>, vector<16x16xf32> -> vector<16x16xf32>
    %137 = vector.extract_strided_slice %133 {offsets = [16, 0], sizes = [16, 16], strides = [1, 1]} : vector<32x16xf32> to vector<16x16xf32>
    %138 = vector.extract_strided_slice %37 {offsets = [0, 16], sizes = [16, 16], strides = [1, 1]} : vector<16x32xf32> to vector<16x16xf32>
    %cst_60 = arith.constant dense<0.000000e+00> : vector<16x16xf32>
    %139 = tpu.matmul %137, %138, %cst_60 {dimension_numbers = #tpu.dot_dimension_numbers<[1], [0], [0], [1], [0, 0, 1, 1], [], []>} : vector<16x16xf32>, vector<16x16xf32>, vector<16x16xf32> -> vector<16x16xf32>
    %c0_61 = arith.constant 0 : index
    %c0_62 = arith.constant 0 : index
    %140 = vector.load %arg9[%c0_61, %c0_62] : memref<1x48xf32, #tpu.memory_space<vmem>>, vector<1x48xf32>
    %141 = vector.extract_strided_slice %140 {offsets = [0, 0], sizes = [1, 16], strides = [1, 1]} : vector<1x48xf32> to vector<1x16xf32>
    %142 = vector.broadcast %141 : vector<1x16xf32> to vector<16x16xf32>
    %143 = arith.addf %136, %142 : vector<16x16xf32>
    %cst_63 = arith.constant 0.000000e+00 : f32
    %144 = vector.broadcast %cst_63 : f32 to vector<16x16xf32>
    %145 = arith.cmpf ogt, %143, %144 : vector<16x16xf32>
    %146 = math.exp %143 : vector<16x16xf32>
    %cst_64 = arith.constant 1.000000e+00 : f32
    %147 = vector.broadcast %cst_64 : f32 to vector<16x16xf32>
    %148 = arith.subf %146, %147 : vector<16x16xf32>
    %149 = arith.select %145, %143, %148 : vector<16x16xi1>, vector<16x16xf32>
    %c0_65 = arith.constant 0 : index
    %c0_66 = arith.constant 0 : index
    %150 = vector.load %arg10[%c0_65, %c0_66] : memref<48x24xf32, #tpu.memory_space<vmem>>, vector<16x24xf32>
    %cst_67 = arith.constant dense<0.000000e+00> : vector<16x24xf32>
    %151 = tpu.matmul %149, %150, %cst_67 {dimension_numbers = #tpu.dot_dimension_numbers<[1], [0], [0], [1], [0, 0, 1, 1], [], []>} : vector<16x16xf32>, vector<16x24xf32>, vector<16x24xf32> -> vector<16x24xf32>
    %152 = vector.extract_strided_slice %140 {offsets = [0, 16], sizes = [1, 8], strides = [1, 1]} : vector<1x48xf32> to vector<1x8xf32>
    %153 = vector.broadcast %152 : vector<1x8xf32> to vector<16x8xf32>
    %154 = arith.addf %1, %153 : vector<16x8xf32>
    %cst_68 = arith.constant 0.000000e+00 : f32
    %155 = vector.broadcast %cst_68 : f32 to vector<16x8xf32>
    %156 = arith.cmpf ogt, %154, %155 : vector<16x8xf32>
    %157 = math.exp %154 : vector<16x8xf32>
    %cst_69 = arith.constant 1.000000e+00 : f32
    %158 = vector.broadcast %cst_69 : f32 to vector<16x8xf32>
    %159 = arith.subf %157, %158 : vector<16x8xf32>
    %160 = arith.select %156, %154, %159 : vector<16x8xi1>, vector<16x8xf32>
    %c16 = arith.constant 16 : index
    %c0_70 = arith.constant 0 : index
    %161 = vector.load %arg10[%c16, %c0_70] : memref<48x24xf32, #tpu.memory_space<vmem>>, vector<8x24xf32>
    %cst_71 = arith.constant dense<0.000000e+00> : vector<16x24xf32>
    %162 = tpu.matmul %160, %161, %cst_71 {dimension_numbers = #tpu.dot_dimension_numbers<[1], [0], [0], [1], [0, 0, 1, 1], [], []>} : vector<16x8xf32>, vector<8x24xf32>, vector<16x24xf32> -> vector<16x24xf32>
    %163 = arith.addf %151, %162 : vector<16x24xf32>
    %164 = vector.extract_strided_slice %140 {offsets = [0, 24], sizes = [1, 16], strides = [1, 1]} : vector<1x48xf32> to vector<1x16xf32>
    %165 = vector.broadcast %164 : vector<1x16xf32> to vector<16x16xf32>
    %166 = arith.addf %139, %165 : vector<16x16xf32>
    %cst_72 = arith.constant 0.000000e+00 : f32
    %167 = vector.broadcast %cst_72 : f32 to vector<16x16xf32>
    %168 = arith.cmpf ogt, %166, %167 : vector<16x16xf32>
    %169 = math.exp %166 : vector<16x16xf32>
    %cst_73 = arith.constant 1.000000e+00 : f32
    %170 = vector.broadcast %cst_73 : f32 to vector<16x16xf32>
    %171 = arith.subf %169, %170 : vector<16x16xf32>
    %172 = arith.select %168, %166, %171 : vector<16x16xi1>, vector<16x16xf32>
    %c24 = arith.constant 24 : index
    %c0_74 = arith.constant 0 : index
    %173 = vector.load %arg10[%c24, %c0_74] : memref<48x24xf32, #tpu.memory_space<vmem>>, vector<16x24xf32>
    %cst_75 = arith.constant dense<0.000000e+00> : vector<16x24xf32>
    %174 = tpu.matmul %172, %173, %cst_75 {dimension_numbers = #tpu.dot_dimension_numbers<[1], [0], [0], [1], [0, 0, 1, 1], [], []>} : vector<16x16xf32>, vector<16x24xf32>, vector<16x24xf32> -> vector<16x24xf32>
    %175 = arith.addf %163, %174 : vector<16x24xf32>
    %176 = vector.extract_strided_slice %140 {offsets = [0, 40], sizes = [1, 8], strides = [1, 1]} : vector<1x48xf32> to vector<1x8xf32>
    %177 = vector.broadcast %176 : vector<1x8xf32> to vector<16x8xf32>
    %178 = arith.addf %1, %177 : vector<16x8xf32>
    %cst_76 = arith.constant 0.000000e+00 : f32
    %179 = vector.broadcast %cst_76 : f32 to vector<16x8xf32>
    %180 = arith.cmpf ogt, %178, %179 : vector<16x8xf32>
    %181 = math.exp %178 : vector<16x8xf32>
    %cst_77 = arith.constant 1.000000e+00 : f32
    %182 = vector.broadcast %cst_77 : f32 to vector<16x8xf32>
    %183 = arith.subf %181, %182 : vector<16x8xf32>
    %184 = arith.select %180, %178, %183 : vector<16x8xi1>, vector<16x8xf32>
    %c40 = arith.constant 40 : index
    %c0_78 = arith.constant 0 : index
    %185 = vector.load %arg10[%c40, %c0_78] : memref<48x24xf32, #tpu.memory_space<vmem>>, vector<8x24xf32>
    %cst_79 = arith.constant dense<0.000000e+00> : vector<16x24xf32>
    %186 = tpu.matmul %184, %185, %cst_79 {dimension_numbers = #tpu.dot_dimension_numbers<[1], [0], [0], [1], [0, 0, 1, 1], [], []>} : vector<16x8xf32>, vector<8x24xf32>, vector<16x24xf32> -> vector<16x24xf32>
    %187 = arith.addf %175, %186 : vector<16x24xf32>
    %c0_80 = arith.constant 0 : index
    %c0_81 = arith.constant 0 : index
    %188 = vector.load %arg11[%c0_80, %c0_81] : memref<3x24xf32, #tpu.memory_space<vmem>>, vector<3x24xf32>
    %c0_82 = arith.constant 0 : index
    %c0_83 = arith.constant 0 : index
    %189 = vector.load %arg12[%c0_82, %c0_83] : memref<24x3xf32, #tpu.memory_space<vmem>>, vector<24x3xf32>
    %190 = tpu.iota {dimensions = array<i32: 0>} : vector<48x16xi32>
    %191 = arith.sitofp %190 : vector<48x16xi32> to vector<48x16xf32>
    %192 = tpu.iota {dimensions = array<i32: 1>} : vector<48x16xi32>
    %193 = arith.sitofp %192 : vector<48x16xi32> to vector<48x16xf32>
    %cst_84 = arith.constant 1.600000e+01 : f32
    %194 = vector.broadcast %cst_84 : f32 to vector<48x16xf32>
    %195 = arith.divf %191, %194 : vector<48x16xf32>
    %196 = math.floor %195 : vector<48x16xf32>
    %cst_85 = arith.constant 1.600000e+01 : f32
    %197 = vector.broadcast %cst_85 : f32 to vector<48x16xf32>
    %198 = arith.mulf %196, %197 : vector<48x16xf32>
    %199 = arith.subf %191, %198 : vector<48x16xf32>
    %200 = arith.cmpf oeq, %199, %193 : vector<48x16xf32>
    %cst_86 = arith.constant 1.000000e+00 : f32
    %cst_87 = arith.constant 0.000000e+00 : f32
    %201 = vector.broadcast %cst_86 : f32 to vector<48x16xf32>
    %202 = vector.broadcast %cst_87 : f32 to vector<48x16xf32>
    %203 = arith.select %200, %201, %202 : vector<48x16xi1>, vector<48x16xf32>
    %204 = tpu.iota {dimensions = array<i32: 0>} : vector<16x48xi32>
    %205 = arith.sitofp %204 : vector<16x48xi32> to vector<16x48xf32>
    %206 = tpu.iota {dimensions = array<i32: 1>} : vector<16x48xi32>
    %207 = arith.sitofp %206 : vector<16x48xi32> to vector<16x48xf32>
    %cst_88 = arith.constant 1.600000e+01 : f32
    %208 = vector.broadcast %cst_88 : f32 to vector<16x48xf32>
    %209 = arith.divf %207, %208 : vector<16x48xf32>
    %210 = math.floor %209 : vector<16x48xf32>
    %cst_89 = arith.constant 1.600000e+01 : f32
    %211 = vector.broadcast %cst_89 : f32 to vector<16x48xf32>
    %212 = arith.mulf %210, %211 : vector<16x48xf32>
    %213 = arith.subf %207, %212 : vector<16x48xf32>
    %214 = arith.cmpf oeq, %213, %205 : vector<16x48xf32>
    %cst_90 = arith.constant 1.000000e+00 : f32
    %cst_91 = arith.constant 0.000000e+00 : f32
    %215 = vector.broadcast %cst_90 : f32 to vector<16x48xf32>
    %216 = vector.broadcast %cst_91 : f32 to vector<16x48xf32>
    %217 = arith.select %214, %215, %216 : vector<16x48xi1>, vector<16x48xf32>
    %218 = tpu.iota {dimensions = array<i32: 0>} : vector<48x3xi32>
    %219 = arith.sitofp %218 : vector<48x3xi32> to vector<48x3xf32>
    %220 = tpu.iota {dimensions = array<i32: 1>} : vector<48x3xi32>
    %221 = arith.sitofp %220 : vector<48x3xi32> to vector<48x3xf32>
    %cst_92 = arith.constant 1.600000e+01 : f32
    %222 = vector.broadcast %cst_92 : f32 to vector<48x3xf32>
    %223 = arith.divf %219, %222 : vector<48x3xf32>
    %224 = math.floor %223 : vector<48x3xf32>
    %225 = arith.cmpf oeq, %224, %221 : vector<48x3xf32>
    %cst_93 = arith.constant 1.000000e+00 : f32
    %cst_94 = arith.constant 0.000000e+00 : f32
    %226 = vector.broadcast %cst_93 : f32 to vector<48x3xf32>
    %227 = vector.broadcast %cst_94 : f32 to vector<48x3xf32>
    %228 = arith.select %225, %226, %227 : vector<48x3xi1>, vector<48x3xf32>
    %cst_95 = arith.constant dense<0.000000e+00> : vector<3x16xf32>
    %229 = tpu.matmul %188, %187, %cst_95 {dimension_numbers = #tpu.dot_dimension_numbers<[1], [1], [0], [0], [0, 0, 1, 0], [], []>} : vector<3x24xf32>, vector<16x24xf32>, vector<3x16xf32> -> vector<3x16xf32>
    %cst_96 = arith.constant dense<0.000000e+00> : vector<48x16xf32>
    %230 = tpu.matmul %228, %229, %cst_96 {dimension_numbers = #tpu.dot_dimension_numbers<[1], [0], [0], [1], [0, 0, 1, 1], [], []>} : vector<48x3xf32>, vector<3x16xf32>, vector<48x16xf32> -> vector<48x16xf32>
    %cst_97 = arith.constant dense<0.000000e+00> : vector<16x3xf32>
    %231 = tpu.matmul %187, %189, %cst_97 {dimension_numbers = #tpu.dot_dimension_numbers<[1], [0], [0], [1], [0, 0, 1, 1], [], []>} : vector<16x24xf32>, vector<24x3xf32>, vector<16x3xf32> -> vector<16x3xf32>
    %cst_98 = arith.constant dense<0.000000e+00> : vector<48x3xf32>
    %232 = tpu.matmul %203, %231, %cst_98 {dimension_numbers = #tpu.dot_dimension_numbers<[1], [0], [0], [1], [0, 0, 1, 1], [], []>} : vector<48x16xf32>, vector<16x3xf32>, vector<48x3xf32> -> vector<48x3xf32>
    %233 = arith.mulf %232, %228 : vector<48x3xf32>
    %cst_99 = arith.constant dense<0.000000e+00> : vector<48xf32>
    %234 = vector.multi_reduction <add>, %233, %cst_99 [1] : vector<48x3xf32> to vector<48xf32>
    %235 = vector.shape_cast %234 : vector<48xf32> to vector<48x1xf32>
    %236 = vector.broadcast %235 : vector<48x1xf32> to vector<48x16xf32>
    %237 = arith.addf %230, %236 : vector<48x16xf32>
    %cst_100 = arith.constant 0.000000e+00 : f32
    %238 = vector.broadcast %cst_100 : f32 to vector<48x16xf32>
    %239 = arith.cmpf oge, %237, %238 : vector<48x16xf32>
    %cst_101 = arith.constant 2.000000e-01 : f32
    %240 = vector.broadcast %cst_101 : f32 to vector<48x16xf32>
    %241 = arith.mulf %240, %237 : vector<48x16xf32>
    %242 = arith.select %239, %237, %241 : vector<48x16xi1>, vector<48x16xf32>
    %cst_102 = arith.constant dense<0.000000e+00> : vector<48x16xf32>
    %243 = tpu.matmul %203, %2, %cst_102 {dimension_numbers = #tpu.dot_dimension_numbers<[1], [0], [0], [1], [0, 0, 1, 1], [], []>} : vector<48x16xf32>, vector<16x16xf32>, vector<48x16xf32> -> vector<48x16xf32>
    %cst_103 = arith.constant 5.000000e-01 : f32
    %244 = vector.broadcast %cst_103 : f32 to vector<48x16xf32>
    %245 = arith.cmpf ogt, %243, %244 : vector<48x16xf32>
    %cst_104 = arith.constant -1.000000e+30 : f32
    %246 = vector.broadcast %cst_104 : f32 to vector<48x16xf32>
    %247 = arith.select %245, %242, %246 : vector<48x16xi1>, vector<48x16xf32>
    %cst_105 = arith.constant dense<0xFF800000> : vector<48xf32>
    %248 = vector.multi_reduction <maximumf>, %247, %cst_105 [1] : vector<48x16xf32> to vector<48xf32>
    %249 = vector.shape_cast %248 : vector<48xf32> to vector<48x1xf32>
    %250 = vector.broadcast %249 : vector<48x1xf32> to vector<48x16xf32>
    %251 = arith.subf %247, %250 : vector<48x16xf32>
    %252 = math.exp %251 : vector<48x16xf32>
    %cst_106 = arith.constant 0.000000e+00 : f32
    %253 = vector.broadcast %cst_106 : f32 to vector<48x16xf32>
    %254 = arith.select %245, %252, %253 : vector<48x16xi1>, vector<48x16xf32>
    %cst_107 = arith.constant dense<0.000000e+00> : vector<48xf32>
    %255 = vector.multi_reduction <add>, %254, %cst_107 [1] : vector<48x16xf32> to vector<48xf32>
    %256 = vector.shape_cast %255 : vector<48xf32> to vector<48x1xf32>
    %cst_108 = arith.constant 1.000000e-16 : f32
    %257 = vector.broadcast %cst_108 : f32 to vector<48x1xf32>
    %258 = arith.addf %256, %257 : vector<48x1xf32>
    %259 = vector.broadcast %258 : vector<48x1xf32> to vector<48x16xf32>
    %260 = arith.divf %254, %259 : vector<48x16xf32>
    %cst_109 = arith.constant dense<0.000000e+00> : vector<16x16xf32>
    %261 = tpu.matmul %217, %260, %cst_109 {dimension_numbers = #tpu.dot_dimension_numbers<[1], [0], [0], [1], [0, 0, 1, 1], [], []>} : vector<16x48xf32>, vector<48x16xf32>, vector<16x16xf32> -> vector<16x16xf32>
    %cst_110 = arith.constant 2.000000e+00 : f32
    %262 = vector.broadcast %cst_110 : f32 to vector<16x16xf32>
    %263 = arith.mulf %262, %261 : vector<16x16xf32>
    %cst_111 = arith.constant -1.000000e+30 : f32
    %264 = vector.broadcast %cst_111 : f32 to vector<16x16xf32>
    %265 = arith.select %5, %263, %264 : vector<16x16xi1>, vector<16x16xf32>
    %cst_112 = arith.constant dense<0.000000e+00> : vector<16x256xf32>
    %266 = tpu.matmul %265, %19, %cst_112 {dimension_numbers = #tpu.dot_dimension_numbers<[1], [0], [0], [1], [0, 0, 1, 1], [], []>} : vector<16x16xf32>, vector<16x256xf32>, vector<16x256xf32> -> vector<16x256xf32>
    %cst_113 = arith.constant dense<0.000000e+00> : vector<16x256xf32>
    %267 = tpu.matmul %265, %23, %cst_113 {dimension_numbers = #tpu.dot_dimension_numbers<[1], [0], [0], [1], [0, 0, 1, 1], [], []>} : vector<16x16xf32>, vector<16x256xf32>, vector<16x256xf32> -> vector<16x256xf32>
    %268 = arith.cmpf ogt, %266, %267 : vector<16x256xf32>
    %269 = arith.cmpf oeq, %266, %267 : vector<16x256xf32>
    %270 = arith.andi %269, %24 : vector<16x256xi1>
    %271 = arith.ori %268, %270 : vector<16x256xi1>
    %cst_114 = arith.constant 1.000000e+00 : f32
    %cst_115 = arith.constant 0.000000e+00 : f32
    %272 = vector.broadcast %cst_114 : f32 to vector<16x256xf32>
    %273 = vector.broadcast %cst_115 : f32 to vector<16x256xf32>
    %274 = arith.select %271, %272, %273 : vector<16x256xi1>, vector<16x256xf32>
    %cst_116 = arith.constant dense<0.000000e+00> : vector<16x16xf32>
    %275 = tpu.matmul %274, %35, %cst_116 {dimension_numbers = #tpu.dot_dimension_numbers<[1], [0], [0], [1], [0, 0, 1, 1], [], []>} : vector<16x256xf32>, vector<256x16xf32>, vector<16x16xf32> -> vector<16x16xf32>
    %276 = vector.broadcast %3 : vector<16x1xf32> to vector<16x16xf32>
    %277 = arith.cmpf olt, %275, %276 : vector<16x16xf32>
    %278 = arith.andi %277, %5 : vector<16x16xi1>
    %cst_117 = arith.constant 1.000000e+00 : f32
    %cst_118 = arith.constant 0.000000e+00 : f32
    %279 = vector.broadcast %cst_117 : f32 to vector<16x16xf32>
    %280 = vector.broadcast %cst_118 : f32 to vector<16x16xf32>
    %281 = arith.select %278, %279, %280 : vector<16x16xi1>, vector<16x16xf32>
    %cst_119 = arith.constant dense<0.000000e+00> : vector<48x16xf32>
    %282 = tpu.matmul %203, %281, %cst_119 {dimension_numbers = #tpu.dot_dimension_numbers<[1], [0], [0], [1], [0, 0, 1, 1], [], []>} : vector<48x16xf32>, vector<16x16xf32>, vector<48x16xf32> -> vector<48x16xf32>
    %283 = arith.mulf %260, %282 : vector<48x16xf32>
    %284 = vector.extract_strided_slice %283 {offsets = [0, 0], sizes = [16, 16], strides = [1, 1]} : vector<48x16xf32> to vector<16x16xf32>
    %285 = vector.extract_strided_slice %187 {offsets = [0, 0], sizes = [16, 8], strides = [1, 1]} : vector<16x24xf32> to vector<16x8xf32>
    %cst_120 = arith.constant dense<0.000000e+00> : vector<16x8xf32>
    %286 = tpu.matmul %284, %285, %cst_120 {dimension_numbers = #tpu.dot_dimension_numbers<[1], [0], [0], [1], [0, 0, 1, 1], [], []>} : vector<16x16xf32>, vector<16x8xf32>, vector<16x8xf32> -> vector<16x8xf32>
    %287 = vector.extract_strided_slice %283 {offsets = [16, 0], sizes = [16, 16], strides = [1, 1]} : vector<48x16xf32> to vector<16x16xf32>
    %288 = vector.extract_strided_slice %187 {offsets = [0, 8], sizes = [16, 8], strides = [1, 1]} : vector<16x24xf32> to vector<16x8xf32>
    %cst_121 = arith.constant dense<0.000000e+00> : vector<16x8xf32>
    %289 = tpu.matmul %287, %288, %cst_121 {dimension_numbers = #tpu.dot_dimension_numbers<[1], [0], [0], [1], [0, 0, 1, 1], [], []>} : vector<16x16xf32>, vector<16x8xf32>, vector<16x8xf32> -> vector<16x8xf32>
    %290 = vector.extract_strided_slice %283 {offsets = [32, 0], sizes = [16, 16], strides = [1, 1]} : vector<48x16xf32> to vector<16x16xf32>
    %291 = vector.extract_strided_slice %187 {offsets = [0, 16], sizes = [16, 8], strides = [1, 1]} : vector<16x24xf32> to vector<16x8xf32>
    %cst_122 = arith.constant dense<0.000000e+00> : vector<16x8xf32>
    %292 = tpu.matmul %290, %291, %cst_122 {dimension_numbers = #tpu.dot_dimension_numbers<[1], [0], [0], [1], [0, 0, 1, 1], [], []>} : vector<16x16xf32>, vector<16x8xf32>, vector<16x8xf32> -> vector<16x8xf32>
    %293 = arith.addf %286, %289 : vector<16x8xf32>
    %294 = arith.addf %293, %292 : vector<16x8xf32>
    %cst_123 = arith.constant 0.333333343 : f32
    %295 = vector.broadcast %cst_123 : f32 to vector<16x8xf32>
    %296 = arith.mulf %294, %295 : vector<16x8xf32>
    %c0_124 = arith.constant 0 : index
    %c0_125 = arith.constant 0 : index
    %297 = vector.load %arg13[%c0_124, %c0_125] : memref<1x8xf32, #tpu.memory_space<vmem>>, vector<1x8xf32>
    %298 = vector.broadcast %297 : vector<1x8xf32> to vector<16x8xf32>
    %299 = arith.addf %296, %298 : vector<16x8xf32>
    %cst_126 = arith.constant 0.000000e+00 : f32
    %300 = vector.broadcast %cst_126 : f32 to vector<16x8xf32>
    %301 = arith.cmpf ogt, %299, %300 : vector<16x8xf32>
    %302 = math.exp %299 : vector<16x8xf32>
    %cst_127 = arith.constant 1.000000e+00 : f32
    %303 = vector.broadcast %cst_127 : f32 to vector<16x8xf32>
    %304 = arith.subf %302, %303 : vector<16x8xf32>
    %305 = arith.select %301, %299, %304 : vector<16x8xi1>, vector<16x8xf32>
    %306 = tpu.iota {dimensions = array<i32: 1>} : vector<32x16xi32>
    %c0_128 = arith.constant 0 : index
    %c0_129 = arith.constant 0 : index
    %307 = vector.load %arg4[%c0_128, %c0_129] : memref<32x1xi32, #tpu.memory_space<vmem>>, vector<32x1xi32>
    %308 = vector.broadcast %307 : vector<32x1xi32> to vector<32x16xi32>
    %309 = arith.cmpi eq, %306, %308 : vector<32x16xi32>
    %cst_130 = arith.constant 1.000000e+00 : f32
    %cst_131 = arith.constant 0.000000e+00 : f32
    %310 = vector.broadcast %cst_130 : f32 to vector<32x16xf32>
    %311 = vector.broadcast %cst_131 : f32 to vector<32x16xf32>
    %312 = arith.select %309, %310, %311 : vector<32x16xi1>, vector<32x16xf32>
    %c0_132 = arith.constant 0 : index
    %c0_133 = arith.constant 0 : index
    %313 = vector.load %arg5[%c0_132, %c0_133] : memref<32x1xi32, #tpu.memory_space<vmem>>, vector<32x1xi32>
    %314 = vector.broadcast %313 : vector<32x1xi32> to vector<32x16xi32>
    %315 = arith.cmpi eq, %306, %314 : vector<32x16xi32>
    %cst_134 = arith.constant 1.000000e+00 : f32
    %cst_135 = arith.constant 0.000000e+00 : f32
    %316 = vector.broadcast %cst_134 : f32 to vector<32x16xf32>
    %317 = vector.broadcast %cst_135 : f32 to vector<32x16xf32>
    %318 = arith.select %315, %316, %317 : vector<32x16xi1>, vector<32x16xf32>
    %cst_136 = arith.constant dense<0.000000e+00> : vector<32x8xf32>
    %319 = tpu.matmul %312, %305, %cst_136 {dimension_numbers = #tpu.dot_dimension_numbers<[1], [0], [0], [1], [0, 0, 1, 1], [], []>} : vector<32x16xf32>, vector<16x8xf32>, vector<32x8xf32> -> vector<32x8xf32>
    %cst_137 = arith.constant dense<0.000000e+00> : vector<32x8xf32>
    %320 = tpu.matmul %318, %305, %cst_137 {dimension_numbers = #tpu.dot_dimension_numbers<[1], [0], [0], [1], [0, 0, 1, 1], [], []>} : vector<32x16xf32>, vector<16x8xf32>, vector<32x8xf32> -> vector<32x8xf32>
    %321 = arith.addf %319, %320 : vector<32x8xf32>
    %c0_138 = arith.constant 0 : index
    %c0_139 = arith.constant 0 : index
    %322 = vector.load %arg14[%c0_138, %c0_139] : memref<32x32xf32, #tpu.memory_space<vmem>>, vector<8x32xf32>
    %cst_140 = arith.constant dense<0.000000e+00> : vector<32x32xf32>
    %323 = tpu.matmul %321, %322, %cst_140 {dimension_numbers = #tpu.dot_dimension_numbers<[1], [0], [0], [1], [0, 0, 1, 1], [], []>} : vector<32x8xf32>, vector<8x32xf32>, vector<32x32xf32> -> vector<32x32xf32>
    %324 = arith.mulf %319, %320 : vector<32x8xf32>
    %c8 = arith.constant 8 : index
    %c0_141 = arith.constant 0 : index
    %325 = vector.load %arg14[%c8, %c0_141] : memref<32x32xf32, #tpu.memory_space<vmem>>, vector<8x32xf32>
    %cst_142 = arith.constant dense<0.000000e+00> : vector<32x32xf32>
    %326 = tpu.matmul %324, %325, %cst_142 {dimension_numbers = #tpu.dot_dimension_numbers<[1], [0], [0], [1], [0, 0, 1, 1], [], []>} : vector<32x8xf32>, vector<8x32xf32>, vector<32x32xf32> -> vector<32x32xf32>
    %327 = arith.addf %323, %326 : vector<32x32xf32>
    %c16_143 = arith.constant 16 : index
    %c0_144 = arith.constant 0 : index
    %328 = vector.load %arg14[%c16_143, %c0_144] : memref<32x32xf32, #tpu.memory_space<vmem>>, vector<8x32xf32>
    %cst_145 = arith.constant dense<0.000000e+00> : vector<32x32xf32>
    %329 = tpu.matmul %319, %328, %cst_145 {dimension_numbers = #tpu.dot_dimension_numbers<[1], [0], [0], [1], [0, 0, 1, 1], [], []>} : vector<32x8xf32>, vector<8x32xf32>, vector<32x32xf32> -> vector<32x32xf32>
    %330 = arith.addf %327, %329 : vector<32x32xf32>
    %c24_146 = arith.constant 24 : index
    %c0_147 = arith.constant 0 : index
    %331 = vector.load %arg14[%c24_146, %c0_147] : memref<32x32xf32, #tpu.memory_space<vmem>>, vector<8x32xf32>
    %cst_148 = arith.constant dense<0.000000e+00> : vector<32x32xf32>
    %332 = tpu.matmul %320, %331, %cst_148 {dimension_numbers = #tpu.dot_dimension_numbers<[1], [0], [0], [1], [0, 0, 1, 1], [], []>} : vector<32x8xf32>, vector<8x32xf32>, vector<32x32xf32> -> vector<32x32xf32>
    %333 = arith.addf %330, %332 : vector<32x32xf32>
    %c0_149 = arith.constant 0 : index
    %c0_150 = arith.constant 0 : index
    %334 = vector.load %arg15[%c0_149, %c0_150] : memref<1x32xf32, #tpu.memory_space<vmem>>, vector<1x32xf32>
    %335 = vector.broadcast %334 : vector<1x32xf32> to vector<32x32xf32>
    %336 = arith.addf %333, %335 : vector<32x32xf32>
    %cst_151 = arith.constant 0.000000e+00 : f32
    %337 = vector.broadcast %cst_151 : f32 to vector<32x32xf32>
    %338 = arith.maximumf %336, %337 : vector<32x32xf32>
    %c0_152 = arith.constant 0 : index
    %c0_153 = arith.constant 0 : index
    %339 = vector.load %arg16[%c0_152, %c0_153] : memref<32x16xf32, #tpu.memory_space<vmem>>, vector<32x16xf32>
    %cst_154 = arith.constant dense<0.000000e+00> : vector<32x16xf32>
    %340 = tpu.matmul %338, %339, %cst_154 {dimension_numbers = #tpu.dot_dimension_numbers<[1], [0], [0], [1], [0, 0, 1, 1], [], []>} : vector<32x32xf32>, vector<32x16xf32>, vector<32x16xf32> -> vector<32x16xf32>
    %c0_155 = arith.constant 0 : index
    %c0_156 = arith.constant 0 : index
    %341 = vector.load %arg17[%c0_155, %c0_156] : memref<1x16xf32, #tpu.memory_space<vmem>>, vector<1x16xf32>
    %342 = vector.broadcast %341 : vector<1x16xf32> to vector<32x16xf32>
    %343 = arith.addf %340, %342 : vector<32x16xf32>
    %cst_157 = arith.constant 0.000000e+00 : f32
    %344 = vector.broadcast %cst_157 : f32 to vector<32x16xf32>
    %345 = arith.maximumf %343, %344 : vector<32x16xf32>
    %c0_158 = arith.constant 0 : index
    %c0_159 = arith.constant 0 : index
    %346 = vector.load %arg18[%c0_158, %c0_159] : memref<1x16xf32, #tpu.memory_space<vmem>>, vector<1x16xf32>
    %cst_160 = arith.constant dense<0.000000e+00> : vector<1x32xf32>
    %347 = tpu.matmul %346, %345, %cst_160 {dimension_numbers = #tpu.dot_dimension_numbers<[1], [1], [0], [0], [0, 0, 1, 0], [], []>} : vector<1x16xf32>, vector<32x16xf32>, vector<1x32xf32> -> vector<1x32xf32>
    %c0_161 = arith.constant 0 : index
    %c0_162 = arith.constant 0 : index
    %348 = vector.load %arg19[%c0_161, %c0_162] : memref<1x1xf32, #tpu.memory_space<vmem>>, vector<1x1xf32>
    %349 = vector.broadcast %348 : vector<1x1xf32> to vector<1x32xf32>
    %350 = arith.addf %347, %349 : vector<1x32xf32>
    %cst_163 = arith.constant 5.000000e-01 : f32
    %351 = vector.broadcast %cst_163 : f32 to vector<1x32xf32>
    %352 = arith.mulf %351, %350 : vector<1x32xf32>
    %353 = math.tanh %352 : vector<1x32xf32>
    %cst_164 = arith.constant 1.000000e+00 : f32
    %354 = vector.broadcast %cst_164 : f32 to vector<1x32xf32>
    %355 = arith.addf %353, %354 : vector<1x32xf32>
    %cst_165 = arith.constant 5.000000e-01 : f32
    %356 = vector.broadcast %cst_165 : f32 to vector<1x32xf32>
    %357 = arith.mulf %356, %355 : vector<1x32xf32>
    %c0_166 = arith.constant 0 : index
    %c0_167 = arith.constant 0 : index
    %358 = vector.load %arg20[%c0_166, %c0_167] : memref<1x32xf32, #tpu.memory_space<vmem>>, vector<1x32xf32>
    tpu.vector_store %arg20[%c0_166, %c0_167], %357 {strides = array<i32>} : memref<1x32xf32, #tpu.memory_space<vmem>>, vector<1x32xf32>,
    return
  }
}

</mosaic_0001>

<bundles_post_ra>
// kernel: fwd.1
= control target key start
LH: loop header
LB: loop body
LE: loop exit
PB: predicated region body
PF: predicated region fallthrough
CT: control target
= control target key end

     0   :  { %s4181_s0 = inlined_call_operand.vmem [shape: f32[16,8], index: 0, kind: input, shape index: {}]   ;;  %s4182_s1 = inlined_call_operand.vmem [shape: f32[16,8], index: 1, kind: input, shape index: {}]   ;;  %s4183_s2 = inlined_call_operand.vmem [shape: f32[16,16], index: 2, kind: input, shape index: {}]   ;;  %s4184_s3 = inlined_call_operand.vmem [shape: f32[16,1], index: 3, kind: input, shape index: {}]   ;;  %s4185_s4 = inlined_call_operand.vmem [shape: s32[32,1], index: 4, kind: input, shape index: {}]   ;;  %s4186_s5 = inlined_call_operand.vmem [shape: s32[32,1], index: 5, kind: input, shape index: {}]   ;;  %s4187_s6 = inlined_call_operand.vmem [shape: f32[8,32], index: 6, kind: input, shape index: {}]   ;;  %s4188_s7 = inlined_call_operand.vmem [shape: f32[2,32], index: 7, kind: input, shape index: {}]   ;;  %s4189_s8 = inlined_call_operand.vmem [shape: f32[32,2], index: 8, kind: input, shape index: {}]   ;;  %s4190_s9 = inlined_call_operand.vmem [shape: f32[1,48], index: 9, kind: input, shape index: {}]   ;;  %s4191_s10 = inlined_call_operand.vmem [shape: f32[48,24], index: 10, kind: input, shape index: {}]   ;;  %s4192_s11 = inlined_call_operand.vmem [shape: f32[3,24], index: 11, kind: input, shape index: {}]   ;;  %s4193_s12 = inlined_call_operand.vmem [shape: f32[24,3], index: 12, kind: input, shape index: {}]   ;;  %s4194_s13 = inlined_call_operand.vmem [shape: f32[1,8], index: 13, kind: input, shape index: {}]   ;;  %s4195_s14 = inlined_call_operand.vmem [shape: f32[32,32], index: 14, kind: input, shape index: {}]   ;;  %s4196_s15 = inlined_call_operand.vmem [shape: f32[1,32], index: 15, kind: input, shape index: {}]   ;;  %s4197_s16 = inlined_call_operand.vmem [shape: f32[32,16], index: 16, kind: input, shape index: {}]   ;;  %s4198_s17 = inlined_call_operand.vmem [shape: f32[1,16], index: 17, kind: input, shape index: {}]   ;;  %s4199_s18 = inlined_call_operand.vmem [shape: f32[1,16], index: 18, kind: input, shape index: {}]   ;;  %s4200_s19 = inlined_call_operand.<no memory space> [shape: f32[1,1], index: 19, kind: input, shape index: {}]   ;;  %s4201_s20 = inlined_call_operand.hbm [shape: f32[1,32], index: 20, kind: output, shape index: {}]  }
   0x1   :  { %4272 = sst [smem:[#allocation17_spill]] %s4181_s0  ;;  %v25_v0 = vstv %s4200_s19 }
   0x2   :  { %4273 = sst [smem:[#allocation18_spill]] %s4182_s1  ;;  %26 = vst [vmem:[#allocation2] sm:$0x1] %v25_v0 }
   0x3   :  { %4274 = sst [smem:[#allocation19_spill]] %s4183_s2 }
   0x4   :  { %4275 = sst [smem:[#allocation20_spill]] %s4184_s3 }
   0x5   :  { %4276 = sst [smem:[#allocation21_spill]] %s4185_s4 }
   0x6   :  { %v309_v1 = vld [vmem:[%s4187_s6] sm:$0xff]  ;;  %s4277_s3 = sld [smem:[#allocation17_spill]]  ;;  %vm4209_vm0 = vcmask 64512   ;;  %v344_v3 = vld [vmem:[%s4189_s8 + $0x18] sm:$0xff]  ;;  %v343_v4 = vld [vmem:[%s4189_s8 + $0x10] sm:$0xff] }
   0x7   :  { %332 = vmatpush.msra.mxu0 %v309_v1  ;;  %403 = vmatpush.msra.mxu2 %v344_v3  ;;  %v342_v5 = vld [vmem:[%s4189_s8 + $0x8] sm:$0xff] }
   0xc   :  { %v68_v2 = vld [vmem:[%s4277_s3] sm:$0xff] }
   0xd   :  { %2375 = vmatmul.msk.f32.vlgmr.msra.gmra.mxu0 %vm4209_vm0, %v68_v2 }
   0xe   :  { %27 = vsyncpa [#allocation4], 0  ;;  %404 = vmatpush.msra.mxu2 %v343_v4  ;;  %v69_v6 = vld [vmem:[%s4277_s3 + $0x8] sm:$0xff]  ;;  %v341_v7 = vld [vmem:[%s4189_s8] sm:$0xff]  ;;  %v2725_v8 = vmov 16.0   ;;  %v78_v12 = vlaneseq  ;;  %vm4210_vm2 = vcmask 261120  }
   0xf   :  { %2633 = vrcp.f32 %v2725_v8  ;;  %s4279_s22 = sld [smem:[#allocation19_spill]]  ;;  %v340_v31 = vld [vmem:[%s4188_s7] sm:$0x3]  ;;  %v4224_v35 = vmov 1.0   ;;  %v4222_v36 = vmov 0.0   ;;  %vm4216_vm6 = vcmask 130048  }
  0x10   :  { %405 = vmatpush.msra.mxu2 %v342_v5  ;;  %v2865_v14 = vshrl.u32 %v78_v12, 7  ;;  %v2867_v15 = vand.u32 127, %v78_v12  ;;  %v4280_v58 = vmov 0  ;;  %vm485_vm11 = vcmask 1041408   ;;  %s2728_s7 = smov 112   ;;  %s4364_s27 = sld [smem:[#allocation20_spill]] }
  0x11   :  { %vm460_vm12 = vcmask 15360   ;;  %v4282_v62 = vmov 0  ;;  %v4284_v0 = vmov 0  ;;  %v4286_v2 = vmov 0  ;;  %s2730_s6 = smov 104   ;;  %s2731_s30 = smov 88  }
  0x12   :  { %406 = vmatpush.msra.mxu2 %v341_v7  ;;  %4278 = vst [vmem:[#allocation6_spill] sm:$0xff] %v2867_v15  ;;  %v2870_v17 = vcvt.s32.f32 %v2865_v14  ;;  %v2873_v18 = vadd.s32 128, %v2867_v15  ;;  %v80_v24 = vadd.s32 8, %v2865_v14  ;;  %v2915_v33 = vcvt.s32.f32 %v2867_v15  ;;  %s4377_s21 = sld [smem:[#allocation18_spill]]  ;;  %s2732_s19 = smov 120  }
  0x13   :  { %v121_v41 = vadd.s32 16, %v2865_v14  ;;  %v122_v48 = vadd.s32 24, %v2865_v14  ;;  %v127_v15 = vadd.s32 64, %v2865_v14  ;;  %s4432_s4 = sld [smem:[#allocation21_spill]]  ;;  %s2366_s8 = sshll.u32 %s4201_s20, 4  ;;  %s2367_s8 = int_to_ptr.hbm [resolvable:$true] %s2366_s8 }
  0x14   :  { %v87_v22 = vcvt.s32.f32 %v2873_v18  ;;  %v2899_v29 = vcvt.s32.f32 %v80_v24 }
  0x15   :  { %2376 = vmatmul.msk.f32.gmra.mxu0 %vm4209_vm0, %v69_v6  ;;  %v2634_v9 = vpop.eup %2633  ;;  %v2897_v28 = vld [vmem:[%s4279_s22 + $0x8] sm:$0xff]  ;;  %v2912_v32 = vld [vmem:[%s4279_s22] sm:$0xff]  ;;  %v151_v43 = vcvt.s32.f32 %v121_v41  ;;  %v152_v50 = vcvt.s32.f32 %v122_v48 }
  0x16   :  { %v89_v10 = vmul.f32 16.0, %v2634_v9  ;;  %vm93_vm1 = vweird.f32 %v2634_v9 }
  0x18   :  { %v90_v11 = vsub.f32 1.0, %v89_v10 }
  0x1a   :  { %v91_v13 = vmul.f32 %v2634_v9, %v90_v11 }
  0x1c   :  { %v92_v16 = vadd.f32 %v2634_v9, %v91_v13 }
  0x1e   :  { %v2875_v19 = vsel %vm93_vm1, %v2634_v9, %v92_v16 }
  0x1f   :  { %v181_v21 = vmul.f32 %v2875_v19, %v2870_v17  ;;  %v96_v25 = vmul.f32 %v2875_v19, %v87_v22  ;;  %v182_v38 = vmul.f32 %v2875_v19, %v2899_v29  ;;  %v183_v44 = vmul.f32 %v151_v43, %v2875_v19 }
  0x20   :  { %v184_v51 = vmul.f32 %v152_v50, %v2875_v19 }
  0x21   :  { %v213_v23 = vfloor.f32 %v181_v21  ;;  %v2901_v30 = vfloor.f32 %v96_v25  ;;  %v214_v39 = vfloor.f32 %v182_v38  ;;  %v215_v46 = vfloor.f32 %v183_v44 }
  0x22   :  { %v216_v53 = vfloor.f32 %v184_v51 }
  0x23   :  { %v345_v27 = vmul.f32 16.0, %v213_v23  ;;  %vm4208_vm3 = vcmp.eq.f32.partialorder %v2901_v30, %v2899_v29  ;;  %vm4207_vm4 = vcmp.eq.f32.partialorder %v2901_v30, %v2870_v17  ;;  %v346_v40 = vmul.f32 16.0, %v214_v39 }
  0x24   :  { %v347_v47 = vmul.f32 16.0, %v215_v46  ;;  %v348_v54 = vmul.f32 16.0, %v216_v53  ;;  %vm2964_vm10 = vcmp.eq.f32.partialorder %v213_v23, %v2915_v33  ;;  %vm2986_vm13 = vcmp.eq.f32.partialorder %v214_v39, %v2915_v33 }
  0x25   :  { %v349_v34 = vsub.f32 %v2870_v17, %v345_v27  ;;  %v350_v42 = vsub.f32 %v2899_v29, %v346_v40  ;;  %v4281_v58 = vsel %vm2964_vm10, 4294967295, %v4280_v58  ;;  %v2973_v60 = vsel %vm2964_vm10, 1.0, %v4222_v36 }
  0x26   :  { %v351_v49 = vsub.f32 %v151_v43, %v347_v47  ;;  %v352_v56 = vsub.f32 %v152_v50, %v348_v54  ;;  %v4283_v62 = vsel %vm2986_vm13, 4294967295, %v4282_v62  ;;  %v2993_v63 = vsel %vm2986_vm13, 1.0, %v4222_v36 }
  0x27   :  { %vm353_vm5 = vcmp.eq.f32.partialorder %v349_v34, %v2915_v33  ;;  %vm354_vm7 = vcmp.eq.f32.partialorder %v350_v42, %v2915_v33  ;;  %vm2998_vm14 = vcmp.eq.f32.partialorder %v215_v46, %v2915_v33  ;;  %vm3010_vm15 = vcmp.eq.f32.partialorder %v216_v53, %v2915_v33 }
  0x28   :  { %v2934_v37 = vsel %vm353_vm5, 1.0, %v4222_v36  ;;  %v2947_v45 = vsel %vm354_vm7, 1.0, %v4222_v36  ;;  %vm355_vm8 = vcmp.eq.f32.partialorder %v351_v49, %v2915_v33  ;;  %vm356_vm9 = vcmp.eq.f32.partialorder %v352_v56, %v2915_v33 }
  0x29   :  { %v2955_v52 = vsel %vm355_vm8, 1.0, %v4222_v36  ;;  %v2961_v57 = vsel %vm356_vm9, 1.0, %v4222_v36  ;;  %v4285_v0 = vsel %vm2998_vm14, 4294967295, %v4284_v0  ;;  %v3005_v1 = vsel %vm2998_vm14, 1.0, %v4222_v36 }
  0x2a   :  { %v4287_v2 = vsel %vm3010_vm15, 4294967295, %v4286_v2  ;;  %v3017_v3 = vsel %vm3010_vm15, 1.0, %v4222_v36 }
  0x8a   :  { %v2877_v20 = vpop.f32.mrf.mxu0 }
  0x8b   :  { %2380 = vmatmul.msk.f32.vlgmr.msra.gmra.mxu2 %vm4210_vm2, %v2877_v20 }
  0x92   :  { %v2888_v26 = vpop.f32.mrf.mxu0 }
  0x93   :  { %2377 = vmatpush.xpose.msk.msrb.mxu0 %vm4210_vm2, %v2888_v26  ;;  %2381 = vmatmul.msk.f32.gmra.mxu2 %vm4210_vm2, %v2888_v26 }
  0x97   :  { %2378 = vmatpush.xpose.msk.msrb.mxu0 %vm4210_vm2, %v2877_v20 }
  0x9a   :  { %2379 = vmatmul.msk.f32.vlgmr.msrb.gmra.mxu0 %vm4210_vm2, %v340_v31 }
  0x9b   :  { %544 = vmatpush.msra.mxu0 %v2897_v28 }
  0x9d   :  { %545 = vmatpush.msra.mxu0 %v2912_v32 }
  0x9f   :  { %2409 = vmatpush.msk.msrb.mxu0 %vm4208_vm3, %v4224_v35 }
  0xa1   :  { %2410 = vmatpush.msk.msrb.mxu0 %vm4207_vm4, %v4224_v35 }
  0xa2   :  { %2391 = vmatmul.msk.f32.vlgmr.msra.gmra.mxu0 %vm4216_vm6, %v2934_v37 }
  0xa3   :  { %941 = vmatpush.msra.mxu0 %v2888_v26 }
  0xa5   :  { %942 = vmatpush.msra.mxu0 %v2877_v20 }
  0xaa   :  { %2392 = vmatmul.msk.f32.gmra.mxu0 %vm4216_vm6, %v2947_v45 }
  0xb2   :  { %2393 = vmatmul.msk.f32.gmra.mxu0 %vm4216_vm6, %v2955_v52 }
  0xba   :  { %2394 = vmatmul.msk.f32.gmra.mxu0 %vm4216_vm6, %v2961_v57 }
 0x10e   :  { %v408_v55 = vpop.f32.mrf.mxu2 }
 0x116   :  { %v411_v59 = vpop.f32.mrf.mxu2 }
 0x117   :  { %441 = vmatpush.msra.mxu3 %v411_v59  ;;  %v388_v61 = vpop.f32.mrf.mxu0 }
 0x118   :  { %2386 = vmatpush.msk.msra.mxu1 %vm485_vm11, %v388_v61 }
 0x119   :  { %442 = vmatpush.msra.mxu3 %v408_v55  ;;  %2387 = vmatmul.msk.f32.vlgmr.msra.gmra.mxu1 %vm460_vm12, %v2973_v60 }
 0x11a   :  { %2382 = vmatmul.msk.f32.vlgmr.msra.gmra.mxu3 %vm4216_vm6, %v2934_v37 }
 0x11f   :  { %v3029_v24 = vpop.f32.mrf.mxu0 }
 0x120   :  { %vm559_vm8 = vcmp.gt.f32.partialorder %v3029_v24, 0.5 }
 0x121   :  { %2388 = vmatmul.msk.f32.gmra.mxu1 %vm460_vm12, %v2993_v63 }
 0x122   :  { %2383 = vmatmul.msk.f32.gmra.mxu3 %vm4216_vm6, %v2947_v45 }
 0x127   :  { %v550_v27 = vpop.f32.mrf.mxu0 }
 0x128   :  { %vm560_vm1 = vcmp.gt.f32.partialorder %v550_v27, 0.5 }
 0x129   :  { %2389 = vmatmul.msk.f32.gmra.mxu1 %vm460_vm12, %v3005_v1 }
 0x12a   :  { %2384 = vmatmul.msk.f32.gmra.mxu3 %vm4216_vm6, %v2955_v52 }
 0x12f   :  { %v553_v42 = vpop.f32.mrf.mxu0 }
 0x131   :  { %2390 = vmatmul.msk.f32.gmra.mxu1 %vm460_vm12, %v3017_v3 }
 0x132   :  { %2385 = vmatmul.msk.f32.gmra.mxu3 %vm4216_vm6, %v2961_v57 }
 0x137   :  { %v556_v54 = vpop.f32.mrf.mxu0 }
 0x138   :  { %vm562_vm11 = vcmp.gt.f32.partialorder %v556_v54, 0.5 }
 0x196   :  { %v506_v23 = vpop.f32.mrf.mxu1 }
 0x19d   :  { %v444_v4 = vpop.f32.mrf.mxu3 }
 0x19e   :  { %v456_v8 = vmul.f32 %v444_v4, %v2973_v60  ;;  %v509_v25 = vpop.f32.mrf.mxu1 }
 0x1a0   :  { %v461_v10 = vsel %vm460_vm12, %v456_v8, 0.0 }
 0x1a5   :  { %v447_v5 = vpop.f32.mrf.mxu3 }
 0x1a6   :  { %v457_v6 = vmul.f32 %v447_v5, %v2993_v63  ;;  %v512_v39 = vpop.f32.mrf.mxu1 }
 0x1a8   :  { %v464_v7 = vsel %vm460_vm12, %v457_v6, 0.0 }
 0x1a9   :  { %465 = vadd.xlane.f32.xlu1 %v464_v7 }
 0x1ad   :  { %v450_v9 = vpop.f32.mrf.mxu3 }
 0x1ae   :  { %v458_v16 = vmul.f32 %v450_v9, %v3005_v1  ;;  %v515_v49 = vpop.f32.mrf.mxu1 }
 0x1b0   :  { %v467_v21 = vsel %vm460_vm12, %v458_v16, 0.0 }
 0x1b1   :  { %462 = vadd.xlane.f32.xlu1 %v461_v10 }
 0x1b5   :  { %v453_v11 = vpop.f32.mrf.mxu3 }
 0x1b6   :  { %v459_v12 = vmul.f32 %v453_v11, %v3017_v3 }
 0x1b8   :  { %v470_v13 = vsel %vm460_vm12, %v459_v12, 0.0 }
 0x1b9   :  { %471 = vadd.xlane.f32.xlu0 %v470_v13 }
 0x1c1   :  { %468 = vadd.xlane.f32.xlu0 %v467_v21 }
 0x21c   :  { %v466_v31 = vpop.xlane.xlu1 %465 }
 0x21d   :  { %v510_v34 = vadd.f32 %v509_v25, %v466_v31 }
 0x21f   :  { %v523_v38 = vmul.f32 0.2, %v510_v34  ;;  %vm519_vm5 = vcmp.ge.f32.partialorder %v510_v34, 0.0 }
 0x221   :  { %v527_v40 = vsel %vm519_vm5, %v510_v34, %v523_v38  ;;  %vm561_vm5 = vcmp.gt.f32.partialorder %v553_v42, 0.5  ;;  %v95_v42 = vmul.f32 %v2875_v19, %v2915_v33 }
 0x222   :  { %v564_v41 = vsel %vm560_vm1, %v527_v40, -1e+30 }
 0x223   :  { %v570_v43 = vsel %vm4216_vm6, %v564_v41, -inf }
 0x224   :  { %v463_v44 = vpop.xlane.xlu1 %462  ;;  %571 = vmax.xlane.f32.xlu0 %v570_v43 }
 0x225   :  { %v507_v46 = vadd.f32 %v506_v23, %v463_v44 }
 0x227   :  { %v522_v47 = vmul.f32 0.2, %v507_v46  ;;  %vm518_vm7 = vcmp.ge.f32.partialorder %v507_v46, 0.0 }
 0x229   :  { %v526_v48 = vsel %vm518_vm7, %v507_v46, %v522_v47 }
 0x22a   :  { %v563_v50 = vsel %vm559_vm8, %v526_v48, -1e+30 }
 0x22b   :  { %v567_v51 = vsel %vm4216_vm6, %v563_v50, -inf }
 0x22c   :  { %v472_v53 = vpop.xlane.xlu0 %471  ;;  %568 = vmax.xlane.f32.xlu1 %v567_v51 }
 0x22d   :  { %v516_v55 = vadd.f32 %v515_v49, %v472_v53 }
 0x22f   :  { %vm521_vm9 = vcmp.ge.f32.partialorder %v516_v55, 0.0  ;;  %v525_v56 = vmul.f32 0.2, %v516_v55 }
 0x231   :  { %v529_v59 = vsel %vm521_vm9, %v516_v55, %v525_v56  ;;  %v2613_v55 = vpack.i.bf16 %v2877_v20, %v2888_v26 }
 0x232   :  { %v566_v61 = vsel %vm562_vm11, %v529_v59, -1e+30  ;;  %v3064_v59 = vfloor.f32 %v95_v42 }
 0x233   :  { %v576_v4 = vsel %vm4216_vm6, %v566_v61, -inf }
 0x234   :  { %v469_v5 = vpop.xlane.xlu0 %468  ;;  %577 = vmax.xlane.f32.xlu2 %v576_v4 }
 0x235   :  { %v513_v6 = vadd.f32 %v512_v39, %v469_v5 }
 0x237   :  { %v524_v7 = vmul.f32 0.2, %v513_v6  ;;  %vm520_vm12 = vcmp.ge.f32.partialorder %v513_v6, 0.0 }
 0x239   :  { %v528_v8 = vsel %vm520_vm12, %v513_v6, %v524_v7 }
 0x23a   :  { %v565_v9 = vsel %vm561_vm5, %v528_v8, -1e+30 }
 0x23b   :  { %v573_v10 = vsel %vm4216_vm6, %v565_v9, -inf }
 0x23c   :  { %574 = vmax.xlane.f32.xlu2 %v573_v10 }
 0x297   :  { %v572_v11 = vpop.xlane.xlu0 %571 }
 0x298   :  { %v580_v12 = vsub.f32 %v564_v41, %v572_v11 }
 0x29a   :  { %v585_v13 = vmul.f32 1.442695, %v580_v12 }
 0x29c   :  { %2635 = vpow2.f32 %v585_v13 }
 0x29f   :  { %v569_v25 = vpop.xlane.xlu1 %568 }
 0x2a0   :  { %v579_v34 = vsub.f32 %v563_v50, %v569_v25 }
 0x2a2   :  { %v2636_v16 = vpop.eup %2635  ;;  %v583_v40 = vmul.f32 1.442695, %v579_v34 }
 0x2a3   :  { %v3042_v21 = vsel %vm560_vm1, %v2636_v16, 0.0 }
 0x2a4   :  { %v598_v23 = vsel %vm4216_vm6, %v3042_v21, 0.0 }
 0x2a5   :  { %599 = vadd.xlane.f32.xlu1 %v598_v23 }
 0x2a7   :  { %v578_v31 = vpop.xlane.xlu2 %577 }
 0x2a8   :  { %v582_v38 = vsub.f32 %v566_v61, %v578_v31  ;;  %v99_v61 = vmul.f32 16.0, %v3064_v59 }
 0x2aa   :  { %v589_v39 = vmul.f32 1.442695, %v582_v38  ;;  %v3070_v7 = vsub.f32 %v2915_v33, %v99_v61  ;;  %v150_v61 = vadd.s32 248, %v2865_v14 }
 0x2ac   :  { %2637 = vpow2.f32 %v589_v39  ;;  %vm4214_vm1 = vcmp.eq.f32.partialorder %v3070_v7, %v2899_v29  ;;  %vm4213_vm7 = vcmp.eq.f32.partialorder %v3070_v7, %v2870_v17 }
 0x2ad   :  { %2639 = vpow2.f32 %v583_v40  ;;  %2397 = vmatpush.msk.msrb.mxu3 %vm4214_vm1, %v4224_v35 }
 0x2af   :  { %v575_v43 = vpop.xlane.xlu2 %574  ;;  %2398 = vmatpush.msk.msrb.mxu3 %vm4213_vm7, %v4224_v35 }
 0x2b0   :  { %v581_v41 = vsub.f32 %v565_v9, %v575_v43 }
 0x2b2   :  { %v2638_v44 = vpop.eup %2637  ;;  %v587_v46 = vmul.f32 1.442695, %v581_v41 }
 0x2b3   :  { %v594_v27 = vsel %vm562_vm11, %v2638_v44, 0.0  ;;  %v2640_v48 = vpop.eup %2639 }
 0x2b4   :  { %2641 = vpow2.f32 %v587_v46  ;;  %v604_v47 = vsel %vm4216_vm6, %v594_v27, 0.0  ;;  %v3050_v49 = vsel %vm559_vm8, %v2640_v48, 0.0 }
 0x2b5   :  { %605 = vadd.xlane.f32.xlu2 %v604_v47  ;;  %v595_v54 = vsel %vm4216_vm6, %v3050_v49, 0.0 }
 0x2ba   :  { %v2642_v50 = vpop.eup %2641 }
 0x2bb   :  { %v3053_v51 = vsel %vm561_vm5, %v2642_v50, 0.0 }
 0x2bc   :  { %v601_v53 = vsel %vm4216_vm6, %v3053_v51, 0.0 }
 0x2bd   :  { %602 = vadd.xlane.f32.xlu0 %v601_v53  ;;  %596 = vadd.xlane.f32.xlu2 %v595_v54 }
 0x2d5   :  { %2614 = vrot.lane.b32.xlu2 %v2613_v55, %s2728_s7 }
 0x318   :  { %v600_v24 = vpop.xlane.xlu1 %599 }
 0x319   :  { %v608_v56 = vadd.f32 1e-16, %v600_v24 }
 0x31b   :  { %2643 = vrcp.f32 %v608_v56  ;;  %v635_v39 = vand.u32 2147483647, %v608_v56  ;;  %v637_v44 = vand.u32 2147483648, %v608_v56  ;;  %vm631_vm4 = vweird.f32 %v608_v56 }
 0x321   :  { %v3067_v6 = vpop.eup %2643 }
 0x322   :  { %v627_v20 = vmul.f32 %v3067_v6, %v608_v56  ;;  %vm632_vm12 = vweird.f32 %v3067_v6 }
 0x323   :  { %vm3094_vm3 = vmor %vm631_vm4, %vm632_vm12 }
 0x324   :  { %v628_v12 = vsub.f32 1.0, %v627_v20  ;;  %v638_v20 = vor.u32 1.1754944e-38, %v637_v44 }
 0x326   :  { %v629_v25 = vmul.f32 %v3067_v6, %v628_v12 }
 0x328   :  { %v606_v4 = vpop.xlane.xlu2 %605  ;;  %v630_v41 = vadd.f32 %v3067_v6, %v629_v25 }
 0x329   :  { %v610_v5 = vadd.f32 1e-16, %v606_v4 }
 0x32b   :  { %2645 = vrcp.f32 %v610_v5  ;;  %v667_v23 = vand.u32 2147483648, %v610_v5  ;;  %v665_v34 = vand.u32 2147483647, %v610_v5  ;;  %vm661_vm9 = vweird.f32 %v610_v5 }
 0x32d   :  { %v668_v43 = vor.u32 1.1754944e-38, %v667_v23  ;;  %vm666_vm5 = vcmp.eq.f32.partialorder %v665_v34, 8.507059e+37  ;;  %v148_v34 = vadd.s32 232, %v2865_v14 }
 0x330   :  { %v603_v26 = vpop.xlane.xlu0 %602  ;;  %v597_v8 = vpop.xlane.xlu2 %596 }
 0x331   :  { %v2646_v9 = vpop.eup %2645  ;;  %v609_v10 = vadd.f32 1e-16, %v603_v26  ;;  %v3085_v11 = vadd.f32 1e-16, %v597_v8  ;;  %v149_v8 = vadd.s32 240, %v2865_v14 }
 0x332   :  { %v657_v13 = vmul.f32 %v2646_v9, %v610_v5  ;;  %vm662_vm8 = vweird.f32 %v2646_v9  ;;  %v634_v5 = vsel %vm3094_vm3, %v3067_v6, %v630_v41  ;;  %v180_v6 = vcvt.s32.f32 %v150_v61 }
 0x333   :  { %2647 = vrcp.f32 %v609_v10  ;;  %vm663_vm11 = vmor %vm661_vm9, %vm662_vm8  ;;  %vm3098_vm8 = vcmp.eq.f32.partialorder %v635_v39, 8.507059e+37  ;;  %v652_v4 = vand.u32 2147483648, %v609_v10  ;;  %v650_v26 = vand.u32 2147483647, %v609_v10 }
 0x334   :  { %2649 = vrcp.f32 %v3085_v11  ;;  %v658_v16 = vsub.f32 1.0, %v657_v13  ;;  %vm646_vm9 = vweird.f32 %v609_v10  ;;  %v622_v12 = vand.u32 2147483648, %v3085_v11 }
 0x335   :  { %vm616_vm12 = vweird.f32 %v3085_v11  ;;  %v653_v23 = vor.u32 1.1754944e-38, %v652_v4  ;;  %v179_v39 = vcvt.s32.f32 %v149_v8 }
 0x336   :  { %v659_v31 = vmul.f32 %v2646_v9, %v658_v16  ;;  %v620_v16 = vand.u32 2147483647, %v3085_v11  ;;  %v623_v44 = vor.u32 1.1754944e-38, %v622_v12 }
 0x337   :  { %v211_v24 = vmul.f32 %v179_v39, %v2875_v19 }
 0x338   :  { %v660_v38 = vadd.f32 %v2646_v9, %v659_v31  ;;  %v100_v31 = vmul.f32 16.0, %v2901_v30 }
 0x339   :  { %v2648_v40 = vpop.eup %2647 }
 0x33a   :  { %v2650_v46 = vpop.eup %2649  ;;  %v642_v47 = vmul.f32 %v2648_v40, %v609_v10  ;;  %v664_v48 = vsel %vm663_vm11, %v2646_v9, %v660_v38  ;;  %vm647_vm4 = vweird.f32 %v2648_v40  ;;  %v639_v10 = vsel %vm3098_vm8, %v638_v20, %v634_v5 }
 0x33b   :  { %v612_v50 = vmul.f32 %v2650_v46, %v3085_v11  ;;  %v669_v53 = vsel %vm666_vm5, %v668_v43, %v664_v48  ;;  %vm617_vm11 = vweird.f32 %v2650_v46  ;;  %vm648_vm3 = vmor %vm646_vm9, %vm647_vm4  ;;  %vm651_vm5 = vcmp.eq.f32.partialorder %v650_v26, 8.507059e+37 }
 0x33c   :  { %v3092_v54 = vmul.f32 %v669_v53, %v594_v27  ;;  %v643_v55 = vsub.f32 1.0, %v642_v47  ;;  %vm618_vm0 = vmor %vm616_vm12, %vm617_vm11  ;;  %v147_v11 = vadd.s32 224, %v2865_v14  ;;  %vm621_vm4 = vcmp.eq.f32.partialorder %v620_v16, 8.507059e+37 }
 0x33d   :  { %v613_v56 = vsub.f32 1.0, %v612_v50  ;;  %v212_v48 = vmul.f32 %v180_v6, %v2875_v19  ;;  %v146_v50 = vadd.s32 216, %v2865_v14  ;;  %v3123_v53 = vsub.f32 %v87_v22, %v100_v31 }
 0x33e   :  { %689 = vmatpush.msrb.mxu2 %v3092_v54  ;;  %v644_v27 = vmul.f32 %v2648_v40, %v643_v55  ;;  %v178_v55 = vcvt.s32.f32 %v148_v34  ;;  %v177_v42 = vcvt.s32.f32 %v147_v11  ;;  %v3145_v22 = vsel %vm4213_vm7, 1.0, %v4222_v36 }
 0x33f   :  { %v614_v9 = vmul.f32 %v2650_v46, %v613_v56  ;;  %v176_v61 = vcvt.s32.f32 %v146_v50  ;;  %vm4212_vm8 = vcmp.eq.f32.partialorder %v3123_v53, %v2899_v29  ;;  %v144_v5 = vadd.s32 200, %v2865_v14 }
 0x340   :  { %v645_v13 = vadd.f32 %v2648_v40, %v644_v27  ;;  %v210_v4 = vmul.f32 %v178_v55, %v2875_v19  ;;  %v243_v20 = vfloor.f32 %v211_v24  ;;  %vm4211_vm9 = vcmp.eq.f32.partialorder %v3123_v53, %v2870_v17 }
 0x341   :  { %v615_v25 = vadd.f32 %v2650_v46, %v614_v9  ;;  %v209_v56 = vmul.f32 %v177_v42, %v2875_v19  ;;  %v143_v27 = vadd.s32 192, %v2865_v14  ;;  %v4292_v26 = vmov 0 }
 0x342   :  { %v649_v38 = vsel %vm648_vm3, %v2648_v40, %v645_v13  ;;  %v208_v8 = vmul.f32 %v176_v61, %v2875_v19  ;;  %v242_v9 = vfloor.f32 %v210_v4  ;;  %v174_v12 = vcvt.s32.f32 %v144_v5 }
 0x343   :  { %v654_v43 = vsel %vm651_vm5, %v653_v23, %v649_v38  ;;  %v619_v41 = vsel %vm618_vm0, %v2650_v46, %v615_v25  ;;  %v3127_v46 = vmul.f32 %v639_v10, %v3042_v21  ;;  %vm4215_vm0 = vcmp.eq.f32.partialorder %v3064_v59, %v2899_v29 }
 0x344   :  { %v3117_v47 = vmul.f32 %v654_v43, %v3053_v51  ;;  %v624_v40 = vsel %vm621_vm4, %v623_v44, %v619_v41  ;;  %v145_v51 = vadd.s32 208, %v2865_v14  ;;  %2405 = vmatpush.msk.msrb.mxu1 %vm4215_vm0, %v4224_v35  ;;  %v244_v21 = vfloor.f32 %v212_v48 }
 0x345   :  { %v3139_v18 = vmul.f32 %v624_v40, %v3050_v49  ;;  %v142_v13 = vadd.s32 184, %v2865_v14  ;;  %vm3174_vm12 = vcmp.eq.f32.partialorder %v243_v20, %v2915_v33  ;;  %v4294_v16 = vmov 0 }
 0x346   :  { %690 = vmatpush.msrb.mxu2 %v3117_v47  ;;  %v175_v49 = vcvt.s32.f32 %v145_v51  ;;  %vm3163_vm11 = vcmp.eq.f32.partialorder %v244_v21, %v2915_v33  ;;  %v4295_v16 = vsel %vm3174_vm12, 4294967295, %v4294_v16  ;;  %v241_v23 = vfloor.f32 %v209_v56 }
 0x347   :  { %v4293_v26 = vsel %vm3163_vm11, 4294967295, %v4292_v26  ;;  %v173_v25 = vcvt.s32.f32 %v143_v27  ;;  %v141_v31 = vadd.s32 176, %v2865_v14  ;;  %v3187_v34 = vsel %vm4214_vm1, 1.0, %v4222_v36 }
 0x348   :  { %691 = vmatpush.msrb.mxu2 %v3127_v46  ;;  %v207_v6 = vmul.f32 %v175_v49, %v2875_v19  ;;  %v240_v38 = vfloor.f32 %v208_v8  ;;  %vm3193_vm3 = vcmp.eq.f32.partialorder %v242_v9, %v2915_v33  ;;  %v4296_v10 = vmov 0 }
 0x349   :  { %v4297_v10 = vsel %vm3193_vm3, 4294967295, %v4296_v10  ;;  %v206_v39 = vmul.f32 %v174_v12, %v2875_v19  ;;  %v172_v43 = vcvt.s32.f32 %v142_v13  ;;  %v140_v41 = vadd.s32 168, %v2865_v14 }
 0x34a   :  { %692 = vmatpush.msrb.mxu2 %v3139_v18  ;;  %v239_v44 = vfloor.f32 %v207_v6  ;;  %vm3202_vm5 = vcmp.eq.f32.partialorder %v241_v23, %v2915_v33  ;;  %v4298_v11 = vmov 0  ;;  %v205_v48 = vmul.f32 %v173_v25, %v2875_v19 }
 0x34b   :  { %2395 = vmatmul.msk.f32.vlgmr.msrb.gmra.mxu2 %vm4210_vm2, %v3145_v22  ;;  %v4299_v11 = vsel %vm3202_vm5, 4294967295, %v4298_v11  ;;  %v171_v50 = vcvt.s32.f32 %v141_v31  ;;  %v139_v40 = vadd.s32 160, %v2865_v14  ;;  %vm3212_vm4 = vcmp.eq.f32.partialorder %v240_v38, %v2915_v33 }
 0x34c   :  { %2401 = vmatpush.msk.msra.mxu2 %vm4212_vm8, %v4224_v35  ;;  %v4300_v55 = vmov 0  ;;  %v238_v24 = vfloor.f32 %v206_v39  ;;  %v204_v51 = vmul.f32 %v172_v43, %v2875_v19  ;;  %v170_v42 = vcvt.s32.f32 %v140_v41 }
 0x34d   :  { %v4301_v55 = vsel %vm3212_vm4, 4294967295, %v4300_v55  ;;  %v138_v21 = vadd.s32 152, %v2865_v14  ;;  %v4302_v61 = vmov 0  ;;  %v237_v4 = vfloor.f32 %v205_v48 }
 0x34e   :  { %2402 = vmatpush.msk.msra.mxu2 %vm4211_vm9, %v4224_v35  ;;  %v203_v5 = vmul.f32 %v171_v50, %v2875_v19  ;;  %v169_v20 = vcvt.s32.f32 %v139_v40  ;;  %v137_v49 = vadd.s32 144, %v2865_v14  ;;  %vm3232_vm9 = vcmp.eq.f32.partialorder %v238_v24, %v2915_v33 }
 0x34f   :  { %v4304_v56 = vmov 0  ;;  %v236_v27 = vfloor.f32 %v204_v51  ;;  %v202_v8 = vmul.f32 %v170_v42, %v2875_v19  ;;  %v168_v9 = vcvt.s32.f32 %v138_v21 }
 0x350   :  { %2431 = vmatpush.msk.msrb.mxu2 %vm3163_vm11, %v4224_v35  ;;  %v4305_v56 = vsel %vm3232_vm9, 4294967295, %v4304_v56  ;;  %vm3241_vm8 = vcmp.eq.f32.partialorder %v237_v4, %v2915_v33  ;;  %v4306_v12 = vmov 0  ;;  %v235_v13 = vfloor.f32 %v203_v5 }
 0x351   :  { %v4307_v12 = vsel %vm3241_vm8, 4294967295, %v4306_v12  ;;  %v201_v6 = vmul.f32 %v169_v20, %v2875_v19  ;;  %v167_v23 = vcvt.s32.f32 %v137_v49  ;;  %vm3250_vm7 = vcmp.eq.f32.partialorder %v236_v27, %v2915_v33 }
 0x352   :  { %2432 = vmatpush.msk.msrb.mxu2 %vm3174_vm12, %v4224_v35  ;;  %v4308_v25 = vmov 0  ;;  %v234_v31 = vfloor.f32 %v202_v8  ;;  %v200_v38 = vmul.f32 %v168_v9, %v2875_v19  ;;  %vm3259_vm1 = vcmp.eq.f32.partialorder %v235_v13, %v2915_v33 }
 0x353   :  { %2396 = vmatmul.msk.f32.gmra.mxu2 %vm4210_vm2, %v3187_v34  ;;  %vm3222_vm2 = vcmp.eq.f32.partialorder %v239_v44, %v2915_v33  ;;  %v4309_v25 = vsel %vm3250_vm7, 4294967295, %v4308_v25  ;;  %v4311_v39 = vmov 0  ;;  %v233_v43 = vfloor.f32 %v201_v6 }
 0x354   :  { %2433 = vmatpush.msk.msrb.mxu2 %vm3193_vm3, %v4224_v35  ;;  %v4303_v61 = vsel %vm3222_vm2, 4294967295, %v4302_v61  ;;  %4310 = vst [vmem:[#allocation7_spill] sm:$0xff] %v4309_v25  ;;  %v4312_v39 = vsel %vm3259_vm1, 4294967295, %v4311_v39  ;;  %v199_v41 = vmul.f32 %v167_v23, %v2875_v19  ;;  %vm3268_vm0 = vcmp.eq.f32.partialorder %v234_v31, %v2915_v33 }
 0x355   :  { %4313 = vst [vmem:[#allocation8_spill] sm:$0xff] %v4312_v39  ;;  %v4314_v44 = vmov 0  ;;  %v232_v48 = vfloor.f32 %v200_v38  ;;  %vm3276_vm6 = vcmp.eq.f32.partialorder %v233_v43, %v2915_v33  ;;  %v4317_v50 = vmov 0 }
 0x356   :  { %2434 = vmatpush.msk.msrb.mxu2 %vm3202_vm5, %v4224_v35  ;;  %v4315_v44 = vsel %vm3268_vm0, 4294967295, %v4314_v44  ;;  %v4318_v50 = vsel %vm3276_vm6, 4294967295, %v4317_v50  ;;  %v231_v40 = vfloor.f32 %v199_v41  ;;  %v4320_v24 = vmov 0 }
 0x357   :  { %4316 = vst [vmem:[#allocation9_spill] sm:$0xff] %v4315_v44  ;;  %v4323_v51 = vmov 0  ;;  %v136_v42 = vadd.s32 136, %v2865_v14  ;;  %v135_v4 = vadd.s32 128, %v2865_v14  ;;  %v4326_v8 = vmov 0 }
 0x358   :  { %2435 = vmatpush.msk.msrb.mxu2 %vm3212_vm4, %v4224_v35  ;;  %4319 = vst [vmem:[#allocation10_spill] sm:$0xff] %v4318_v50  ;;  %v4329_v13 = vmov 0  ;;  %v134_v6 = vadd.s32 120, %v2865_v14  ;;  %v133_v23 = vadd.s32 112, %v2865_v14  ;;  %v132_v31 = vadd.s32 104, %v2865_v14 }
 0x359   :  { %v166_v21 = vcvt.s32.f32 %v136_v42  ;;  %v165_v20 = vcvt.s32.f32 %v135_v4  ;;  %v131_v38 = vadd.s32 96, %v2865_v14  ;;  %v130_v43 = vadd.s32 88, %v2865_v14 }
 0x35a   :  { %2436 = vmatpush.msk.msrb.mxu2 %vm3222_vm2, %v4224_v35  ;;  %v129_v41 = vadd.s32 80, %v2865_v14  ;;  %v163_v42 = vcvt.s32.f32 %v133_v23  ;;  %vm4244_vm4 = vcmp.gt.f32.partialorder %v2912_v32, 0.5  ;;  %vm4349_vm3 = vcmask 130048  }
 0x35b   :  { %v198_v5 = vmul.f32 %v166_v21, %v2875_v19  ;;  %v197_v27 = vmul.f32 %v165_v20, %v2875_v19  ;;  %v162_v21 = vcvt.s32.f32 %v132_v31  ;;  %v161_v4 = vcvt.s32.f32 %v131_v38  ;;  %vm4350_vm12 = vmmov %vm4349_vm3 }
 0x35c   :  { %2437 = vmatpush.msk.msrb.mxu2 %vm3232_vm9, %v4224_v35  ;;  %v159_v20 = vcvt.s32.f32 %v129_v41  ;;  %v4336_v41 = vmov 1.0   ;;  %vm4351_vm11 = vmmov %vm4349_vm3 }
 0x35d   :  { %v230_v49 = vfloor.f32 %v198_v5  ;;  %v229_v9 = vfloor.f32 %v197_v27  ;;  %v160_v5 = vcvt.s32.f32 %v130_v43  ;;  %v195_v27 = vmul.f32 %v163_v42, %v2875_v19 }
 0x35e   :  { %2438 = vmatpush.msk.msrb.mxu2 %vm3241_vm8, %v4224_v35  ;;  %v193_v36 = vmul.f32 %v161_v4, %v2875_v19  ;;  %v191_v43 = vmul.f32 %v159_v20, %v2875_v19  ;;  %v4341_v4 = vmov 0 }
 0x360   :  { %2439 = vmatpush.msk.msrb.mxu2 %vm3250_vm7, %v4224_v35  ;;  %vm3284_vm7 = vcmp.eq.f32.partialorder %v232_v48, %v2915_v33  ;;  %v128_v48 = vadd.s32 72, %v2865_v14  ;;  %v225_v38 = vfloor.f32 %v193_v36  ;;  %v4339_v36 = vmov 0 }
 0x361   :  { %v4321_v24 = vsel %vm3284_vm7, 4294967295, %v4320_v24 }
 0x362   :  { %2440 = vmatpush.msk.msrb.mxu2 %vm3259_vm1, %v4224_v35  ;;  %4322 = vst [vmem:[#allocation11_spill] sm:$0xff] %v4321_v24  ;;  %vm3292_vm1 = vcmp.eq.f32.partialorder %v231_v40, %v2915_v33  ;;  %v164_v40 = vcvt.s32.f32 %v134_v6  ;;  %v192_v6 = vmul.f32 %v160_v5, %v2875_v19 }
 0x363   :  { %v4324_v51 = vsel %vm3292_vm1, 4294967295, %v4323_v51 }
 0x364   :  { %2441 = vmatpush.msk.msrb.mxu2 %vm3268_vm0, %v4224_v35  ;;  %4325 = vst [vmem:[#allocation12_spill] sm:$0xff] %v4324_v51  ;;  %v224_v42 = vfloor.f32 %v192_v6  ;;  %vm3367_vm0 = vcmp.eq.f32.partialorder %v225_v38, %v2915_v33  ;;  %v4345_v6 = vmov 0 }
 0x365   :  { %v4340_v36 = vsel %vm3367_vm0, 4294967295, %v4339_v36 }
 0x366   :  { %2442 = vmatpush.msk.msrb.mxu2 %vm3276_vm6, %v4224_v35  ;;  %vm4231_vm6 = vcmp.eq.f32.partialorder %v3064_v59, %v2870_v17  ;;  %vm3376_vm8 = vcmp.eq.f32.partialorder %v224_v42, %v2915_v33  ;;  %v2615_v42 = vpop.permute.xlu2 %2614 }
 0x367   :  { %2406 = vmatpush.msk.msrb.mxu1 %vm4231_vm6, %v4224_v35  ;;  %v4342_v4 = vsel %vm3376_vm8, 4294967295, %v4341_v4 }
 0x368   :  { %2443 = vmatpush.msk.msrb.mxu2 %vm3284_vm7, %v4224_v35  ;;  %vm3309_vm7 = vcmp.eq.f32.partialorder %v230_v49, %v2915_v33  ;;  %v196_v49 = vmul.f32 %v164_v40, %v2875_v19  ;;  %v157_v40 = vcvt.s32.f32 %v127_v15  ;;  %v223_v15 = vfloor.f32 %v191_v43 }
 0x369   :  { %v4327_v8 = vsel %vm3309_vm7, 4294967295, %v4326_v8 }
 0x36a   :  { %2444 = vmatpush.msk.msrb.mxu2 %vm3292_vm1, %v4224_v35  ;;  %4328 = vst [vmem:[#allocation13_spill] sm:$0xff] %v4327_v8  ;;  %vm3321_vm1 = vcmp.eq.f32.partialorder %v229_v9, %v2915_v33  ;;  %v194_v9 = vmul.f32 %v162_v21, %v2875_v19  ;;  %v227_v8 = vfloor.f32 %v195_v27  ;;  %v125_v21 = vadd.s32 48, %v2865_v14 }
 0x36b   :  { %v4330_v13 = vsel %vm3321_vm1, 4294967295, %v4329_v13  ;;  %vm3387_vm9 = vcmp.eq.f32.partialorder %v223_v15, %v2915_v33  ;;  %v4343_v27 = vmov 0 }
 0x36c   :  { %2445 = vmatpush.msk.msrb.mxu2 %vm3309_vm7, %v4224_v35  ;;  %4331 = vst [vmem:[#allocation14_spill] sm:$0xff] %v4330_v13  ;;  %v228_v13 = vfloor.f32 %v196_v49  ;;  %v226_v51 = vfloor.f32 %v194_v9  ;;  %v155_v20 = vcvt.s32.f32 %v125_v21  ;;  %v3381_v49 = vadd.s32 40, %v2865_v14 }
 0x36d   :  { %v4344_v27 = vsel %vm3387_vm9, 4294967295, %v4343_v27 }
 0x36e   :  { %2446 = vmatpush.msk.msrb.mxu2 %vm3321_vm1, %v4224_v35  ;;  %v158_v35 = vcvt.s32.f32 %v128_v48  ;;  %vm3342_vm6 = vcmp.eq.f32.partialorder %v228_v13, %v2915_v33  ;;  %vm3347_vm1 = vcmp.eq.f32.partialorder %v227_v8, %v2915_v33  ;;  %vm3357_vm7 = vcmp.eq.f32.partialorder %v226_v51, %v2915_v33 }
 0x36f   :  { %2413 = vmatpush.msk.msra.mxu3 %vm3342_vm6, %v4336_v41  ;;  %v4337_v13 = vmov 0  ;;  %v126_v8 = vadd.s32 56, %v2865_v14  ;;  %v189_v51 = vmul.f32 %v157_v40, %v2875_v19  ;;  %v187_v43 = vmul.f32 %v155_v20, %v2875_v19 }
 0x370   :  { %v190_v48 = vmul.f32 %v158_v35, %v2875_v19  ;;  %v4338_v13 = vsel %vm3357_vm7, 4294967295, %v4337_v13  ;;  %v2616_v20 = vunpack.i.l.bf16 %v2615_v42 }
 0x371   :  { %2414 = vmatpush.msk.msra.mxu3 %vm3347_vm1, %v4336_v41  ;;  %v156_v35 = vcvt.s32.f32 %v126_v8  ;;  %v221_v38 = vfloor.f32 %v189_v51  ;;  %v219_v51 = vfloor.f32 %v187_v43  ;;  %v4355_v43 = vmov 0 }
 0x372   :  { %v222_v5 = vfloor.f32 %v190_v48  ;;  %v4248_v48 = vcvt.s32.f32 %v3381_v49 }
 0x373   :  { %2415 = vmatpush.msk.msra.mxu3 %vm3357_vm7, %v4336_v41  ;;  %v188_v9 = vmul.f32 %v156_v35, %v2875_v19  ;;  %vm3412_vm5 = vcmp.eq.f32.partialorder %v221_v38, %v2915_v33  ;;  %v4347_v35 = vmov 0  ;;  %v2617_v38 = vunpack.i.h.bf16 %v2615_v42 }
 0x374   :  { %vm3396_vm2 = vcmp.eq.f32.partialorder %v222_v5, %v2915_v33  ;;  %v4348_v35 = vsel %vm3412_vm5, 4294967295, %v4347_v35  ;;  %v3419_v5 = vmul.f32 %v4248_v48, %v2875_v19 }
 0x375   :  { %2416 = vmatpush.msk.msra.mxu3 %vm3367_vm0, %v4336_v41  ;;  %v4346_v6 = vsel %vm3396_vm2, 4294967295, %v4345_v6  ;;  %v220_v21 = vfloor.f32 %v188_v9  ;;  %v4353_v9 = vmov 0 }
 0x377   :  { %2417 = vmatpush.msk.msra.mxu3 %vm3376_vm8, %v4336_v41 }
 0x379   :  { %2418 = vmatpush.msk.msra.mxu3 %vm3387_vm9, %v4336_v41  ;;  %vm3434_vm9 = vcmp.eq.f32.partialorder %v219_v51, %v2915_v33  ;;  %v3463_v51 = vadd.s32 32, %v2865_v14  ;;  %v74_v14 = vld [vmem:[%s4364_s27] sm:$0xff] }
 0x37a   :  { %v4356_v43 = vsel %vm3434_vm9, 4294967295, %v4355_v43 }
 0x37b   :  { %2419 = vmatpush.msk.msra.mxu3 %vm3396_vm2, %v4336_v41  ;;  %vm4352_vm2 = vmmov %vm4349_vm3 }
 0x37d   :  { %2420 = vmatpush.msk.msra.mxu3 %vm3412_vm5, %v4336_v41  ;;  %vm4361_vm5 = vmmov %vm4349_vm3 }
 0x3ce   :  { %v694_v40 = vpop.f32.mrf.mxu2 }
 0x3cf   :  { %v700_v8 = vmul.f32 2.0, %v694_v40  ;;  %v4249_v40 = vfloor.f32 %v3419_v5 }
 0x3d1   :  { %v702_v15 = vsel %vm4244_vm4, %v700_v8, -1e+30  ;;  %vm3426_vm4 = vcmp.eq.f32.partialorder %v220_v21, %v2915_v33 }
 0x3d2   :  { %2399 = vmatmul.msk.f32.vlgmr.msrb.gmra.mxu3 %vm4349_vm3, %v702_v15  ;;  %2403 = vmatmul.msk.f32.vlgmr.msra.gmra.mxu2 %vm4350_vm12, %v702_v15  ;;  %v4354_v9 = vsel %vm3426_vm4, 4294967295, %v4353_v9  ;;  %vm4359_vm12 = vmmov %vm4349_vm3 }
 0x3d3   :  { %2407 = vmatmul.msk.f32.vlgmr.msrb.gmra.mxu1 %vm4351_vm11, %v702_v15  ;;  %2411 = vmatmul.msk.f32.vlgmr.msrb.gmra.mxu0 %vm4352_vm2, %v702_v15  ;;  %vm4252_vm2 = vcmp.gt.f32.partialorder %v2897_v28, 0.5  ;;  %vm3451_vm11 = vcmp.eq.f32.partialorder %v4249_v40, %v2915_v33  ;;  %v4357_v15 = vmov 0 }
 0x3d4   :  { %1065 = vmatpush.msra.mxu2 %v2616_v20  ;;  %2421 = vmatpush.msk.msra.mxu3 %vm3426_vm4, %v4336_v41  ;;  %v4358_v15 = vsel %vm3451_vm11, 4294967295, %v4357_v15  ;;  %vm4360_vm4 = vmmov %vm4349_vm3  ;;  %v4250_v20 = vcvt.s32.f32 %v3463_v51 }
 0x3d6   :  { %1066 = vmatpush.msra.mxu2 %v2617_v38  ;;  %v697_v8 = vpop.f32.mrf.mxu2  ;;  %2422 = vmatpush.msk.msra.mxu3 %vm3434_vm9, %v4336_v41  ;;  %v3469_v38 = vmul.f32 %v4250_v20, %v2875_v19  ;;  %v75_v19 = vld [vmem:[%s4364_s27 + $0x8] sm:$0xff] }
 0x3d7   :  { %v701_v42 = vmul.f32 2.0, %v697_v8 }
 0x3d8   :  { %2423 = vmatpush.msk.msra.mxu3 %vm3451_vm11, %v4336_v41  ;;  %v4251_v8 = vfloor.f32 %v3469_v38 }
 0x3d9   :  { %v703_v21 = vsel %vm4252_vm2, %v701_v42, -1e+30  ;;  %v4362_v42 = vmov 0  ;;  %vm120_vm2 = vcmp.lt.f32.partialorder %v3123_v53, %v2901_v30 }
 0x3da   :  { %2400 = vmatmul.msk.f32.gmra.mxu3 %vm4359_vm12, %v703_v21  ;;  %2404 = vmatmul.msk.f32.gmra.mxu2 %vm4349_vm3, %v703_v21 }
 0x3db   :  { %2408 = vmatmul.msk.f32.gmra.mxu1 %vm4360_vm4, %v703_v21  ;;  %2412 = vmatmul.msk.f32.gmra.mxu0 %vm4361_vm5, %v703_v21  ;;  %vm3475_vm5 = vcmp.eq.f32.partialorder %v4251_v8, %v2915_v33  ;;  %v2729_v21 = vmov 0   ;;  %vm119_vm4 = vcmp.lt.f32.partialorder %v3070_v7, %v3064_v59 }
 0x3dc   :  { %v4363_v42 = vsel %vm3475_vm5, 4294967295, %v4362_v42  ;;  %2424 = vmatpush.msk.msra.mxu3 %vm3475_vm5, %v4336_v41  ;;  %2612 = vset.pattern.permute.xlu1 %v2729_v21 }
 0x3dd   :  { %2611 = vset.pattern.permute.xlu0 %v2729_v21  ;;  %870 = vperm.xlu1 %2612, %v74_v14  }
 0x3de   :  { %2425 = vmatpush.msk.msra.mxu3 %vm3010_vm15, %v4336_v41  ;;  %875 = vperm.xlu0 %2611, %v75_v19  }
 0x3df   :  { %2628 = vset.pattern.permute.xlu2 %v2729_v21 }
 0x3e0   :  { %2426 = vmatpush.msk.msra.mxu3 %vm2998_vm14, %v4336_v41 }
 0x3e2   :  { %2427 = vmatpush.msk.msra.mxu3 %vm2986_vm13, %v4336_v41 }
 0x3e4   :  { %2428 = vmatpush.msk.msra.mxu3 %vm2964_vm10, %v4336_v41 }
 0x450   :  { %v773_v48 = vpop.f32.mrf.mxu1  ;;  %v796_v40 = vpop.f32.mrf.mxu0 }
 0x455   :  { %v727_v20 = vpop.f32.mrf.mxu3  ;;  %v750_v8 = vpop.f32.mrf.mxu2 }
 0x456   :  { %vm802_vm12 = vcmp.gt.f32.partialorder %v727_v20, %v773_v48  ;;  %vm806_vm3 = vcmp.eq.f32.partialorder %v727_v20, %v773_v48  ;;  %vm807_vm10 = vcmp.eq.f32.partialorder %v750_v8, %v796_v40  ;;  %vm803_vm14 = vcmp.gt.f32.partialorder %v750_v8, %v796_v40 }
 0x457   :  { %vm810_vm13 = vmand %vm806_vm3, %vm119_vm4 }
 0x458   :  { %vm814_vm15 = vmor %vm802_vm12, %vm810_vm13  ;;  %v776_v48 = vpop.f32.mrf.mxu1  ;;  %v799_v20 = vpop.f32.mrf.mxu0 }
 0x459   :  { %vm811_vm5 = vmand %vm807_vm10, %vm120_vm2  ;;  %2429 = vmatmul.msk.f32.vlgmr.msra.gmra.mxu3 %vm814_vm15, %v4336_v41 }
 0x45a   :  { %vm815_vm11 = vmor %vm803_vm14, %vm811_vm5  ;;  %vm4369_vm5 = vcmask 130048  }
 0x45b   :  { %2447 = vmatmul.msk.f32.vlgmr.msrb.gmra.mxu2 %vm815_vm11, %v4336_v41  ;;  %vm4370_vm3 = vmmov %vm4369_vm5 }
 0x45d   :  { %v730_v14 = vpop.f32.mrf.mxu3  ;;  %v753_v19 = vpop.f32.mrf.mxu2 }
 0x45e   :  { %vm808_vm9 = vcmp.eq.f32.partialorder %v730_v14, %v776_v48  ;;  %vm809_vm8 = vcmp.eq.f32.partialorder %v753_v19, %v799_v20  ;;  %vm804_vm0 = vcmp.gt.f32.partialorder %v730_v14, %v776_v48  ;;  %vm805_vm7 = vcmp.gt.f32.partialorder %v753_v19, %v799_v20  ;;  %v3520_v48 = vpop.permute.xlu1 %870  ;;  %v3522_v14 = vpop.permute.xlu0 %875 }
 0x45f   :  { %vm812_vm13 = vmand %vm808_vm9, %vm119_vm4  ;;  %4365 = vst [vmem:[#allocation15_spill] sm:$0xff] %v3520_v48  ;;  %vm4367_vm9 = vcmp.gt.f32.partialorder %v2897_v28, 0.5 }
 0x460   :  { %vm816_vm12 = vmor %vm804_vm0, %vm812_vm13  ;;  %4366 = vst [vmem:[#allocation16_spill] sm:$0xff] %v3522_v14 }
 0x461   :  { %2430 = vmatmul.msk.f32.gmra.mxu3 %vm816_vm12, %v4336_v41  ;;  %vm813_vm10 = vmand %vm809_vm8, %vm120_vm2 }
 0x462   :  { %vm817_vm14 = vmor %vm805_vm7, %vm813_vm10  ;;  %vm4368_vm7 = vcmp.gt.f32.partialorder %v2912_v32, 0.5 }
 0x463   :  { %2448 = vmatmul.msk.f32.gmra.mxu2 %vm817_vm14, %v4336_v41  ;;  %vm4371_vm13 = vmmov %vm4370_vm3 }
 0x464   :  { %vm4372_vm12 = vmmov %vm4370_vm3 }
 0x465   :  { %vm4373_vm10 = vmmov %vm4370_vm3 }
 0x466   :  { %vm4374_vm14 = vmmov %vm4370_vm3 }
 0x4dc   :  { %v839_v40 = vpop.f32.mrf.mxu3 }
 0x4de   :  { %v862_v8 = vpop.f32.mrf.mxu2 }
 0x4df   :  { %v863_v24 = vadd.f32 %v862_v8, %v839_v40 }
 0x4e1   :  { %vm878_vm15 = vcmp.lt.f32.partialorder %v863_v24, %v3520_v48  ;;  %v3543_v24 = vld [vmem:[%s4190_s9] ss:$0 sm:$0xff] }
 0x4e2   :  { %vm880_vm11 = vmand %vm878_vm15, %vm4368_vm7  ;;  %962 = vrot.lane.b32.xlu2 %v3543_v24, %s2728_s7  ;;  %1042 = vrot.lane.b32.xlu1 %v3543_v24, %s2730_s6 }
 0x4e3   :  { %vm4375_vm15 = vmmov %vm4370_vm3 }
 0x4e4   :  { %v842_v21 = vpop.f32.mrf.mxu3 }
 0x4e6   :  { %v865_v20 = vpop.f32.mrf.mxu2 }
 0x4e7   :  { %v866_v19 = vadd.f32 %v865_v20, %v842_v21 }
 0x4e9   :  { %vm879_vm0 = vcmp.lt.f32.partialorder %v866_v19, %v3522_v14 }
 0x4ea   :  { %vm881_vm8 = vmand %vm879_vm0, %vm4367_vm9  ;;  %1117 = vrot.lane.b32.xlu2 %v3543_v24, %s2731_s30 }
 0x4eb   :  { %2449 = vmatpush.msk.msra.mxu1 %vm881_vm8, %v4336_v41  ;;  %vm4376_vm0 = vmmov %vm4370_vm3  ;;  %vm4378_vm8 = vcmask 64512  }
 0x4ed   :  { %2450 = vmatpush.msk.msra.mxu1 %vm880_vm11, %v4336_v41  ;;  %vm4379_vm11 = vmmov %vm4378_vm8 }
 0x4ee   :  { %2451 = vmatmul.msk.f32.vlgmr.msra.gmra.mxu1 %vm4369_vm5, %v2934_v37 }
 0x4f6   :  { %2452 = vmatmul.msk.f32.gmra.mxu1 %vm4370_vm3, %v2947_v45  ;;  %vm4380_vm3 = vmmov %vm4378_vm8 }
 0x4fe   :  { %2453 = vmatmul.msk.f32.gmra.mxu1 %vm4371_vm13, %v2955_v52  ;;  %vm4381_vm13 = vnez %v4338_v13 }
 0x506   :  { %2454 = vmatmul.msk.f32.gmra.mxu1 %vm4372_vm12, %v2961_v57 }
 0x56b   :  { %v901_v40 = vpop.f32.mrf.mxu1 }
 0x56c   :  { %v913_v8 = vmul.f32 %v901_v40, %v3139_v18  ;;  %v70_v18 = vld [vmem:[%s4377_s21] sm:$0xff]  ;;  %v963_v40 = vpop.permute.xlu2 %962 }
 0x56e   :  { %2455 = vmatmul.msk.f32.vlgmr.msra.gmra.mxu0 %vm4373_vm10, %v913_v8  ;;  %v965_v8 = vadd.f32 %v963_v40, %v70_v18  ;;  %vm4383_vm10 = vmmov %vm4380_vm3 }
 0x570   :  { %vm967_vm9 = vcmp.gt.f32.partialorder %v965_v8, 0.0 }
 0x573   :  { %v904_v21 = vpop.f32.mrf.mxu1 }
 0x574   :  { %v914_v20 = vmul.f32 %v904_v21, %v3127_v46  ;;  %v71_v46 = vld [vmem:[%s4377_s21 + $0x8] sm:$0xff] }
 0x575   :  { %v966_v21 = vadd.f32 %v963_v40, %v71_v46 }
 0x576   :  { %2456 = vmatmul.msk.f32.gmra.mxu0 %vm4374_vm14, %v914_v20  ;;  %v969_v20 = vmul.f32 1.442695, %v965_v8  ;;  %vm4384_vm14 = vnez %v4342_v4 }
 0x577   :  { %vm968_vm7 = vcmp.gt.f32.partialorder %v966_v21, 0.0 }
 0x578   :  { %2651 = vpow2.f32 %v969_v20 }
 0x57b   :  { %v907_v19 = vpop.f32.mrf.mxu1 }
 0x57c   :  { %v915_v14 = vmul.f32 %v907_v19, %v3117_v47  ;;  %v971_v47 = vmul.f32 1.442695, %v966_v21  ;;  %v1118_v19 = vpop.permute.xlu2 %1117 }
 0x57d   :  { %v1120_v39 = vadd.f32 %v1118_v19, %v70_v18 }
 0x57e   :  { %2465 = vmatmul.msk.f32.vlgmr.msra.gmra.mxu2 %vm4375_vm15, %v915_v14  ;;  %v2652_v14 = vpop.eup %2651  ;;  %2653 = vpow2.f32 %v971_v47  ;;  %v961_v47 = vld [vmem:[%s4191_s10 + $0x8] sm:$0xff]  ;;  %vm4386_vm15 = vnez %v4346_v6 }
 0x57f   :  { %v1124_v25 = vmul.f32 1.442695, %v1120_v39  ;;  %1027 = vmatpush.msrb.mxu3 %v961_v47  ;;  %vm1122_vm5 = vcmp.gt.f32.partialorder %v1120_v39, 0.0 }
 0x581   :  { %2655 = vpow2.f32 %v1124_v25 }
 0x583   :  { %v910_v48 = vpop.f32.mrf.mxu1 }
 0x584   :  { %v916_v50 = vmul.f32 %v910_v48, %v3092_v54  ;;  %v2459_v54 = vadd.f32 -1.0, %v2652_v14  ;;  %v2654_v44 = vpop.eup %2653  ;;  %v1121_v14 = vadd.f32 %v1118_v19, %v71_v46  ;;  %v2698_v46 = vld [vmem:[%s4279_s22] sm:$0xff] }
 0x585   :  { %v2460_v40 = vadd.f32 -1.0, %v2654_v44  ;;  %v1132_v44 = vld [vmem:[%s4191_s10 + $0x28] sm:$0xff] }
 0x586   :  { %2466 = vmatmul.msk.f32.gmra.mxu2 %vm4376_vm0, %v916_v50  ;;  %v977_v50 = vld [vmem:[%s4191_s10 + $0x10] sm:$0xff]  ;;  %v975_v48 = vsel %vm967_vm9, %v965_v8, %v2459_v54  ;;  %v960_v8 = vld [vmem:[%s4191_s10] sm:$0xff]  ;;  %v1126_v18 = vmul.f32 1.442695, %v1121_v14  ;;  %v2697_v54 = vld [vmem:[%s4279_s22 + $0x8] sm:$0xff]  ;;  %vm1123_vm12 = vcmp.gt.f32.partialorder %v1121_v14, 0.0  ;;  %vm4387_vm0 = vnez %v4348_v35 }
 0x587   :  { %999 = vmatpush.msrb.mxu0 %v977_v50  ;;  %v976_v20 = vsel %vm968_vm7, %v966_v21, %v2460_v40  ;;  %1028 = vmatpush.msrb.mxu3 %v960_v8  ;;  %v2656_v25 = vpop.eup %2655  ;;  %vm4388_vm9 = vcmask 130048   ;;  %vm4390_vm7 = vnez %v4356_v43 }
 0x588   :  { %2461 = vmatmul.msk.f32.vlgmr.msrb.gmra.mxu0 %vm4378_vm8, %v975_v48  ;;  %v2471_v21 = vadd.f32 -1.0, %v2656_v25  ;;  %2657 = vpow2.f32 %v1126_v18  ;;  %v1085_v48 = vld [vmem:[%s4191_s10 + $0x20] sm:$0xff]  ;;  %vm4389_vm8 = vnez %v4354_v9 }
 0x589   :  { %1154 = vmatpush.msra.mxu0 %v1132_v44  ;;  %1106 = vmatpush.msrb.mxu1 %v1085_v48  ;;  %v1167_v48 = vld [vmem:[%s4193_s12 + $0x10] sm:$0xff] }
 0x58a   :  { %v1130_v50 = vsel %vm1122_vm5, %v1120_v39, %v2471_v21  ;;  %vm4392_vm5 = vnez %v4363_v42  ;;  %1219 = vmatpush.msrb.mxu2 %v1167_v48 }
 0x58b   :  { %1380 = vmatpush.msrb.mxu0 %v2697_v54 }
 0x58d   :  { %1381 = vmatpush.msrb.mxu0 %v2698_v46 }
 0x58e   :  { %v2658_v39 = vpop.eup %2657 }
 0x58f   :  { %v2472_v19 = vadd.f32 -1.0, %v2658_v39  ;;  %v1166_v39 = vld [vmem:[%s4193_s12 + $0x8] sm:$0xff] }
 0x590   :  { %2462 = vmatmul.msk.f32.gmra.mxu0 %vm4379_vm11, %v976_v20  ;;  %vm4391_vm11 = vnez %v4358_v15  ;;  %1220 = vmatpush.msrb.mxu2 %v1166_v39 }
 0x591   :  { %v1131_v40 = vsel %vm1123_vm12, %v1121_v14, %v2472_v19  ;;  %vm4394_vm12 = vnez %v4287_v2  ;;  %v1165_v19 = vld [vmem:[%s4193_s12] sm:$0xff] }
 0x592   :  { %1221 = vmatpush.msrb.mxu2 %v1165_v19 }
 0x598   :  { %2473 = vmatmul.msk.f32.vlgmr.msra.gmra.mxu0 %vm4380_vm3, %v1130_v50  ;;  %vm4393_vm3 = vmmov %vm4388_vm9 }
 0x599   :  { %2517 = vmatpush.msk.msra.mxu0 %vm3342_vm6, %v4336_v41  ;;  %vm4382_vm6 = vnez %v4340_v36  ;;  %v1084_v36 = vld [vmem:[%s4191_s10 + $0x18] sm:$0xff] }
 0x59a   :  { %1107 = vmatpush.msrb.mxu1 %v1084_v36 }
 0x59b   :  { %2518 = vmatpush.msk.msra.mxu0 %vm3347_vm1, %v4336_v41  ;;  %vm4385_vm1 = vnez %v4344_v27 }
 0x59d   :  { %2519 = vmatpush.msk.msra.mxu0 %vm4381_vm13, %v4336_v41 }
 0x59f   :  { %2520 = vmatpush.msk.msra.mxu0 %vm4382_vm6, %v4336_v41  ;;  %vm4395_vm6 = vmmov %vm4393_vm3 }
 0x5a0   :  { %2474 = vmatmul.msk.f32.gmra.mxu0 %vm4383_vm10, %v1131_v40  ;;  %vm4396_vm10 = vnez %v4285_v0 }
 0x5a1   :  { %2521 = vmatpush.msk.msra.mxu0 %vm4384_vm14, %v4336_v41  ;;  %vm4397_vm14 = vnez %v4283_v62 }
 0x5a3   :  { %2522 = vmatpush.msk.msra.mxu0 %vm4385_vm1, %v4336_v41  ;;  %vm4398_vm1 = vnez %v4281_v58 }
 0x5a5   :  { %2523 = vmatpush.msk.msra.mxu0 %vm4386_vm15, %v4336_v41  ;;  %vm4399_vm15 = vmmov %vm4393_vm3 }
 0x5a7   :  { %2524 = vmatpush.msk.msra.mxu0 %vm4387_vm0, %v4336_v41 }
 0x5a8   :  { %2493 = vmatmul.msk.f32.vlgmr.msrb.gmra.mxu0 %vm4388_vm9, %v2934_v37  ;;  %vm4400_vm9 = vmmov %vm4393_vm3 }
 0x5a9   :  { %2525 = vmatpush.msk.msra.mxu0 %vm4389_vm8, %v4336_v41  ;;  %vm4401_vm8 = vmmov %vm4393_vm3 }
 0x5ab   :  { %2526 = vmatpush.msk.msra.mxu0 %vm4390_vm7, %v4336_v41 }
 0x5ad   :  { %2527 = vmatpush.msk.msra.mxu0 %vm4391_vm11, %v4336_v41 }
 0x5af   :  { %2528 = vmatpush.msk.msra.mxu0 %vm4392_vm5, %v4336_v41 }
 0x5b0   :  { %2494 = vmatmul.msk.f32.gmra.mxu0 %vm4393_vm3, %v2947_v45 }
 0x5b1   :  { %2529 = vmatpush.msk.msra.mxu0 %vm4394_vm12, %v4336_v41  ;;  %vm4402_vm12 = vmmov %vm4393_vm3 }
 0x5b3   :  { %2530 = vmatpush.msk.msra.mxu0 %vm4396_vm10, %v4336_v41 }
 0x5b5   :  { %2531 = vmatpush.msk.msra.mxu0 %vm4397_vm14, %v4336_v41  ;;  %vm4406_vm14 = vmmov %vm4393_vm3 }
 0x5b7   :  { %2532 = vmatpush.msk.msra.mxu0 %vm4398_vm1, %v4336_v41  ;;  %vm4407_vm1 = vmmov %vm4393_vm3 }
 0x5b8   :  { %2495 = vmatmul.msk.f32.gmra.mxu0 %vm4399_vm15, %v2955_v52  ;;  %vm4409_vm15 = vcmp.eq.f32.partialorder %v3064_v59, %v2899_v29 }
 0x5c0   :  { %2496 = vmatmul.msk.f32.gmra.mxu0 %vm4401_vm8, %v2961_v57  ;;  %vm4412_vm8 = vmmov %vm4407_vm1 }
 0x5eb   :  { %v944_v23 = vpop.f32.mrf.mxu0 }
 0x5ec   :  { %v945_v31 = vadd.f32 %v3543_v24, %v944_v23 }
 0x5ee   :  { %v952_v13 = vmul.f32 1.442695, %v945_v31  ;;  %vm950_vm13 = vcmp.gt.f32.partialorder %v945_v31, 0.0 }
 0x5f0   :  { %2659 = vpow2.f32 %v952_v13 }
 0x5f3   :  { %v947_v4 = vpop.f32.mrf.mxu0 }
 0x5f4   :  { %v948_v27 = vadd.f32 %v3543_v24, %v947_v4  ;;  %v1043_v24 = vpop.permute.xlu1 %1042 }
 0x5f6   :  { %v2660_v6 = vpop.eup %2659  ;;  %v954_v35 = vmul.f32 1.442695, %v948_v27  ;;  %vm951_vm0 = vcmp.gt.f32.partialorder %v948_v27, 0.0 }
 0x5f7   :  { %v2457_v20 = vadd.f32 -1.0, %v2660_v6 }
 0x5f8   :  { %2661 = vpow2.f32 %v954_v35 }
 0x5f9   :  { %v958_v9 = vsel %vm950_vm13, %v945_v31, %v2457_v20 }
 0x5fa   :  { %2463 = vmatmul.msk.f32.vlgmr.msrb.gmra.mxu3 %vm4395_vm6, %v958_v9  ;;  %vm1176_vm6 = vcmask 195584  }
 0x5fe   :  { %v2662_v43 = vpop.eup %2661 }
 0x5ff   :  { %v2458_v47 = vadd.f32 -1.0, %v2662_v43 }
 0x601   :  { %v1068_v2 = vpop.f32.mrf.mxu2  ;;  %v959_v8 = vsel %vm951_vm0, %v948_v27, %v2458_v47  ;;  %vm4411_vm0 = vcmp.eq.f32.partialorder %v3064_v59, %v2870_v17 }
 0x602   :  { %v1069_v14 = vadd.f32 %v1068_v2, %v1043_v24  ;;  %2464 = vmatmul.msk.f32.gmra.mxu3 %vm4400_vm9, %v959_v8  ;;  %v1164_v2 = vld [vmem:[%s4192_s11] sm:$0x7] }
 0x604   :  { %v1076_v0 = vmul.f32 1.442695, %v1069_v14  ;;  %vm1074_vm7 = vcmp.gt.f32.partialorder %v1069_v14, 0.0 }
 0x605   :  { %v1001_v40 = vpop.f32.mrf.mxu0 }
 0x606   :  { %2663 = vpow2.f32 %v1076_v0 }
 0x609   :  { %v1071_v62 = vpop.f32.mrf.mxu2 }
 0x60a   :  { %v1072_v44 = vadd.f32 %v1071_v62, %v1043_v24  ;;  %v4404_v62 = vcvt.s32.f32 %v3463_v51  ;;  %v4410_v51 = vcvt.s32.f32 %v3381_v49 }
 0x60c   :  { %v2664_v58 = vpop.eup %2663  ;;  %v1078_v25 = vmul.f32 1.442695, %v1072_v44  ;;  %vm1075_vm13 = vcmp.gt.f32.partialorder %v1072_v44, 0.0 }
 0x60d   :  { %v2467_v18 = vadd.f32 -1.0, %v2664_v58  ;;  %v1004_v23 = vpop.f32.mrf.mxu0 }
 0x60e   :  { %2665 = vpow2.f32 %v1078_v25  ;;  %v4405_v25 = vmov 0.0  }
 0x60f   :  { %v1082_v21 = vsel %vm1074_vm7, %v1069_v14, %v2467_v18  ;;  %v4403_v14 = vfloor.f32 %v3469_v38  ;;  %v4408_v38 = vfloor.f32 %v3419_v5  ;;  %vm4413_vm7 = vmmov %vm4407_vm1  ;;  %v281_v49 = vsel %vm4392_vm5, 1.0, %v4405_v25 }
 0x610   :  { %2469 = vmatmul.msk.f32.vlgmr.msrb.gmra.mxu1 %vm4393_vm3, %v1082_v21  ;;  %vm4414_vm3 = vmmov %vm4407_vm1 }
 0x611   :  { %v1168_v0 = vmul.f32 16.0, %v4403_v14  ;;  %v1169_v21 = vmul.f32 16.0, %v4408_v38 }
 0x614   :  { %v2666_v54 = vpop.eup %2665 }
 0x615   :  { %v2468_v50 = vadd.f32 -1.0, %v2666_v54  ;;  %v1156_v36 = vpop.f32.mrf.mxu0  ;;  %v1171_v54 = vsub.f32 %v4410_v51, %v1169_v21 }
 0x617   :  { %v1083_v46 = vsel %vm1075_vm13, %v1072_v44, %v2468_v50  ;;  %v1170_v44 = vsub.f32 %v4404_v62, %v1168_v0  ;;  %vm1173_vm9 = vcmp.eq.f32.partialorder %v1171_v54, %v2915_v33  ;;  %vm4415_vm13 = vmmov %vm4407_vm1 }
 0x618   :  { %2470 = vmatmul.msk.f32.gmra.mxu1 %vm4402_vm12, %v1083_v46  ;;  %v3699_v50 = vsel %vm1173_vm9, 1.0, %v4405_v25  ;;  %vm4416_vm12 = vmmov %vm4407_vm1  ;;  %v282_v46 = vsel %vm4391_vm11, 1.0, %v4405_v25 }
 0x619   :  { %vm1172_vm10 = vcmp.eq.f32.partialorder %v1170_v44, %v2915_v33 }
 0x61a   :  { %v3679_v18 = vsel %vm1172_vm10, 1.0, %v4405_v25  ;;  %vm1309_vm10 = vcmask 1042432  }
 0x61b   :  { %2497 = vmatmul.msk.f32.gmra.mxu0 %vm4406_vm14, %v3679_v18  ;;  %vm1276_vm14 = vcmask 23552  }
 0x61d   :  { %v1159_v24 = vpop.f32.mrf.mxu0 }
 0x623   :  { %2498 = vmatmul.msk.f32.gmra.mxu0 %vm4412_vm8, %v3699_v50 }
 0x67d   :  { %v1030_v31 = vpop.f32.mrf.mxu3 }
 0x67e   :  { %v1031_v13 = vadd.f32 %v1030_v31, %v1001_v40 }
 0x685   :  { %v1033_v35 = vpop.f32.mrf.mxu3 }
 0x686   :  { %v1034_v20 = vadd.f32 %v1033_v35, %v1004_v23 }
 0x68d   :  { %v1109_v4 = vpop.f32.mrf.mxu1 }
 0x68e   :  { %v1115_v27 = vadd.f32 %v1109_v4, %v1031_v13 }
 0x690   :  { %v3662_v6 = vadd.f32 %v1156_v36, %v1115_v27 }
 0x692   :  { %2478 = vmatmul.msk.f32.vlgmr.msrb.gmra.mxu2 %vm1176_vm6, %v3662_v6 }
 0x695   :  { %v1112_v9 = vpop.f32.mrf.mxu1 }
 0x696   :  { %v1116_v43 = vadd.f32 %v1112_v9, %v1034_v20 }
 0x698   :  { %v3665_v47 = vadd.f32 %v1159_v24, %v1116_v43  ;;  %v3747_v24 = vpop.f32.mrf.mxu0 }
 0x69a   :  { %2475 = vmatpush.xpose.msk.msra.mxu3 %vm1176_vm6, %v3665_v47  ;;  %2479 = vmatmul.msk.f32.gmra.mxu2 %vm1176_vm6, %v3665_v47 }
 0x69e   :  { %2476 = vmatpush.xpose.msk.msra.mxu3 %vm1176_vm6, %v3662_v6 }
 0x6a1   :  { %2477 = vmatmul.msk.f32.vlgmr.msra.gmra.mxu3 %vm1176_vm6, %v1164_v2  ;;  %vm4417_vm6 = vmmov %vm4407_vm1 }
 0x715   :  { %v1223_v8 = vpop.f32.mrf.mxu2 }
 0x71d   :  { %v1226_v58 = vpop.f32.mrf.mxu2 }
 0x71e   :  { %1249 = vmatpush.msrb.mxu3 %v1226_v58 }
 0x720   :  { %1250 = vmatpush.msrb.mxu3 %v1223_v8  ;;  %v3749_v8 = vpop.f32.mrf.mxu0 }
 0x721   :  { %2480 = vmatmul.msk.f32.vlgmr.msrb.gmra.mxu3 %vm4407_vm1, %v2934_v37  ;;  %vm4418_vm1 = vcmp.eq.f32.partialorder %v2901_v30, %v2899_v29 }
 0x722   :  { %2509 = vmatpush.msk.msra.mxu3 %vm4409_vm15, %v4336_v41  ;;  %vm4419_vm15 = vcmp.eq.f32.partialorder %v2901_v30, %v2870_v17 }
 0x724   :  { %2510 = vmatpush.msk.msra.mxu3 %vm4411_vm0, %v4336_v41  ;;  %v1203_v33 = vpop.f32.mrf.mxu3  ;;  %vm4420_vm0 = vmmov %vm4414_vm3 }
 0x725   :  { %2486 = vmatpush.msk.msra.mxu1 %vm1309_vm10, %v1203_v33 }
 0x726   :  { %2487 = vmatmul.msk.f32.vlgmr.msra.gmra.mxu1 %vm1276_vm14, %v2973_v60 }
 0x727   :  { %2513 = vmatpush.msk.msrb.mxu1 %vm4418_vm1, %v4336_v41  ;;  %vm4422_vm1 = vmmov %vm4420_vm0 }
 0x728   :  { %v3751_v14 = vpop.f32.mrf.mxu0 }
 0x729   :  { %2481 = vmatmul.msk.f32.gmra.mxu3 %vm4413_vm7, %v2947_v45  ;;  %2514 = vmatpush.msk.msrb.mxu1 %vm4419_vm15, %v4336_v41  ;;  %vm4423_vm15 = vmmov %vm4420_vm0 }
 0x72e   :  { %2488 = vmatmul.msk.f32.gmra.mxu1 %vm1276_vm14, %v2993_v63 }
 0x730   :  { %v3753_v62 = vpop.f32.mrf.mxu0 }
 0x731   :  { %2482 = vmatmul.msk.f32.gmra.mxu3 %vm4414_vm3, %v2955_v52  ;;  %vm1404_vm11 = vcmp.gt.f32.partialorder %v3753_v62, 0.5  ;;  %vm4421_vm3 = vmmov %vm4420_vm0 }
 0x736   :  { %2489 = vmatmul.msk.f32.gmra.mxu1 %vm1276_vm14, %v3005_v1 }
 0x738   :  { %v3756_v51 = vpop.f32.mrf.mxu0 }
 0x739   :  { %2483 = vmatmul.msk.f32.gmra.mxu3 %vm4415_vm13, %v2961_v57  ;;  %vm1405_vm9 = vcmp.gt.f32.partialorder %v3756_v51, 0.5  ;;  %vm1402_vm13 = vcmp.gt.f32.partialorder %v3749_v8, 0.5 }
 0x73e   :  { %2490 = vmatmul.msk.f32.gmra.mxu1 %vm1276_vm14, %v3017_v3 }
 0x741   :  { %2484 = vmatmul.msk.f32.gmra.mxu3 %vm4416_vm12, %v3679_v18 }
 0x746   :  { %2491 = vmatmul.msk.f32.gmra.mxu1 %vm1276_vm14, %v281_v49 }
 0x749   :  { %2485 = vmatmul.msk.f32.gmra.mxu3 %vm4417_vm6, %v3699_v50 }
 0x74e   :  { %2492 = vmatmul.msk.f32.gmra.mxu1 %vm1276_vm14, %v282_v46 }
 0x7a3   :  { %v1330_v43 = vpop.f32.mrf.mxu1 }
 0x7a4   :  { %v1252_v5 = vpop.f32.mrf.mxu3 }
 0x7a5   :  { %v1270_v15 = vmul.f32 %v1252_v5, %v2973_v60 }
 0x7a7   :  { %v1277_v20 = vsel %vm1276_vm14, %v1270_v15, 0.0 }
 0x7ab   :  { %v1333_v2 = vpop.f32.mrf.mxu1 }
 0x7ac   :  { %v1255_v48 = vpop.f32.mrf.mxu3 }
 0x7ad   :  { %v1271_v42 = vmul.f32 %v1255_v48, %v2993_v63 }
 0x7af   :  { %v1280_v36 = vsel %vm1276_vm14, %v1271_v42, 0.0 }
 0x7b3   :  { %v1336_v60 = vpop.f32.mrf.mxu1 }
 0x7b4   :  { %v1258_v39 = vpop.f32.mrf.mxu3 }
 0x7b5   :  { %v1272_v63 = vmul.f32 %v1258_v39, %v3005_v1 }
 0x7b7   :  { %v1283_v9 = vsel %vm1276_vm14, %v1272_v63, 0.0 }
 0x7bb   :  { %v1339_v0 = vpop.f32.mrf.mxu1 }
 0x7bc   :  { %v1261_v19 = vpop.f32.mrf.mxu3 }
 0x7bd   :  { %v1273_v40 = vmul.f32 %v1261_v19, %v3017_v3 }
 0x7bf   :  { %v1286_v23 = vsel %vm1276_vm14, %v1273_v40, 0.0 }
 0x7c0   :  { %1287 = vadd.xlane.f32.xlu2 %v1286_v23 }
 0x7c3   :  { %v1342_v1 = vpop.f32.mrf.mxu1 }
 0x7c4   :  { %v1264_v31 = vpop.f32.mrf.mxu3 }
 0x7c5   :  { %v1274_v13 = vmul.f32 %v1264_v31, %v281_v49 }
 0x7c7   :  { %v1289_v4 = vsel %vm1276_vm14, %v1274_v13, 0.0  ;;  %v3765_v13 = vpop.f32.mrf.mxu0 }
 0x7c8   :  { %1281 = vadd.xlane.f32.xlu2 %v1280_v36  ;;  %1290 = vadd.xlane.f32.xlu0 %v1289_v4  ;;  %vm1406_vm12 = vcmp.gt.f32.partialorder %v3765_v13, 0.5  ;;  %v1955_v13 = vld [vmem:[%s4186_s5] sm:$0xff] }
 0x7cb   :  { %v1345_v23 = vpop.f32.mrf.mxu1 }
 0x7cc   :  { %v1267_v27 = vpop.f32.mrf.mxu3 }
 0x7cd   :  { %v1275_v35 = vmul.f32 %v1267_v27, %v282_v46 }
 0x7cf   :  { %v1292_v3 = vsel %vm1276_vm14, %v1275_v35, 0.0  ;;  %vm1401_vm14 = vcmp.gt.f32.partialorder %v3747_v24, 0.5 }
 0x7d0   :  { %1278 = vadd.xlane.f32.xlu0 %v1277_v20  ;;  %1293 = vadd.xlane.f32.xlu1 %v1292_v3 }
 0x7d8   :  { %1284 = vadd.xlane.f32.xlu1 %v1283_v9 }
 0x833   :  { %v1288_v44 = vpop.xlane.xlu2 %1287 }
 0x834   :  { %v1340_v58 = vadd.f32 %v1339_v0, %v1288_v44 }
 0x836   :  { %v1357_v38 = vmul.f32 0.2, %v1340_v58  ;;  %vm1351_vm5 = vcmp.ge.f32.partialorder %v1340_v58, 0.0 }
 0x838   :  { %v1363_v21 = vsel %vm1351_vm5, %v1340_v58, %v1357_v38  ;;  %vm4424_vm5 = vmmov %vm4420_vm0 }
 0x839   :  { %v1410_v54 = vsel %vm1404_vm11, %v1363_v21, -1e+30 }
 0x83a   :  { %v1422_v33 = vsel %vm4420_vm0, %v1410_v54, -inf }
 0x83b   :  { %v1282_v49 = vpop.xlane.xlu2 %1281  ;;  %1423 = vmax.xlane.f32.xlu0 %v1422_v33  ;;  %v1291_v5 = vpop.xlane.xlu0 %1290 }
 0x83c   :  { %v1334_v46 = vadd.f32 %v1333_v2, %v1282_v49  ;;  %v1343_v48 = vadd.f32 %v1342_v1, %v1291_v5 }
 0x83e   :  { %v1358_v39 = vmul.f32 0.2, %v1343_v48  ;;  %vm1352_vm8 = vcmp.ge.f32.partialorder %v1343_v48, 0.0  ;;  %v1355_v19 = vmul.f32 0.2, %v1334_v46  ;;  %vm1349_vm7 = vcmp.ge.f32.partialorder %v1334_v46, 0.0 }
 0x840   :  { %v1364_v40 = vsel %vm1352_vm8, %v1343_v48, %v1358_v39  ;;  %v1361_v35 = vsel %vm1349_vm7, %v1334_v46, %v1355_v19  ;;  %vm1403_vm8 = vcmp.gt.f32.partialorder %v3751_v14, 0.5  ;;  %vm4425_vm7 = vmmov %vm4422_vm1  ;;  %v1956_v14 = vld [vmem:[%s4186_s5 + $0x8] sm:$0xff] }
 0x841   :  { %v1411_v42 = vsel %vm1405_vm9, %v1364_v40, -1e+30  ;;  %v1408_v63 = vsel %vm1402_vm13, %v1361_v35, -1e+30 }
 0x842   :  { %v1425_v31 = vsel %vm4421_vm3, %v1411_v42, -inf  ;;  %v1416_v44 = vsel %vm4422_vm1, %v1408_v63, -inf  ;;  %vm4426_vm3 = vmmov %vm4422_vm1 }
 0x843   :  { %1426 = vmax.xlane.f32.xlu2 %v1425_v31  ;;  %v1279_v36 = vpop.xlane.xlu0 %1278  ;;  %v1294_v4 = vpop.xlane.xlu1 %1293 }
 0x844   :  { %v1331_v15 = vadd.f32 %v1330_v43, %v1279_v36  ;;  %v1346_v27 = vadd.f32 %v1345_v23, %v1294_v4 }
 0x846   :  { %v1354_v20 = vmul.f32 0.2, %v1331_v15  ;;  %v1359_v3 = vmul.f32 0.2, %v1346_v27  ;;  %vm1348_vm6 = vcmp.ge.f32.partialorder %v1331_v15, 0.0  ;;  %vm1353_vm10 = vcmp.ge.f32.partialorder %v1346_v27, 0.0 }
 0x848   :  { %v1360_v9 = vsel %vm1348_vm6, %v1331_v15, %v1354_v20  ;;  %v1365_v2 = vsel %vm1353_vm10, %v1346_v27, %v1359_v3  ;;  %vm4429_vm6 = vmmov %vm4422_vm1 }
 0x849   :  { %v1407_v43 = vsel %vm1401_vm14, %v1360_v9, -1e+30  ;;  %v1412_v0 = vsel %vm1406_vm12, %v1365_v2, -1e+30  ;;  %vm4431_vm10 = vmmov %vm4422_vm1 }
 0x84a   :  { %v1413_v58 = vsel %vm4423_vm15, %v1407_v43, -inf  ;;  %v1428_v38 = vsel %vm4424_vm5, %v1412_v0, -inf }
 0x84b   :  { %1417 = vmax.xlane.f32.xlu2 %v1416_v44  ;;  %1414 = vmax.xlane.f32.xlu0 %v1413_v58  ;;  %v1285_v1 = vpop.xlane.xlu1 %1284 }
 0x84c   :  { %1429 = vmax.xlane.f32.xlu1 %v1428_v38  ;;  %v1337_v21 = vadd.f32 %v1336_v60, %v1285_v1 }
 0x84e   :  { %v1356_v33 = vmul.f32 0.2, %v1337_v21  ;;  %vm1350_vm0 = vcmp.ge.f32.partialorder %v1337_v21, 0.0 }
 0x850   :  { %v1362_v49 = vsel %vm1350_vm0, %v1337_v21, %v1356_v33 }
 0x851   :  { %v1409_v5 = vsel %vm1403_vm8, %v1362_v49, -1e+30 }
 0x852   :  { %v1419_v46 = vsel %vm4425_vm7, %v1409_v5, -inf }
 0x854   :  { %1420 = vmax.xlane.f32.xlu1 %v1419_v46 }
 0x8ae   :  { %v1424_v48 = vpop.xlane.xlu0 %1423 }
 0x8af   :  { %v1434_v39 = vsub.f32 %v1410_v54, %v1424_v48 }
 0x8b1   :  { %v1443_v19 = vmul.f32 1.442695, %v1434_v39 }
 0x8b3   :  { %2667 = vpow2.f32 %v1443_v19  ;;  %v2623_v19 = vpack.i.bf16 %v3662_v6, %v3665_v47 }
 0x8b6   :  { %v1427_v40 = vpop.xlane.xlu2 %1426 }
 0x8b7   :  { %v1435_v23 = vsub.f32 %v1411_v42, %v1427_v40  ;;  %v1933_v40 = vld [vmem:[%s4432_s4 + $0x10] sm:$0xff] }
 0x8b9   :  { %v2668_v31 = vpop.eup %2667  ;;  %v1445_v36 = vmul.f32 1.442695, %v1435_v23  ;;  %v1931_v23 = vld [vmem:[%s4432_s4] sm:$0xff] }
 0x8ba   :  { %v3785_v60 = vsel %vm1404_vm11, %v2668_v31, 0.0  ;;  %vm4427_vm11 = vmmov %vm4422_vm1  ;;  %v2311_v31 = vld [vmem:[#allocation2] sm:$0x1] }
 0x8bb   :  { %2669 = vpow2.f32 %v1445_v36  ;;  %v1464_v4 = vsel %vm4426_vm3, %v3785_v60, 0.0  ;;  %v1957_v36 = vld [vmem:[%s4186_s5 + $0x10] sm:$0xff] }
 0x8bc   :  { %1465 = vadd.xlane.f32.xlu0 %v1464_v4  ;;  %v1934_v4 = vld [vmem:[%s4432_s4 + $0x18] sm:$0xff] }
 0x8be   :  { %v1418_v15 = vpop.xlane.xlu2 %1417  ;;  %v1415_v27 = vpop.xlane.xlu0 %1414 }
 0x8bf   :  { %v1432_v35 = vsub.f32 %v1408_v63, %v1418_v15  ;;  %v1431_v20 = vsub.f32 %v1407_v43, %v1415_v27  ;;  %v1430_v54 = vpop.xlane.xlu1 %1429 }
 0x8c0   :  { %v1436_v3 = vsub.f32 %v1412_v0, %v1430_v54 }
 0x8c1   :  { %v2670_v9 = vpop.eup %2669  ;;  %v1439_v2 = vmul.f32 1.442695, %v1432_v35  ;;  %v1437_v42 = vmul.f32 1.442695, %v1431_v20 }
 0x8c2   :  { %v1447_v44 = vmul.f32 1.442695, %v1436_v3  ;;  %v3791_v62 = vsel %vm1405_vm9, %v2670_v9, 0.0  ;;  %vm4428_vm9 = vmmov %vm4422_vm1 }
 0x8c3   :  { %2671 = vpow2.f32 %v1439_v2  ;;  %v1467_v58 = vsel %vm4427_vm11, %v3791_v62, 0.0 }
 0x8c4   :  { %2673 = vpow2.f32 %v1437_v42  ;;  %1468 = vadd.xlane.f32.xlu2 %v1467_v58 }
 0x8c5   :  { %2675 = vpow2.f32 %v1447_v44 }
 0x8c7   :  { %v1421_v38 = vpop.xlane.xlu1 %1420 }
 0x8c8   :  { %v1433_v63 = vsub.f32 %v1409_v5, %v1421_v38 }
 0x8c9   :  { %v2672_v43 = vpop.eup %2671 }
 0x8ca   :  { %v2674_v1 = vpop.eup %2673  ;;  %v1441_v0 = vmul.f32 1.442695, %v1433_v63  ;;  %v3797_v21 = vsel %vm1402_vm13, %v2672_v43, 0.0  ;;  %vm4430_vm13 = vmmov %vm4422_vm1 }
 0x8cb   :  { %v2676_v33 = vpop.eup %2675  ;;  %v1458_v51 = vsel %vm4428_vm9, %v3797_v21, 0.0  ;;  %v3803_v49 = vsel %vm1401_vm14, %v2674_v1, 0.0 }
 0x8cc   :  { %2677 = vpow2.f32 %v1441_v0  ;;  %1459 = vadd.xlane.f32.xlu2 %v1458_v51  ;;  %v1455_v5 = vsel %vm4429_vm6, %v3803_v49, 0.0  ;;  %v3809_v46 = vsel %vm1406_vm12, %v2676_v33, 0.0 }
 0x8cd   :  { %1456 = vadd.xlane.f32.xlu0 %v1455_v5  ;;  %v1470_v8 = vsel %vm4430_vm13, %v3809_v46, 0.0 }
 0x8ce   :  { %1471 = vadd.xlane.f32.xlu1 %v1470_v8 }
 0x8d2   :  { %v2678_v48 = vpop.eup %2677 }
 0x8d3   :  { %v3815_v24 = vsel %vm1403_vm8, %v2678_v48, 0.0 }
 0x8d4   :  { %v1461_v39 = vsel %vm4431_vm10, %v3815_v24, 0.0 }
 0x8d6   :  { %1462 = vadd.xlane.f32.xlu1 %v1461_v39 }
 0x8e1   :  { %1960 = vperm.xlu0 %2611, %v1955_v13  }
 0x8e4   :  { %2624 = vrot.lane.b32.xlu2 %v2623_v19, %s2728_s7 }
 0x8e9   :  { %1963 = vperm.xlu0 %2611, %v1956_v14  }
 0x8ef   :  { %2619 = vrot.lane.b32.xlu1 %v2623_v19, %s2732_s19 }
 0x8f1   :  { %1942 = vperm.xlu0 %2611, %v1933_v40  }
 0x8f7   :  { %1936 = vperm.xlu1 %2612, %v1931_v23  }
 0x8f9   :  { %2314 = vperm.xlu0 %2611, %v2311_v31  }
 0x8ff   :  { %1966 = vperm.xlu1 %2612, %v1957_v36  }
 0x907   :  { %1945 = vperm.xlu1 %2612, %v1934_v4  }
 0x92f   :  { %v1466_v15 = vpop.xlane.xlu0 %1465 }
 0x930   :  { %v3840_v27 = vadd.f32 1e-16, %v1466_v15 }
 0x932   :  { %2679 = vrcp.f32 %v3840_v27  ;;  %v1533_v4 = vand.u32 2147483647, %v3840_v27  ;;  %v1535_v15 = vand.u32 2147483648, %v3840_v27  ;;  %vm1529_vm0 = vweird.f32 %v3840_v27 }
 0x934   :  { %vm3894_vm7 = vcmp.eq.f32.partialorder %v1533_v4, 8.507059e+37 }
 0x937   :  { %v1469_v35 = vpop.xlane.xlu2 %1468 }
 0x938   :  { %v3843_v20 = vadd.f32 1e-16, %v1469_v35  ;;  %v3846_v54 = vpop.eup %2679 }
 0x939   :  { %v1525_v44 = vmul.f32 %v3846_v54, %v3840_v27  ;;  %vm1530_vm14 = vweird.f32 %v3846_v54 }
 0x93a   :  { %2681 = vrcp.f32 %v3843_v20  ;;  %vm1544_vm1 = vweird.f32 %v3843_v20  ;;  %vm3890_vm8 = vmor %vm1529_vm0, %vm1530_vm14 }
 0x93b   :  { %v1526_v0 = vsub.f32 1.0, %v1525_v44 }
 0x93d   :  { %v1527_v19 = vmul.f32 %v3846_v54, %v1526_v0  ;;  %v1548_v0 = vand.u32 2147483647, %v3843_v20 }
 0x93f   :  { %v1460_v3 = vpop.xlane.xlu2 %1459  ;;  %vm1549_vm6 = vcmp.eq.f32.partialorder %v1548_v0, 8.507059e+37 }
 0x940   :  { %v3848_v9 = vpop.eup %2681  ;;  %v3850_v2 = vadd.f32 1e-16, %v1460_v3  ;;  %v1457_v42 = vpop.xlane.xlu0 %1456  ;;  %v1550_v3 = vand.u32 2147483648, %v3843_v20 }
 0x941   :  { %v1540_v58 = vmul.f32 %v3848_v9, %v3843_v20  ;;  %v3856_v38 = vadd.f32 1e-16, %v1457_v42  ;;  %v1472_v63 = vpop.xlane.xlu1 %1471  ;;  %vm1545_vm12 = vweird.f32 %v3848_v9 }
 0x942   :  { %2683 = vrcp.f32 %v3850_v2  ;;  %v1478_v43 = vadd.f32 1e-16, %v1472_v63  ;;  %vm3882_vm5 = vmor %vm1544_vm1, %vm1545_vm12  ;;  %vm1499_vm13 = vweird.f32 %v3850_v2 }
 0x943   :  { %2685 = vrcp.f32 %v3856_v38  ;;  %v1541_v1 = vsub.f32 1.0, %v1540_v58  ;;  %v1528_v58 = vadd.f32 %v3846_v54, %v1527_v19 }
 0x944   :  { %2687 = vrcp.f32 %v1478_v43  ;;  %v1565_v63 = vand.u32 2147483648, %v1478_v43  ;;  %vm1559_vm3 = vweird.f32 %v1478_v43 }
 0x945   :  { %v1542_v8 = vmul.f32 %v3848_v9, %v1541_v1  ;;  %v1563_v1 = vand.u32 2147483647, %v1478_v43 }
 0x947   :  { %v2625_v33 = vpop.permute.xlu2 %2624  ;;  %v1543_v35 = vadd.f32 %v3848_v9, %v1542_v8  ;;  %vm1564_vm9 = vcmp.eq.f32.partialorder %v1563_v1, 8.507059e+37  ;;  %v1505_v1 = vand.u32 2147483648, %v3850_v2 }
 0x948   :  { %v3860_v51 = vpop.eup %2683  ;;  %v2626_v5 = vunpack.i.l.bf16 %v2625_v33  ;;  %v2627_v40 = vunpack.i.h.bf16 %v2625_v33 }
 0x949   :  { %v3863_v48 = vpop.eup %2685  ;;  %v1495_v39 = vmul.f32 %v3860_v51, %v3850_v2  ;;  %v1463_v13 = vpop.xlane.xlu1 %1462  ;;  %vm1500_vm10 = vweird.f32 %v3860_v51 }
 0x94a   :  { %v2688_v14 = vpop.eup %2687  ;;  %v3868_v23 = vadd.f32 1e-16, %v1463_v13  ;;  %1873 = vmatpush.msrb.mxu0 %v2626_v5  ;;  %v1480_v31 = vmul.f32 %v3863_v48, %v3856_v38  ;;  %v1551_v13 = vor.u32 1.1754944e-38, %v1550_v3  ;;  %vm1485_vm12 = vweird.f32 %v3863_v48  ;;  %vm3927_vm1 = vmor %vm1499_vm13, %vm1500_vm10 }
 0x94b   :  { %v1555_v36 = vmul.f32 %v2688_v14, %v1478_v43  ;;  %v1496_v42 = vsub.f32 1.0, %v1495_v39  ;;  %vm1560_vm15 = vweird.f32 %v2688_v14  ;;  %v1547_v39 = vsel %vm3882_vm5, %v3848_v9, %v1543_v35 }
 0x94c   :  { %2689 = vrcp.f32 %v3868_v23  ;;  %1874 = vmatpush.msrb.mxu0 %v2627_v40  ;;  %v1481_v33 = vsub.f32 1.0, %v1480_v31  ;;  %v1532_v31 = vsel %vm3890_vm8, %v3846_v54, %v1528_v58  ;;  %vm1561_vm11 = vmor %vm1559_vm3, %vm1560_vm15  ;;  %v1566_v9 = vor.u32 1.1754944e-38, %v1565_v63 }
 0x94d   :  { %v1556_v44 = vsub.f32 1.0, %v1555_v36  ;;  %v1497_v27 = vmul.f32 %v3860_v51, %v1496_v42  ;;  %v1536_v35 = vor.u32 1.1754944e-38, %v1535_v15  ;;  %v1503_v54 = vand.u32 2147483647, %v3850_v2 }
 0x94e   :  { %v1482_v8 = vmul.f32 %v3863_v48, %v1481_v33  ;;  %v1520_v63 = vand.u32 2147483648, %v3868_v23  ;;  %vm1484_vm15 = vweird.f32 %v3856_v38  ;;  %vm1514_vm5 = vweird.f32 %v3868_v23 }
 0x94f   :  { %v1557_v5 = vmul.f32 %v2688_v14, %v1556_v44  ;;  %v1552_v44 = vsel %vm1549_vm6, %v1551_v13, %v1547_v39  ;;  %v1498_v15 = vadd.f32 %v3860_v51, %v1497_v27  ;;  %v1490_v13 = vand.u32 2147483648, %v3856_v38  ;;  %vm3938_vm0 = vmor %vm1484_vm15, %vm1485_vm12 }
 0x950   :  { %v1483_v33 = vadd.f32 %v3863_v48, %v1482_v8  ;;  %v1488_v2 = vand.u32 2147483647, %v3856_v38  ;;  %vm1504_vm3 = vcmp.eq.f32.partialorder %v1503_v54, 8.507059e+37  ;;  %vm4443_vm6 = vcmp.eq.f32.partialorder %v3070_v7, %v2899_v29 }
 0x951   :  { %v1558_v40 = vadd.f32 %v2688_v14, %v1557_v5  ;;  %v1537_v5 = vsel %vm3894_vm7, %v1536_v35, %v1532_v31  ;;  %v1506_v31 = vor.u32 1.1754944e-38, %v1505_v1  ;;  %v1491_v35 = vor.u32 1.1754944e-38, %v1490_v13 }
 0x952   :  { %v2690_v36 = vpop.eup %2689  ;;  %v3923_v39 = vmul.f32 %v1537_v5, %v3785_v60  ;;  %v1502_v60 = vsel %vm3927_vm1, %v3860_v51, %v1498_v15  ;;  %vm4444_vm13 = vcmp.eq.f32.partialorder %v3070_v7, %v2870_v17  ;;  %vm4445_vm10 = vcmp.eq.f32.partialorder %v3123_v53, %v2899_v29 }
 0x953   :  { %v1510_v3 = vmul.f32 %v2690_v36, %v3868_v23  ;;  %v1562_v4 = vsel %vm1561_vm11, %v2688_v14, %v1558_v40  ;;  %v3914_v14 = vmul.f32 %v1552_v44, %v3791_v62  ;;  %vm1515_vm14 = vweird.f32 %v2690_v36  ;;  %v4482_v62 = vld [vmem:[#allocation16_spill] sm:$0xff] }
 0x954   :  { %v1567_v43 = vsel %vm1564_vm9, %v1566_v9, %v1562_v4  ;;  %vm1516_vm8 = vmor %vm1514_vm5, %vm1515_vm14  ;;  %v1521_v40 = vor.u32 1.1754944e-38, %v1520_v63  ;;  %v1507_v51 = vsel %vm1504_vm3, %v1506_v31, %v1502_v60  ;;  %vm1489_vm11 = vcmp.eq.f32.partialorder %v1488_v2, 8.507059e+37 }
 0x955   :  { %v1511_v42 = vsub.f32 1.0, %v1510_v3  ;;  %v3909_v58 = vmul.f32 %v1567_v43, %v3809_v46  ;;  %v1518_v46 = vand.u32 2147483647, %v3868_v23  ;;  %v1487_v23 = vsel %vm3938_vm0, %v3863_v48, %v1483_v33  ;;  %v4481_v33 = vld [vmem:[#allocation15_spill] sm:$0xff] }
 0x956   :  { %v1492_v38 = vsel %vm1489_vm11, %v1491_v35, %v1487_v23  ;;  %v3952_v4 = vmul.f32 %v1507_v51, %v3797_v21  ;;  %vm1569_vm9 = vcmask 392192   ;;  %vm4446_vm12 = vcmp.eq.f32.partialorder %v3123_v53, %v2870_v17  ;;  %v2630_v23 = vld [vmem:[%s4194_s13] ss:$0 sm:$0xff] }
 0x957   :  { %1584 = vmatpush.msra.mxu2 %v3909_v58  ;;  %v1512_v0 = vmul.f32 %v2690_v36, %v1511_v42  ;;  %vm1519_vm7 = vcmp.eq.f32.partialorder %v1518_v46, 8.507059e+37  ;;  %v3956_v44 = vmul.f32 %v1492_v38, %v3803_v49  ;;  %vm4447_vm14 = vcmp.gt.f32.partialorder %v2912_v32, 0.5 }
 0x958   :  { %vm4448_vm1 = vcmask 130048   ;;  %vm4451_vm0 = vnez %v4293_v26  ;;  %vm4454_vm3 = vcmp.gt.f32.partialorder %v2897_v28, 0.5  ;;  %vm4455_vm11 = vnez %v4299_v11  ;;  %v4464_v26 = vld [vmem:[#allocation7_spill] sm:$0xff]  ;;  %v4470_v11 = vld [vmem:[#allocation10_spill] sm:$0xff] }
 0x959   :  { %1585 = vmatpush.msra.mxu2 %v3914_v14  ;;  %v1513_v19 = vadd.f32 %v2690_v36, %v1512_v0  ;;  %vm4449_vm15 = vmmov %vm4448_vm1 }
 0x95a   :  { %vm4450_vm5 = vmmov %vm4448_vm1 }
 0x95b   :  { %1586 = vmatpush.msra.mxu2 %v3923_v39  ;;  %v1517_v27 = vsel %vm1516_vm8, %v2690_v36, %v1513_v19  ;;  %vm4452_vm8 = vnez %v4295_v16  ;;  %v4466_v16 = vld [vmem:[#allocation8_spill] sm:$0xff] }
 0x95c   :  { %v1522_v9 = vsel %vm1519_vm7, %v1521_v40, %v1517_v27  ;;  %vm4453_vm7 = vnez %v4297_v10  ;;  %v4468_v10 = vld [vmem:[#allocation9_spill] sm:$0xff] }
 0x95d   :  { %v3948_v3 = vmul.f32 %v1522_v9, %v3815_v24 }
 0x95f   :  { %1587 = vmatpush.msra.mxu2 %v3948_v3 }
 0x961   :  { %1588 = vmatpush.msra.mxu2 %v3952_v4  ;;  %v2620_v36 = vpop.permute.xlu1 %2619 }
 0x962   :  { %v2621_v48 = vunpack.i.l.bf16 %v2620_v36  ;;  %v2622_v8 = vunpack.i.h.bf16 %v2620_v36 }
 0x963   :  { %1589 = vmatpush.msra.mxu2 %v3956_v44 }
 0x964   :  { %2499 = vmatmul.msk.f32.vlgmr.msra.gmra.mxu2 %vm1569_vm9, %v3145_v22  ;;  %1838 = vmatpush.msra.mxu1 %v2621_v48  ;;  %v1961_v48 = vpop.permute.xlu0 %1960 }
 0x965   :  { %2501 = vmatpush.msk.msrb.mxu2 %vm4443_vm6, %v4336_v41  ;;  %vm4457_vm6 = vmmov %vm4448_vm1 }
 0x966   :  { %1839 = vmatpush.msra.mxu1 %v2622_v8 }
 0x967   :  { %2502 = vmatpush.msk.msrb.mxu2 %vm4444_vm13, %v4336_v41  ;;  %vm4458_vm13 = vmmov %vm4448_vm1 }
 0x969   :  { %2505 = vmatpush.msk.msra.mxu2 %vm4445_vm10, %v4336_v41  ;;  %vm4459_vm10 = vnez %v4301_v55  ;;  %v4473_v55 = vld [vmem:[#allocation11_spill] sm:$0xff] }
 0x96b   :  { %2506 = vmatpush.msk.msra.mxu2 %vm4446_vm12, %v4336_v41  ;;  %vm4460_vm12 = vnez %v4303_v61  ;;  %v4475_v61 = vld [vmem:[#allocation12_spill] sm:$0xff] }
 0x96c   :  { %2500 = vmatmul.msk.f32.gmra.mxu2 %vm1569_vm9, %v3187_v34  ;;  %vm4456_vm9 = vmmov %vm4448_vm1 }
 0x9e7   :  { %v1591_v22 = vpop.f32.mrf.mxu2 }
 0x9e8   :  { %v1597_v21 = vmul.f32 2.0, %v1591_v22  ;;  %v2065_v22 = vld [vmem:[%s4195_s14] sm:$0xff] }
 0x9ea   :  { %v1599_v49 = vsel %vm4447_vm14, %v1597_v21, -1e+30  ;;  %vm4461_vm14 = vnez %v4305_v56  ;;  %v4477_v56 = vld [vmem:[#allocation13_spill] sm:$0xff] }
 0x9eb   :  { %2503 = vmatmul.msk.f32.vlgmr.msrb.gmra.mxu2 %vm4448_vm1, %v1599_v49  ;;  %2511 = vmatmul.msk.f32.vlgmr.msra.gmra.mxu3 %vm4449_vm15, %v1599_v49  ;;  %vm4462_vm1 = vnez %v4307_v12  ;;  %vm4463_vm15 = vmmov %vm4450_vm5  ;;  %v4479_v12 = vld [vmem:[#allocation14_spill] sm:$0xff] }
 0x9ec   :  { %2515 = vmatmul.msk.f32.vlgmr.msrb.gmra.mxu1 %vm4450_vm5, %v1599_v49  ;;  %2535 = vmatpush.msk.msrb.mxu2 %vm4451_vm0, %v4336_v41  ;;  %vm4465_vm5 = vnez %v4464_v26  ;;  %vm4467_vm0 = vnez %v4466_v16 }
 0x9ed   :  { %1902 = vmatpush.msrb.mxu1 %v3665_v47 }
 0x9ee   :  { %2536 = vmatpush.msk.msrb.mxu2 %vm4452_vm8, %v4336_v41  ;;  %vm4469_vm8 = vnez %v4468_v10  ;;  %v2199_v10 = vld [vmem:[%s4195_s14 + $0x18] sm:$0xff] }
 0x9ef   :  { %1903 = vmatpush.msrb.mxu1 %v3662_v6  ;;  %v1594_v17 = vpop.f32.mrf.mxu2 }
 0x9f0   :  { %v1598_v29 = vmul.f32 2.0, %v1594_v17  ;;  %2537 = vmatpush.msk.msrb.mxu2 %vm4453_vm7, %v4336_v41  ;;  %vm4471_vm7 = vnez %v4470_v11 }
 0x9f2   :  { %v1600_v34 = vsel %vm4454_vm3, %v1598_v29, -1e+30  ;;  %2538 = vmatpush.msk.msrb.mxu2 %vm4455_vm11, %v4336_v41  ;;  %vm4472_vm3 = vmmov %vm4457_vm6  ;;  %vm4474_vm11 = vnez %v4473_v55  ;;  %v1964_v55 = vpop.permute.xlu0 %1963 }
 0x9f3   :  { %2504 = vmatmul.msk.f32.gmra.mxu2 %vm4456_vm9, %v1600_v34  ;;  %2512 = vmatmul.msk.f32.gmra.mxu3 %vm4457_vm6, %v1600_v34  ;;  %vm4476_vm9 = vnez %v4475_v61  ;;  %vm4478_vm6 = vnez %v4477_v56 }
 0x9f4   :  { %2516 = vmatmul.msk.f32.gmra.mxu1 %vm4458_vm13, %v1600_v34  ;;  %2539 = vmatpush.msk.msrb.mxu2 %vm4459_vm10, %v4336_v41  ;;  %vm4480_vm13 = vnez %v4479_v12 }
 0x9f6   :  { %2540 = vmatpush.msk.msrb.mxu2 %vm4460_vm12, %v4336_v41 }
 0x9f8   :  { %2541 = vmatpush.msk.msrb.mxu2 %vm4461_vm14, %v4336_v41 }
 0x9fa   :  { %2542 = vmatpush.msk.msrb.mxu2 %vm4462_vm1, %v4336_v41 }
 0x9fb   :  { %2507 = vmatmul.msk.f32.vlgmr.msra.gmra.mxu2 %vm4463_vm15, %v1599_v49  ;;  %v1937_v49 = vpop.permute.xlu1 %1936 }
 0x9fc   :  { %2543 = vmatpush.msk.msrb.mxu2 %vm4465_vm5, %v4336_v41 }
 0x9fe   :  { %2544 = vmatpush.msk.msrb.mxu2 %vm4467_vm0, %v4336_v41 }
 0xa00   :  { %2545 = vmatpush.msk.msrb.mxu2 %vm4469_vm8, %v4336_v41 }
 0xa02   :  { %2546 = vmatpush.msk.msrb.mxu2 %vm4471_vm7, %v4336_v41 }
 0xa03   :  { %2508 = vmatmul.msk.f32.gmra.mxu2 %vm4472_vm3, %v1600_v34  ;;  %v4497_v34 = vld [vmem:[#allocation6_spill] sm:$0xff] }
 0xa04   :  { %2547 = vmatpush.msk.msrb.mxu2 %vm4474_vm11, %v4336_v41 }
 0xa06   :  { %2548 = vmatpush.msk.msrb.mxu2 %vm4476_vm9, %v4336_v41 }
 0xa08   :  { %2549 = vmatpush.msk.msrb.mxu2 %vm4478_vm6, %v4336_v41 }
 0xa0a   :  { %2550 = vmatpush.msk.msrb.mxu2 %vm4480_vm13, %v4336_v41 }
 0xa69   :  { %v1693_v5 = vpop.f32.mrf.mxu1 }
 0xa6e   :  { %v1624_v6 = vpop.f32.mrf.mxu2  ;;  %v1670_v47 = vpop.f32.mrf.mxu3 }
 0xa6f   :  { %vm1699_vm10 = vcmp.gt.f32.partialorder %v1624_v6, %v1670_v47  ;;  %vm1703_vm12 = vcmp.eq.f32.partialorder %v1624_v6, %v1670_v47  ;;  %v1967_v47 = vpop.permute.xlu1 %1966 }
 0xa70   :  { %vm1707_vm14 = vmand %vm1703_vm12, %vm119_vm4 }
 0xa71   :  { %vm1711_vm1 = vmor %vm1699_vm10, %vm1707_vm14  ;;  %v1696_v42 = vpop.f32.mrf.mxu1 }
 0xa72   :  { %2533 = vmatmul.msk.f32.vlgmr.msra.gmra.mxu0 %vm1711_vm1, %v4336_v41  ;;  %vm4483_vm1 = vcmp.gt.f32.partialorder %v2897_v28, 0.5 }
 0xa76   :  { %v1627_v24 = vpop.f32.mrf.mxu2  ;;  %v1673_v43 = vpop.f32.mrf.mxu3 }
 0xa77   :  { %vm1701_vm15 = vcmp.gt.f32.partialorder %v1627_v24, %v1673_v43  ;;  %vm1705_vm5 = vcmp.eq.f32.partialorder %v1627_v24, %v1673_v43  ;;  %v1943_v24 = vpop.permute.xlu0 %1942 }
 0xa78   :  { %vm1709_vm0 = vmand %vm1705_vm5, %vm119_vm4 }
 0xa79   :  { %vm1713_vm8 = vmor %vm1701_vm15, %vm1709_vm0  ;;  %vm4485_vm0 = vcmask 130048  }
 0xa7a   :  { %2534 = vmatmul.msk.f32.gmra.mxu0 %vm1713_vm8, %v4336_v41  ;;  %vm4486_vm8 = vmmov %vm4485_vm0 }
 0xa7e   :  { %v1647_v54 = vpop.f32.mrf.mxu2 }
 0xa7f   :  { %vm1700_vm7 = vcmp.gt.f32.partialorder %v1647_v54, %v1693_v5  ;;  %vm1704_vm3 = vcmp.eq.f32.partialorder %v1647_v54, %v1693_v5  ;;  %v1946_v54 = vpop.permute.xlu1 %1945 }
 0xa80   :  { %vm1708_vm11 = vmand %vm1704_vm3, %vm120_vm2 }
 0xa81   :  { %vm1712_vm9 = vmor %vm1700_vm7, %vm1708_vm11 }
 0xa82   :  { %2551 = vmatmul.msk.f32.vlgmr.msrb.gmra.mxu2 %vm1712_vm9, %v4336_v41  ;;  %vm4487_vm7 = vmmov %vm4485_vm0 }
 0xa83   :  { %vm4488_vm3 = vmmov %vm4485_vm0 }
 0xa84   :  { %vm4489_vm11 = vmmov %vm4485_vm0 }
 0xa85   :  { %vm4490_vm9 = vmmov %vm4485_vm0 }
 0xa86   :  { %v1650_v15 = vpop.f32.mrf.mxu2 }
 0xa87   :  { %vm1702_vm6 = vcmp.gt.f32.partialorder %v1650_v15, %v1696_v42  ;;  %vm1706_vm13 = vcmp.eq.f32.partialorder %v1650_v15, %v1696_v42 }
 0xa88   :  { %vm1710_vm4 = vmand %vm1706_vm13, %vm120_vm2  ;;  %vm4484_vm2 = vcmp.gt.f32.partialorder %v2912_v32, 0.5  ;;  %v1932_v32 = vld [vmem:[%s4432_s4 + $0x8] sm:$0xff] }
 0xa89   :  { %vm1714_vm10 = vmor %vm1702_vm6, %vm1710_vm4  ;;  %1939 = vperm.xlu2 %2628, %v1932_v32  }
 0xa8a   :  { %2552 = vmatmul.msk.f32.gmra.mxu2 %vm1714_vm10, %v4336_v41  ;;  %vm4491_vm6 = vmmov %vm4485_vm0 }
 0xa8b   :  { %vm4492_vm13 = vmmov %vm4485_vm0 }
 0xa8c   :  { %vm4493_vm4 = vmmov %vm4485_vm0 }
 0xa8d   :  { %vm4494_vm10 = vmmov %vm4485_vm0 }
 0xae3   :  { %v1940_v56 = vpop.permute.xlu2 %1939 }
 0xaef   :  { %v1736_v59 = vpop.f32.mrf.mxu0 }
 0xaf7   :  { %v1739_v1 = vpop.f32.mrf.mxu0 }
 0xb05   :  { %v1759_v7 = vpop.f32.mrf.mxu2 }
 0xb06   :  { %v1760_v63 = vadd.f32 %v1759_v7, %v1736_v59  ;;  %v2153_v7 = vld [vmem:[%s4195_s14 + $0x10] sm:$0xff] }
 0xb08   :  { %vm1765_vm12 = vcmp.lt.f32.partialorder %v1760_v63, %v4481_v33  ;;  %v2070_v63 = vld [vmem:[%s4195_s14 + $0x8] sm:$0xff] }
 0xb09   :  { %vm1767_vm5 = vmand %vm1765_vm12, %vm4484_vm2  ;;  %vm1947_vm2 = vcmp.eq.s32.totalorder %v4497_v34, %v1937_v49 }
 0xb0a   :  { %vm4495_vm12 = vmmov %vm4485_vm0  ;;  %v1951_v61 = vsel %vm1947_vm2, 1.0, %v4405_v25  ;;  %vm4505_vm2 = vcmask 64512  }
 0xb0d   :  { %v1762_v0 = vpop.f32.mrf.mxu2 }
 0xb0e   :  { %v1763_v46 = vadd.f32 %v1762_v0, %v1739_v1 }
 0xb10   :  { %vm1766_vm14 = vcmp.lt.f32.partialorder %v1763_v46, %v4482_v62 }
 0xb11   :  { %vm1768_vm15 = vmand %vm1766_vm14, %vm4483_vm1 }
 0xb12   :  { %2553 = vmatpush.msk.msrb.mxu3 %vm1768_vm15, %v4336_v41  ;;  %vm4496_vm14 = vmmov %vm4485_vm0  ;;  %vm1971_vm15 = vcmp.eq.s32.totalorder %v4497_v34, %v1961_v48 }
 0xb13   :  { %v1975_v11 = vsel %vm1971_vm15, 1.0, %v4405_v25  ;;  %vm4504_vm15 = vmmov %vm4485_vm0 }
 0xb14   :  { %2554 = vmatpush.msk.msrb.mxu3 %vm1767_vm5, %v4336_v41 }
 0xb15   :  { %2555 = vmatmul.msk.f32.vlgmr.msrb.gmra.mxu3 %vm4485_vm0, %v2934_v37 }
 0xb16   :  { %2139 = vmatpush.msra.mxu3 %v2065_v22 }
 0xb1d   :  { %2556 = vmatmul.msk.f32.gmra.mxu3 %vm4486_vm8, %v2947_v45  ;;  %vm4498_vm8 = vmmov %vm4485_vm0 }
 0xb25   :  { %2557 = vmatmul.msk.f32.gmra.mxu3 %vm4487_vm7, %v2955_v52  ;;  %v1958_v52 = vld [vmem:[%s4186_s5 + $0x18] sm:$0xff]  ;;  %vm1948_vm7 = vcmp.eq.s32.totalorder %v4497_v34, %v1940_v56 }
 0xb26   :  { %1969 = vperm.xlu2 %2628, %v1958_v52   ;;  %v1952_v12 = vsel %vm1948_vm7, 1.0, %v4405_v25 }
 0xb2d   :  { %2558 = vmatmul.msk.f32.gmra.mxu3 %vm4488_vm3, %v2961_v57  ;;  %vm1972_vm3 = vcmp.eq.s32.totalorder %v4497_v34, %v1964_v55 }
 0xb2e   :  { %v1976_v6 = vsel %vm1972_vm3, 1.0, %v4405_v25 }
 0xb35   :  { %2559 = vmatmul.msk.f32.gmra.mxu3 %vm4489_vm11, %v3679_v18  ;;  %vm4499_vm11 = vmmov %vm4485_vm0 }
 0xb3d   :  { %2560 = vmatmul.msk.f32.gmra.mxu3 %vm4490_vm9, %v3699_v50  ;;  %vm4500_vm9 = vmmov %vm4485_vm0 }
 0xb80   :  { %v1970_v42 = vpop.permute.xlu2 %1969 }
 0xb98   :  { %v1788_v28 = vpop.f32.mrf.mxu3 }
 0xb99   :  { %v1806_v18 = vmul.f32 %v1788_v28, %v3956_v44 }
 0xba0   :  { %v1791_v30 = vpop.f32.mrf.mxu3 }
 0xba1   :  { %v1807_v19 = vmul.f32 %v1791_v30, %v3952_v4 }
 0xba8   :  { %v1794_v37 = vpop.f32.mrf.mxu3 }
 0xba9   :  { %v1808_v45 = vmul.f32 %v1794_v37, %v3948_v3 }
 0xbab   :  { %2561 = vmatmul.msk.f32.vlgmr.msra.gmra.mxu1 %vm4491_vm6, %v1808_v45  ;;  %vm1949_vm6 = vcmp.eq.s32.totalorder %v4497_v34, %v1943_v24 }
 0xbac   :  { %v1953_v43 = vsel %vm1949_vm6, 1.0, %v4405_v25  ;;  %2098 = vmatpush.msra.mxu1 %v2070_v63 }
 0xbb0   :  { %v1797_v57 = vpop.f32.mrf.mxu3 }
 0xbb1   :  { %v1809_v53 = vmul.f32 %v1797_v57, %v3923_v39 }
 0xbb3   :  { %2562 = vmatmul.msk.f32.gmra.mxu1 %vm4492_vm13, %v1809_v53  ;;  %vm1973_vm13 = vcmp.eq.s32.totalorder %v4497_v34, %v1967_v47 }
 0xbb4   :  { %v1977_v5 = vsel %vm1973_vm13, 1.0, %v4405_v25 }
 0xbb8   :  { %v1800_v41 = vpop.f32.mrf.mxu3 }
 0xbb9   :  { %v1810_v50 = vmul.f32 %v1800_v41, %v3914_v14 }
 0xbbb   :  { %2563 = vmatmul.msk.f32.vlgmr.msrb.gmra.mxu0 %vm4493_vm4, %v1810_v50  ;;  %2565 = vmatmul.msk.f32.vlgmr.msrb.gmra.mxu1 %vm4494_vm10, %v1806_v18  ;;  %vm4501_vm4 = vmmov %vm4485_vm0  ;;  %v2260_v50 = vld [vmem:[%s4197_s16 + $0x18] sm:$0xff] }
 0xbbc   :  { %vm4502_vm10 = vmmov %vm4485_vm0  ;;  %2289 = vmatpush.msrb.mxu1 %v2260_v50 }
 0xbc0   :  { %v1803_v13 = vpop.f32.mrf.mxu3 }
 0xbc1   :  { %v1811_v60 = vmul.f32 %v1803_v13, %v3909_v58  ;;  %v2259_v13 = vld [vmem:[%s4197_s16 + $0x10] sm:$0xff] }
 0xbc2   :  { %2290 = vmatpush.msrb.mxu1 %v2259_v13 }
 0xbc3   :  { %2564 = vmatmul.msk.f32.gmra.mxu0 %vm4495_vm12, %v1811_v60  ;;  %2566 = vmatmul.msk.f32.gmra.mxu1 %vm4496_vm14, %v1807_v19  ;;  %vm1950_vm12 = vcmp.eq.s32.totalorder %v4497_v34, %v1946_v54  ;;  %vm1974_vm14 = vcmp.eq.s32.totalorder %v4497_v34, %v1970_v42  ;;  %v2258_v19 = vld [vmem:[%s4197_s16 + $0x8] sm:$0xff]  ;;  %v2257_v60 = vld [vmem:[%s4197_s16] sm:$0xff] }
 0xbc4   :  { %v1954_v15 = vsel %vm1950_vm12, 1.0, %v4405_v25  ;;  %v1978_v59 = vsel %vm1974_vm14, 1.0, %v4405_v25  ;;  %2291 = vmatpush.msrb.mxu1 %v2258_v19 }
 0xbc6   :  { %2292 = vmatpush.msrb.mxu1 %v2257_v60 }
 0xc28   :  { %v1841_v39 = vpop.f32.mrf.mxu1 }
 0xc30   :  { %v1844_v20 = vpop.f32.mrf.mxu1 }
 0xc38   :  { %v1876_v2 = vpop.f32.mrf.mxu0  ;;  %v1905_v40 = vpop.f32.mrf.mxu1 }
 0xc39   :  { %v1906_v31 = vadd.f32 %v1905_v40, %v1841_v39 }
 0xc3b   :  { %v1911_v27 = vadd.f32 %v1906_v31, %v1876_v2 }
 0xc3d   :  { %v1913_v14 = vmul.f32 0.33333334, %v1911_v27 }
 0xc3f   :  { %v1919_v51 = vadd.f32 %v2630_v23, %v1913_v14  ;;  %v2631_v14 = vld [vmem:[%s4196_s15] ss:$0 sm:$0xff] }
 0xc40   :  { %v1908_v9 = vpop.f32.mrf.mxu1  ;;  %v1879_v3 = vpop.f32.mrf.mxu0 }
 0xc41   :  { %v1909_v35 = vadd.f32 %v1908_v9, %v1844_v20  ;;  %v1923_v4 = vmul.f32 1.442695, %v1919_v51  ;;  %vm1921_vm5 = vcmp.gt.f32.partialorder %v1919_v51, 0.0 }
 0xc43   :  { %v1912_v58 = vadd.f32 %v1909_v35, %v1879_v3  ;;  %2691 = vpow2.f32 %v1923_v4 }
 0xc45   :  { %v1914_v38 = vmul.f32 0.33333334, %v1912_v58 }
 0xc47   :  { %v1920_v36 = vadd.f32 %v2630_v23, %v1914_v38 }
 0xc49   :  { %v1925_v44 = vmul.f32 1.442695, %v1920_v36  ;;  %v2692_v8 = vpop.eup %2691  ;;  %vm1922_vm1 = vcmp.gt.f32.partialorder %v1920_v36, 0.0 }
 0xc4a   :  { %v2567_v29 = vadd.f32 -1.0, %v2692_v8 }
 0xc4b   :  { %2693 = vpow2.f32 %v1925_v44 }
 0xc4c   :  { %v1929_v16 = vsel %vm1921_vm5, %v1919_v51, %v2567_v29  ;;  %vm4506_vm5 = vmmov %vm4505_vm2 }
 0xc51   :  { %v2694_v21 = vpop.eup %2693 }
 0xc52   :  { %v2568_v17 = vadd.f32 -1.0, %v2694_v21 }
 0xc54   :  { %v1930_v26 = vsel %vm1922_vm1, %v1920_v36, %v2568_v17  ;;  %vm4503_vm1 = vmmov %vm4485_vm0 }
 0xc55   :  { %2005 = vmatpush.msra.mxu0 %v1930_v26  ;;  %2046 = vmatpush.msra.mxu2 %v1930_v26 }
 0xc57   :  { %2006 = vmatpush.msra.mxu0 %v1929_v16  ;;  %2047 = vmatpush.msra.mxu2 %v1929_v16 }
 0xc58   :  { %2569 = vmatmul.msk.f32.vlgmr.msra.gmra.mxu0 %vm4485_vm0, %v1951_v61  ;;  %2573 = vmatmul.msk.f32.vlgmr.msra.gmra.mxu2 %vm4498_vm8, %v1975_v11  ;;  %vm4507_vm0 = vmmov %vm4505_vm2 }
 0xc59   :  { %2227 = vmatpush.msrb.mxu2 %v2199_v10  ;;  %2181 = vmatpush.msrb.mxu0 %v2153_v7  ;;  %vm4508_vm8 = vmmov %vm4507_vm0 }
 0xc5a   :  { %vm4509_vm7 = vmmov %vm4507_vm0 }
 0xc5b   :  { %vm4510_vm3 = vmmov %vm4507_vm0 }
 0xc5c   :  { %vm4513_vm6 = vmmov %vm4507_vm0 }
 0xc5d   :  { %vm4514_vm13 = vmmov %vm4507_vm0 }
 0xc5e   :  { %vm4517_vm12 = vmmov %vm4507_vm0 }
 0xc5f   :  { %vm4518_vm14 = vmmov %vm4507_vm0 }
 0xc60   :  { %2570 = vmatmul.msk.f32.gmra.mxu0 %vm4499_vm11, %v1952_v12  ;;  %2574 = vmatmul.msk.f32.gmra.mxu2 %vm4500_vm9, %v1976_v6  ;;  %vm4511_vm11 = vmmov %vm4507_vm0 }
 0xc61   :  { %vm4512_vm9 = vmmov %vm4507_vm0 }
 0xc68   :  { %2571 = vmatmul.msk.f32.gmra.mxu0 %vm4501_vm4, %v1953_v43  ;;  %2575 = vmatmul.msk.f32.gmra.mxu2 %vm4502_vm10, %v1977_v5  ;;  %vm4515_vm4 = vmmov %vm4507_vm0 }
 0xc69   :  { %vm4516_vm10 = vmmov %vm4507_vm0 }
 0xc70   :  { %2572 = vmatmul.msk.f32.gmra.mxu0 %vm4503_vm1, %v1954_v15  ;;  %2576 = vmatmul.msk.f32.gmra.mxu2 %vm4504_vm15, %v1978_v59  ;;  %vm4519_vm1 = vmmov %vm4507_vm0  ;;  %v2632_v15 = vld [vmem:[%s4198_s17] ss:$0 sm:$0xff]  ;;  %s2733_s17 = smov [#allocation3]  }
 0xc71   :  { %vm4520_vm15 = vmmov %vm4507_vm0  ;;  %s2364_s0 = sshll.u32 %s2733_s17, 4  ;;  %s2365_s0 = int_to_ptr.vmem [resolvable:$true] %s2364_s0 }
 0xcd5   :  { %v2008_v1 = vpop.f32.mrf.mxu0 }
 0xcd6   :  { %2585 = vmatmul.msk.f32.vlgmr.msrb.gmra.mxu0 %vm4505_vm2, %v2008_v1  ;;  %vm4521_vm2 = vcmask 261120  }
 0xcdb   :  { %v2049_v0 = vpop.f32.mrf.mxu2 }
 0xcdc   :  { %v2061_v46 = vadd.f32 %v2049_v0, %v2008_v1  ;;  %v2066_v25 = vmul.f32 %v2049_v0, %v2008_v1  ;;  %2589 = vmatmul.msk.f32.vlgmr.msrb.gmra.mxu2 %vm4506_vm5, %v2049_v0  ;;  %vm4522_vm5 = vmmov %vm4521_vm2 }
 0xcdd   :  { %v2011_v33 = vpop.f32.mrf.mxu0 }
 0xcde   :  { %2577 = vmatmul.msk.f32.vlgmr.msra.gmra.mxu1 %vm4507_vm0, %v2066_v25  ;;  %2581 = vmatmul.msk.f32.vlgmr.msra.gmra.mxu3 %vm4508_vm8, %v2061_v46  ;;  %vm4523_vm0 = vmmov %vm4521_vm2 }
 0xcdf   :  { %2586 = vmatmul.msk.f32.gmra.mxu0 %vm4509_vm7, %v2011_v33  ;;  %vm4524_vm8 = vmmov %vm4523_vm0  ;;  %vm4525_vm7 = vcmask 130048  }
 0xce3   :  { %v2052_v62 = vpop.f32.mrf.mxu2 }
 0xce4   :  { %v2062_v28 = vadd.f32 %v2052_v62, %v2011_v33  ;;  %v2067_v30 = vmul.f32 %v2052_v62, %v2011_v33  ;;  %2590 = vmatmul.msk.f32.gmra.mxu2 %vm4510_vm3, %v2052_v62  ;;  %vm4526_vm3 = vmmov %vm4525_vm7 }
 0xce5   :  { %v2014_v32 = vpop.f32.mrf.mxu0 }
 0xce6   :  { %2578 = vmatmul.msk.f32.gmra.mxu1 %vm4511_vm11, %v2067_v30  ;;  %2582 = vmatmul.msk.f32.gmra.mxu3 %vm4512_vm9, %v2062_v28  ;;  %vm4527_vm11 = vmmov %vm4526_vm3  ;;  %v2310_v28 = vld [vmem:[%s4199_s18] sm:$0x1]  ;;  %v2315_v30 = vpop.permute.xlu0 %2314 }
 0xce7   :  { %2587 = vmatmul.msk.f32.gmra.mxu0 %vm4513_vm6, %v2014_v32  ;;  %vm4528_vm9 = vmmov %vm4526_vm3 }
 0xce8   :  { %vm4529_vm6 = vmmov %vm4526_vm3 }
 0xceb   :  { %v2055_v37 = vpop.f32.mrf.mxu2 }
 0xcec   :  { %v2063_v45 = vadd.f32 %v2055_v37, %v2014_v32  ;;  %v2068_v52 = vmul.f32 %v2055_v37, %v2014_v32  ;;  %2591 = vmatmul.msk.f32.gmra.mxu2 %vm4514_vm13, %v2055_v37  ;;  %v2317_v32 = vperm.slane %v2315_v30, 0  ;;  %vm2357_vm13 = vcmask 253952  }
 0xced   :  { %v2017_v57 = vpop.f32.mrf.mxu0 }
 0xcee   :  { %2579 = vmatmul.msk.f32.gmra.mxu1 %vm4515_vm4, %v2068_v52  ;;  %2583 = vmatmul.msk.f32.gmra.mxu3 %vm4516_vm10, %v2063_v45 }
 0xcef   :  { %2588 = vmatmul.msk.f32.gmra.mxu0 %vm4517_vm12, %v2017_v57 }
 0xcf3   :  { %v2058_v53 = vpop.f32.mrf.mxu2 }
 0xcf4   :  { %v2064_v41 = vadd.f32 %v2058_v53, %v2017_v57  ;;  %v2069_v18 = vmul.f32 %v2058_v53, %v2017_v57  ;;  %2592 = vmatmul.msk.f32.gmra.mxu2 %vm4518_vm14, %v2058_v53 }
 0xcf6   :  { %2580 = vmatmul.msk.f32.gmra.mxu1 %vm4519_vm1, %v2069_v18  ;;  %2584 = vmatmul.msk.f32.gmra.mxu3 %vm4520_vm15, %v2064_v41 }
 0xd53   :  { %v2183_v20 = vpop.f32.mrf.mxu0 }
 0xd5b   :  { %v2100_v39 = vpop.f32.mrf.mxu1 }
 0xd5c   :  { %v2186_v51 = vpop.f32.mrf.mxu0 }
 0xd5f   :  { %v2229_v2 = vpop.f32.mrf.mxu2 }
 0xd61   :  { %v2141_v40 = vpop.f32.mrf.mxu3 }
 0xd62   :  { %v2142_v31 = vadd.f32 %v2141_v40, %v2100_v39 }
 0xd63   :  { %v2103_v23 = vpop.f32.mrf.mxu1 }
 0xd64   :  { %v2195_v27 = vadd.f32 %v2183_v20, %v2142_v31  ;;  %v2189_v22 = vpop.f32.mrf.mxu0 }
 0xd66   :  { %v2241_v9 = vadd.f32 %v2229_v2, %v2195_v27 }
 0xd67   :  { %v2232_v3 = vpop.f32.mrf.mxu2 }
 0xd68   :  { %v2249_v35 = vadd.f32 %v2631_v14, %v2241_v9 }
 0xd69   :  { %v2144_v58 = vpop.f32.mrf.mxu3 }
 0xd6a   :  { %v2253_v38 = vmax.f32 %v2249_v35, 0.0  ;;  %v2145_v4 = vadd.f32 %v2144_v58, %v2103_v23 }
 0xd6b   :  { %v2106_v48 = vpop.f32.mrf.mxu1 }
 0xd6c   :  { %v2196_v36 = vadd.f32 %v2186_v51, %v2145_v4  ;;  %2593 = vmatmul.msk.f32.vlgmr.msrb.gmra.mxu1 %vm4521_vm2, %v2253_v38  ;;  %v2192_v56 = vpop.f32.mrf.mxu0 }
 0xd6e   :  { %v2242_v44 = vadd.f32 %v2232_v3, %v2196_v36 }
 0xd6f   :  { %v2235_v29 = vpop.f32.mrf.mxu2 }
 0xd70   :  { %v2250_v8 = vadd.f32 %v2631_v14, %v2242_v44 }
 0xd71   :  { %v2147_v21 = vpop.f32.mrf.mxu3 }
 0xd72   :  { %v2254_v49 = vmax.f32 %v2250_v8, 0.0  ;;  %v2148_v17 = vadd.f32 %v2147_v21, %v2106_v48 }
 0xd73   :  { %v2109_v10 = vpop.f32.mrf.mxu1 }
 0xd74   :  { %v2197_v34 = vadd.f32 %v2189_v22, %v2148_v17  ;;  %2594 = vmatmul.msk.f32.gmra.mxu1 %vm4522_vm5, %v2254_v49 }
 0xd76   :  { %v2243_v26 = vadd.f32 %v2235_v29, %v2197_v34 }
 0xd77   :  { %v2238_v6 = vpop.f32.mrf.mxu2 }
 0xd78   :  { %v2251_v16 = vadd.f32 %v2631_v14, %v2243_v26 }
 0xd79   :  { %v2150_v11 = vpop.f32.mrf.mxu3 }
 0xd7a   :  { %v2255_v55 = vmax.f32 %v2251_v16, 0.0  ;;  %v2151_v61 = vadd.f32 %v2150_v11, %v2109_v10 }
 0xd7c   :  { %v2198_v12 = vadd.f32 %v2192_v56, %v2151_v61  ;;  %2595 = vmatmul.msk.f32.gmra.mxu1 %vm4523_vm0, %v2255_v55 }
 0xd7e   :  { %v2244_v47 = vadd.f32 %v2238_v6, %v2198_v12 }
 0xd80   :  { %v2252_v24 = vadd.f32 %v2631_v14, %v2244_v47 }
 0xd82   :  { %v2256_v43 = vmax.f32 %v2252_v24, 0.0 }
 0xd84   :  { %2596 = vmatmul.msk.f32.gmra.mxu1 %vm4524_vm8, %v2256_v43 }
 0xde9   :  { %v2294_v5 = vpop.f32.mrf.mxu1 }
 0xdea   :  { %v2295_v25 = vadd.f32 %v2632_v15, %v2294_v5 }
 0xdec   :  { %v2306_v62 = vmax.f32 %v2295_v25, 0.0 }
 0xdf1   :  { %v2297_v54 = vpop.f32.mrf.mxu1 }
 0xdf2   :  { %v2298_v0 = vadd.f32 %v2632_v15, %v2297_v54 }
 0xdf4   :  { %v2307_v33 = vmax.f32 %v2298_v0, 0.0 }
 0xdf9   :  { %v2300_v42 = vpop.f32.mrf.mxu1 }
 0xdfa   :  { %v2301_v63 = vadd.f32 %v2632_v15, %v2300_v42 }
 0xdfc   :  { %v2308_v46 = vmax.f32 %v2301_v63, 0.0 }
 0xe01   :  { %v2303_v59 = vpop.f32.mrf.mxu1 }
 0xe02   :  { %v2304_v7 = vadd.f32 %v2632_v15, %v2303_v59 }
 0xe04   :  { %v2309_v1 = vmax.f32 %v2304_v7, 0.0 }
 0xe06   :  { %2597 = vmatpush.xpose.msk.msrb.mxu3 %vm4525_vm7, %v2309_v1 }
 0xe0a   :  { %2598 = vmatpush.xpose.msk.msrb.mxu3 %vm4526_vm3, %v2308_v46 }
 0xe0e   :  { %2599 = vmatpush.xpose.msk.msrb.mxu3 %vm4527_vm11, %v2307_v33 }
 0xe12   :  { %2600 = vmatpush.xpose.msk.msrb.mxu3 %vm4528_vm9, %v2306_v62 }
 0xe15   :  { %2601 = vmatmul.msk.f32.vlgmr.msrb.gmra.mxu3 %vm4529_vm6, %v2310_v28 }
 0xe98   :  { %v2350_v37 = vpop.f32.mrf.mxu3 }
 0xe99   :  { %v2351_v45 = vadd.f32 %v2350_v37, %v2317_v32 }
 0xe9b   :  { %v2353_v52 = vmul.f32 0.5, %v2351_v45 }
 0xe9d   :  { %2695 = vtanh.f32 %v2353_v52 }
 0xea3   :  { %v2696_v57 = vpop.eup %2695 }
 0xea4   :  { %v2355_v53 = vadd.f32 1.0, %v2696_v57 }
 0xea6   :  { %v2356_v41 = vmul.f32 0.5, %v2355_v53 }
 0xea8   :  { %2358 = vst.msk [vmem:[#allocation3] sm:$0x1] %vm2357_vm13, %v2356_v41 }
 0xea9   :  { %2369 = dma.vmem_to_hbm [thread:$0]  %s2365_s0, 16, %s2367_s8, [#allocation4]  }
 0xeaa   :  { %2723 = dma.done.wait [#allocation4], 16  }
 0xeab   :  { %2724 = vsyncadd [#allocation4], 4294967280 }
 0xeac   :  { %2374 = vsyncpa [#allocation4], 1 }

</bundles_post_ra>
